<compile_context>
chip_gen: v5e
topology: v5e:2x2
jax: 0.10.0
libtpu: 0.0.40
codegen_flags: <defaults>
</compile_context>

<pallas_src>
import jax
import jax.numpy as jnp
import numpy as np
from jax import lax
from jax.experimental import pallas as pl
from jax.experimental.pallas import tpu as pltpu

EPS = 1e-5
LANE = 128


def _round_up(x, m):
    return (x + m - 1) // m * m


# ----------------------------------------------------------------------------
# Kernel
# ----------------------------------------------------------------------------
def make_down_kernel(NB, Hp, Wp, CP_in, CP_mid, CP_out):
    """Fused maxpool(2) + (conv3x3 + BN + ReLU) x2 for one batch block."""
    P = Wp + 2                      # padded width
    Q = Hp + 2                      # padded height
    Rimg = Q * P                    # rows per padded image
    R = NB * Rimg                   # rows per batch block
    band = P + 1                    # first interior row of the block
    M = R - 2 * band                # contiguous band of rows that is computed

    def kernel(xq_ref, w1_ref, s1_ref, b1_ref, w2_ref, s2_ref, b2_ref, mask_ref,
               o_ref, pad1, pad2, col):
        # -------- MaxPool2d(2) --------
        # The 4 quadrant slabs already carry the conv zero-padding border, so a
        # single full-width max + one contiguous store fully rebuilds pad1.
        pad1[...] = jnp.maximum(jnp.maximum(xq_ref[0], xq_ref[1]),
                                jnp.maximum(xq_ref[2], xq_ref[3]))

        # Zero only the small out-of-band borders (band rows each); the in-band
        # region is fully overwritten below.
        pad2[0:band, :] = jnp.zeros((band, CP_mid), pad2.dtype)
        pad2[band + M:R, :] = jnp.zeros((band, CP_mid), pad2.dtype)

        mask = mask_ref[...]        # (M, 1): 1.0 at interior pixels, 0.0 at padding

        def conv_bn_relu(src, c_in, w_ref, s_ref, b_ref):
            # im2col: 9 row-shifted, lane-aligned copies -> one MXU matmul with
            # K = 9*c_in against dense per-tap weights.
            for ky in range(3):
                for kx in range(3):
                    t = ky * 3 + kx
                    d = (ky - 1) * P + (kx - 1)            # pure row/sublane shift
                    col[:, t * c_in:(t + 1) * c_in] = src[band + d:band + d + M, :]
            acc = jnp.dot(col[:, :9 * c_in], w_ref[...],
                          preferred_element_type=jnp.float32)
            # Folded eval-mode BatchNorm + ReLU; mask zeroes the non-interior
            # rows of the band so the result is exactly the zero-padded map.
            return jnp.maximum(acc * s_ref[...] + b_ref[...], 0.0) * mask

        # -------- Conv1 (3x3, pad=1) + BN + ReLU --------
        y1 = conv_bn_relu(pad1, CP_in, w1_ref, s1_ref, b1_ref)
        pad2[band:band + M, :] = y1.astype(pad2.dtype)

        # -------- Conv2 (3x3, pad=1) + BN + ReLU --------
        y2 = conv_bn_relu(pad2, CP_mid, w2_ref, s2_ref, b2_ref)
        o_ref[0:band, :] = jnp.zeros((band, CP_out), o_ref.dtype)
        o_ref[band + M:R, :] = jnp.zeros((band, CP_out), o_ref.dtype)
        o_ref[band:band + M, :] = y2.astype(o_ref.dtype)

    return kernel


# ----------------------------------------------------------------------------
# Parameter / layout preparation (plain JAX glue)
# ----------------------------------------------------------------------------
def _fold_bn(conv_bias, gamma, beta, mean, var):
    """Fold conv bias + eval-mode BatchNorm into a per-channel scale & bias."""
    scale = gamma / jnp.sqrt(var + EPS)
    bias = (conv_bias - mean) * scale + beta
    return scale, bias


def _im2col_weight(w, cp_in, cp_out, dtype):
    """w: (Cout, Cin, 3, 3) torch layout -> dense (9*cp_in, cp_out), tap-major."""
    c_out, c_in = w.shape[0], w.shape[1]
    taps = []
    for ky in range(3):
        for kx in range(3):
            wt = w[:, :, ky, kx].T                              # (Cin, Cout)
            taps.append(jnp.pad(wt, ((0, cp_in - c_in), (0, cp_out - c_out))))
    return jnp.concatenate(taps, axis=0).astype(dtype)          # (9*cp_in, cp_out)


def _interior_mask(NB, Hp, Wp):
    """1.0 at interior pixels of the computed band, 0.0 at padding columns/rows."""
    P, Q = Wp + 2, Hp + 2
    Rimg = Q * P
    band = P + 1
    M = NB * Rimg - 2 * band
    o = np.arange(band, band + M)
    xp = o % P
    yp = (o // P) % Q
    interior = (xp >= 1) & (xp <= Wp) & (yp >= 1) & (yp <= Hp)
    return jnp.asarray(interior.astype(np.float32).reshape(M, 1))


def _pick_batch_block(n, rimg, target_rows=512):
    """Largest divisor of n whose row count is <= target (fills the MXU M dim)
    while keeping the row block 8-aligned when it is not the full batch."""
    best = n
    for nb in range(n, 0, -1):
        if n % nb:
            continue
        if nb == n or (nb * rimg) % 8 == 0:
            best = nb
            if nb * rimg <= max(target_rows, rimg):
                return nb
    return best


def down_forward(x_nchw, p, *, compute_dtype=jnp.float32):
    """MaxPool2d(2) + double (Conv3x3 + BN(eval) + ReLU), fused in one kernel.

    compute_dtype=jnp.bfloat16 is recommended on v6e/v7x (accumulation stays in
    f32); the f32 default matches the reference to ~1e-5.
    """
    N, Cin, H, W = x_nchw.shape
    assert H % 2 == 0 and W % 2 == 0, "MaxPool2d(2) expects even H and W"
    Hp, Wp = H // 2, W // 2
    Cmid = p["w1"].shape[0]
    Cout = p["w2"].shape[0]

    CP_in = _round_up(Cin, LANE)
    CP_mid = _round_up(Cmid, LANE)
    CP_out = _round_up(Cout, LANE)

    P, Q = Wp + 2, Hp + 2
    Rimg = Q * P
    NB = _pick_batch_block(N, Rimg)
    nblk = N // NB
    R = NB * Rimg
    band = P + 1
    M = R - 2 * band

    # ---- layout prep: NCHW -> NHWC, channels padded onto lanes ----
    x = jnp.transpose(x_nchw, (0, 2, 3, 1)).astype(compute_dtype)
    x = jnp.pad(x, ((0, 0), (0, 0), (0, 0), (0, CP_in - Cin)))
    # De-interleave the four 2x2 max-pool quadrants; each quadrant is placed in
    # the zero-padded conv geometry and flattened to (batch*padded-spatial, C).
    quads = []
    for qy in (0, 1):
        for qx in (0, 1):
            xq = x[:, qy::2, qx::2, :]                              # (N,Hp,Wp,CP_in)
            xq = jnp.pad(xq, ((0, 0), (1, 1), (1, 1), (0, 0)))      # (N,Q,P,CP_in)
            quads.append(xq.reshape(N * Rimg, CP_in))
    xquad = jnp.stack(quads, axis=0)                                # (4,N*Rimg,CP_in)

    # ---- dense per-tap weights + folded BN params (padded to lane width) ----
    w1 = _im2col_weight(p["w1"], CP_in, CP_mid, compute_dtype)      # (9*CP_in, CP_mid)
    w2 = _im2col_weight(p["w2"], CP_mid, CP_out, compute_dtype)     # (9*CP_mid, CP_out)
    s1, b1 = _fold_bn(p["b1"], p["g1"], p["be1"], p["m1"], p["v1"])
    s2, b2 = _fold_bn(p["b2"], p["g2"], p["be2"], p["m2"], p["v2"])
    s1 = jnp.pad(s1, (0, CP_mid - Cmid)).reshape(1, CP_mid).astype(jnp.float32)
    b1 = jnp.pad(b1, (0, CP_mid - Cmid)).reshape(1, CP_mid).astype(jnp.float32)
    s2 = jnp.pad(s2, (0, CP_out - Cout)).reshape(1, CP_out).astype(jnp.float32)
    b2 = jnp.pad(b2, (0, CP_out - Cout)).reshape(1, CP_out).astype(jnp.float32)
    mask = _interior_mask(NB, Hp, Wp)                               # (M, 1) f32

    cost = pl.CostEstimate(
        flops=2 * N * Hp * Wp * 9 * (Cin * Cmid + Cmid * Cout),
        transcendentals=0,
        bytes_accessed=4 * (xquad.size + w1.size + w2.size + N * Rimg * CP_out))

    cpmax = max(CP_in, CP_mid)
    out_flat = pl.pallas_call(
        make_down_kernel(NB, Hp, Wp, CP_in, CP_mid, CP_out),
        out_shape=jax.ShapeDtypeStruct((N * Rimg, CP_out), jnp.float32),
        grid=(nblk,),
        in_specs=[
            pl.BlockSpec((4, R, CP_in), lambda n: (0, n, 0)),
            # Grid-invariant weights / BN params / mask (constant index_map, so
            # they are only DMA'd once even if the batch is blocked).
            pl.BlockSpec((9 * CP_in, CP_mid), lambda n: (0, 0)),
            pl.BlockSpec((1, CP_mid), lambda n: (0, 0)),
            pl.BlockSpec((1, CP_mid), lambda n: (0, 0)),
            pl.BlockSpec((9 * CP_mid, CP_out), lambda n: (0, 0)),
            pl.BlockSpec((1, CP_out), lambda n: (0, 0)),
            pl.BlockSpec((1, CP_out), lambda n: (0, 0)),
            pl.BlockSpec((M, 1), lambda n: (0, 0)),
        ],
        out_specs=pl.BlockSpec((R, CP_out), lambda n: (n, 0)),
        scratch_shapes=[
            pltpu.VMEM((R, CP_in), compute_dtype),       # pad1: pooled, padded geometry
            pltpu.VMEM((R, CP_mid), compute_dtype),      # pad2: conv1 out, padded geometry
            pltpu.VMEM((M, 9 * cpmax), compute_dtype),   # im2col staging buffer
        ],
        compiler_params=pltpu.CompilerParams(
            dimension_semantics=("parallel",)),
        cost_estimate=cost,
    )(xquad, w1, s1, b1, w2, s2, b2, mask)

    # Padded flattened geometry -> NCHW; drop conv-padding border & lane padding.
    out = out_flat.reshape(N, Q, P, CP_out)[:, 1:Hp + 1, 1:Wp + 1, :Cout]
    return jnp.transpose(out, (0, 3, 1, 2))


# ----------------------------------------------------------------------------
# Pure-JAX reference (matches PyTorch Down forward, eval mode)
# ----------------------------------------------------------------------------
def ref_down(x, p):
    N, Cin, H, W = x.shape
    xp = x.reshape(N, Cin, H // 2, 2, W // 2, 2).max(axis=(3, 5))

    def conv_bn_relu(z, w, b, g, be, m, v):
        y = lax.conv_general_dilated(z, w, window_strides=(1, 1),
                                     padding=((1, 1), (1, 1)),
                                     dimension_numbers=("NCHW", "OIHW", "NCHW"))
        y = y + b[None, :, None, None]
        y = (y - m[None, :, None, None]) / jnp.sqrt(v[None, :, None, None] + EPS)
        y = y * g[None, :, None, None] + be[None, :, None, None]
        return jnp.maximum(y, 0.0)

    y = conv_bn_relu(xp, p["w1"], p["b1"], p["g1"], p["be1"], p["m1"], p["v1"])
    y = conv_bn_relu(y, p["w2"], p["b2"], p["g2"], p["be2"], p["m2"], p["v2"])
    return y


if __name__ == "__main__":
    key = jax.random.PRNGKey(0)
    N, Cin, H, W = 2, 4, 16, 16     # small NCHW input
    Cout = 8                        # Down(in_ch=4, out_ch=8)
    ks = jax.random.split(key, 15)

    x = jax.random.normal(ks[0], (N, Cin, H, W), jnp.float32)
    params = {
        # conv1: in_ch -> out_ch
        "w1": 0.2 * jax.random.normal(ks[1], (Cout, Cin, 3, 3), jnp.float32),
        "b1": 0.1 * jax.random.normal(ks[2], (Cout,), jnp.float32),
        "g1": 1.0 + 0.1 * jax.random.normal(ks[3], (Cout,), jnp.float32),
        "be1": 0.1 * jax.random.normal(ks[4], (Cout,), jnp.float32),
        "m1": 0.1 * jax.random.normal(ks[5], (Cout,), jnp.float32),
        "v1": 1.0 + 0.5 * jax.random.uniform(ks[6], (Cout,), jnp.float32),
        # conv2: out_ch -> out_ch
        "w2": 0.2 * jax.random.normal(ks[7], (Cout, Cout, 3, 3), jnp.float32),
        "b2": 0.1 * jax.random.normal(ks[8], (Cout,), jnp.float32),
        "g2": 1.0 + 0.1 * jax.random.normal(ks[9], (Cout,), jnp.float32),
        "be2": 0.1 * jax.random.normal(ks[10], (Cout,), jnp.float32),
        "m2": 0.1 * jax.random.normal(ks[11], (Cout,), jnp.float32),
        "v2": 1.0 + 0.5 * jax.random.uniform(ks[12], (Cout,), jnp.float32),
    }

    out = down_forward(x, params)
    out = jax.block_until_ready(out)

    assert out.shape == (N, Cout, H // 2, W // 2), out.shape
    ref = ref_down(x, params)
    max_err = float(jnp.max(jnp.abs(out - ref)))
    assert max_err < 1e-4, f"mismatch vs reference: {max_err}"

    print("KERNEL_OK")
</pallas_src>

<mosaic_0001>
module attributes {stable_mosaic.version = 11 : i64} {
  func.func @kernel(%arg0: i32, %arg1: memref<4x200x128xf32, #tpu.memory_space<vmem>>, %arg2: memref<1152x128xf32, #tpu.memory_space<vmem>>, %arg3: memref<1x128xf32, #tpu.memory_space<vmem>>, %arg4: memref<1x128xf32, #tpu.memory_space<vmem>>, %arg5: memref<1152x128xf32, #tpu.memory_space<vmem>>, %arg6: memref<1x128xf32, #tpu.memory_space<vmem>>, %arg7: memref<1x128xf32, #tpu.memory_space<vmem>>, %arg8: memref<178x1xf32, #tpu.memory_space<vmem>>, %arg9: memref<200x128xf32, #tpu.memory_space<vmem>>, %arg10: memref<200x128xf32, #tpu.memory_space<vmem>>, %arg11: memref<200x128xf32, #tpu.memory_space<vmem>>, %arg12: memref<178x1152xf32, #tpu.memory_space<vmem>>) attributes {dimension_semantics = [#tpu.dimension_semantics<parallel>], iteration_bounds = array<i64: 1>, scalar_prefetch = 0 : i64, scratch_operands = 3 : i64, tpu.core_type = #tpu.core_type<tc>, window_params = [{transform_indices = @transform_0, window_bounds = array<i64: 4, 200, 128>}, {pipeline_mode = #tpu.pipeline_mode<synchronous>, transform_indices = @transform_1, window_bounds = array<i64: 1152, 128>}, {pipeline_mode = #tpu.pipeline_mode<synchronous>, transform_indices = @transform_2, window_bounds = array<i64: 1, 128>}, {pipeline_mode = #tpu.pipeline_mode<synchronous>, transform_indices = @transform_3, window_bounds = array<i64: 1, 128>}, {pipeline_mode = #tpu.pipeline_mode<synchronous>, transform_indices = @transform_4, window_bounds = array<i64: 1152, 128>}, {pipeline_mode = #tpu.pipeline_mode<synchronous>, transform_indices = @transform_5, window_bounds = array<i64: 1, 128>}, {pipeline_mode = #tpu.pipeline_mode<synchronous>, transform_indices = @transform_6, window_bounds = array<i64: 1, 128>}, {pipeline_mode = #tpu.pipeline_mode<synchronous>, transform_indices = @transform_7, window_bounds = array<i64: 178, 1>}, {transform_indices = @transform_8, window_bounds = array<i64: 200, 128>}]} {
    %c0 = arith.constant 0 : index
    %c0_0 = arith.constant 0 : index
    %c0_1 = arith.constant 0 : index
    %0 = vector.load %arg1[%c0, %c0_0, %c0_1] : memref<4x200x128xf32, #tpu.memory_space<vmem>>, vector<1x200x128xf32>
    %1 = vector.shape_cast %0 : vector<1x200x128xf32> to vector<200x128xf32>
    %c1 = arith.constant 1 : index
    %c0_2 = arith.constant 0 : index
    %c0_3 = arith.constant 0 : index
    %2 = vector.load %arg1[%c1, %c0_2, %c0_3] : memref<4x200x128xf32, #tpu.memory_space<vmem>>, vector<1x200x128xf32>
    %3 = vector.shape_cast %2 : vector<1x200x128xf32> to vector<200x128xf32>
    %4 = arith.maximumf %1, %3 : vector<200x128xf32>
    %c2 = arith.constant 2 : index
    %c0_4 = arith.constant 0 : index
    %c0_5 = arith.constant 0 : index
    %5 = vector.load %arg1[%c2, %c0_4, %c0_5] : memref<4x200x128xf32, #tpu.memory_space<vmem>>, vector<1x200x128xf32>
    %6 = vector.shape_cast %5 : vector<1x200x128xf32> to vector<200x128xf32>
    %c3 = arith.constant 3 : index
    %c0_6 = arith.constant 0 : index
    %c0_7 = arith.constant 0 : index
    %7 = vector.load %arg1[%c3, %c0_6, %c0_7] : memref<4x200x128xf32, #tpu.memory_space<vmem>>, vector<1x200x128xf32>
    %8 = vector.shape_cast %7 : vector<1x200x128xf32> to vector<200x128xf32>
    %9 = arith.maximumf %6, %8 : vector<200x128xf32>
    %10 = arith.maximumf %4, %9 : vector<200x128xf32>
    %c0_8 = arith.constant 0 : index
    %c0_9 = arith.constant 0 : index
    %11 = vector.load %arg10[%c0_8, %c0_9] : memref<200x128xf32, #tpu.memory_space<vmem>>, vector<200x128xf32>
    tpu.vector_store %arg10[%c0_8, %c0_9], %10 {strides = array<i32>} : memref<200x128xf32, #tpu.memory_space<vmem>>, vector<200x128xf32>,
    %cst = arith.constant 0.000000e+00 : f32
    %12 = vector.broadcast %cst : f32 to vector<11x128xf32>
    %c0_10 = arith.constant 0 : index
    %c0_11 = arith.constant 0 : index
    %13 = vector.load %arg11[%c0_10, %c0_11] : memref<200x128xf32, #tpu.memory_space<vmem>>, vector<11x128xf32>
    tpu.vector_store %arg11[%c0_10, %c0_11], %12 {strides = array<i32>} : memref<200x128xf32, #tpu.memory_space<vmem>>, vector<11x128xf32>,
    %cst_12 = arith.constant 0.000000e+00 : f32
    %14 = vector.broadcast %cst_12 : f32 to vector<11x128xf32>
    %c189 = arith.constant 189 : index
    %c0_13 = arith.constant 0 : index
    %15 = vector.load %arg11[%c189, %c0_13] : memref<200x128xf32, #tpu.memory_space<vmem>>, vector<11x128xf32>
    tpu.vector_store %arg11[%c189, %c0_13], %14 {strides = array<i32>} : memref<200x128xf32, #tpu.memory_space<vmem>>, vector<11x128xf32>,
    %c0_14 = arith.constant 0 : index
    %c0_15 = arith.constant 0 : index
    %16 = vector.load %arg8[%c0_14, %c0_15] : memref<178x1xf32, #tpu.memory_space<vmem>>, vector<178x1xf32>
    %c0_16 = arith.constant 0 : index
    %c0_17 = arith.constant 0 : index
    %17 = vector.load %arg10[%c0_16, %c0_17] : memref<200x128xf32, #tpu.memory_space<vmem>>, vector<178x128xf32>
    %c0_18 = arith.constant 0 : index
    %c0_19 = arith.constant 0 : index
    %18 = vector.load %arg12[%c0_18, %c0_19] : memref<178x1152xf32, #tpu.memory_space<vmem>>, vector<178x128xf32>
    tpu.vector_store %arg12[%c0_18, %c0_19], %17 {strides = array<i32>} : memref<178x1152xf32, #tpu.memory_space<vmem>>, vector<178x128xf32>,
    %c1_20 = arith.constant 1 : index
    %c0_21 = arith.constant 0 : index
    %19 = vector.load %arg10[%c1_20, %c0_21] : memref<200x128xf32, #tpu.memory_space<vmem>>, vector<178x128xf32>
    %c0_22 = arith.constant 0 : index
    %c128 = arith.constant 128 : index
    %20 = vector.load %arg12[%c0_22, %c128] : memref<178x1152xf32, #tpu.memory_space<vmem>>, vector<178x128xf32>
    tpu.vector_store %arg12[%c0_22, %c128], %19 {strides = array<i32>} : memref<178x1152xf32, #tpu.memory_space<vmem>>, vector<178x128xf32>,
    %c2_23 = arith.constant 2 : index
    %c0_24 = arith.constant 0 : index
    %21 = vector.load %arg10[%c2_23, %c0_24] : memref<200x128xf32, #tpu.memory_space<vmem>>, vector<178x128xf32>
    %c0_25 = arith.constant 0 : index
    %c256 = arith.constant 256 : index
    %22 = vector.load %arg12[%c0_25, %c256] : memref<178x1152xf32, #tpu.memory_space<vmem>>, vector<178x128xf32>
    tpu.vector_store %arg12[%c0_25, %c256], %21 {strides = array<i32>} : memref<178x1152xf32, #tpu.memory_space<vmem>>, vector<178x128xf32>,
    %c10 = arith.constant 10 : index
    %c0_26 = arith.constant 0 : index
    %23 = vector.load %arg10[%c10, %c0_26] : memref<200x128xf32, #tpu.memory_space<vmem>>, vector<178x128xf32>
    %c0_27 = arith.constant 0 : index
    %c384 = arith.constant 384 : index
    %24 = vector.load %arg12[%c0_27, %c384] : memref<178x1152xf32, #tpu.memory_space<vmem>>, vector<178x128xf32>
    tpu.vector_store %arg12[%c0_27, %c384], %23 {strides = array<i32>} : memref<178x1152xf32, #tpu.memory_space<vmem>>, vector<178x128xf32>,
    %c11 = arith.constant 11 : index
    %c0_28 = arith.constant 0 : index
    %25 = vector.load %arg10[%c11, %c0_28] : memref<200x128xf32, #tpu.memory_space<vmem>>, vector<178x128xf32>
    %c0_29 = arith.constant 0 : index
    %c512 = arith.constant 512 : index
    %26 = vector.load %arg12[%c0_29, %c512] : memref<178x1152xf32, #tpu.memory_space<vmem>>, vector<178x128xf32>
    tpu.vector_store %arg12[%c0_29, %c512], %25 {strides = array<i32>} : memref<178x1152xf32, #tpu.memory_space<vmem>>, vector<178x128xf32>,
    %c12 = arith.constant 12 : index
    %c0_30 = arith.constant 0 : index
    %27 = vector.load %arg10[%c12, %c0_30] : memref<200x128xf32, #tpu.memory_space<vmem>>, vector<178x128xf32>
    %c0_31 = arith.constant 0 : index
    %c640 = arith.constant 640 : index
    %28 = vector.load %arg12[%c0_31, %c640] : memref<178x1152xf32, #tpu.memory_space<vmem>>, vector<178x128xf32>
    tpu.vector_store %arg12[%c0_31, %c640], %27 {strides = array<i32>} : memref<178x1152xf32, #tpu.memory_space<vmem>>, vector<178x128xf32>,
    %c20 = arith.constant 20 : index
    %c0_32 = arith.constant 0 : index
    %29 = vector.load %arg10[%c20, %c0_32] : memref<200x128xf32, #tpu.memory_space<vmem>>, vector<178x128xf32>
    %c0_33 = arith.constant 0 : index
    %c768 = arith.constant 768 : index
    %30 = vector.load %arg12[%c0_33, %c768] : memref<178x1152xf32, #tpu.memory_space<vmem>>, vector<178x128xf32>
    tpu.vector_store %arg12[%c0_33, %c768], %29 {strides = array<i32>} : memref<178x1152xf32, #tpu.memory_space<vmem>>, vector<178x128xf32>,
    %c21 = arith.constant 21 : index
    %c0_34 = arith.constant 0 : index
    %31 = vector.load %arg10[%c21, %c0_34] : memref<200x128xf32, #tpu.memory_space<vmem>>, vector<178x128xf32>
    %c0_35 = arith.constant 0 : index
    %c896 = arith.constant 896 : index
    %32 = vector.load %arg12[%c0_35, %c896] : memref<178x1152xf32, #tpu.memory_space<vmem>>, vector<178x128xf32>
    tpu.vector_store %arg12[%c0_35, %c896], %31 {strides = array<i32>} : memref<178x1152xf32, #tpu.memory_space<vmem>>, vector<178x128xf32>,
    %c22 = arith.constant 22 : index
    %c0_36 = arith.constant 0 : index
    %33 = vector.load %arg10[%c22, %c0_36] : memref<200x128xf32, #tpu.memory_space<vmem>>, vector<178x128xf32>
    %c0_37 = arith.constant 0 : index
    %c1024 = arith.constant 1024 : index
    %34 = vector.load %arg12[%c0_37, %c1024] : memref<178x1152xf32, #tpu.memory_space<vmem>>, vector<178x128xf32>
    tpu.vector_store %arg12[%c0_37, %c1024], %33 {strides = array<i32>} : memref<178x1152xf32, #tpu.memory_space<vmem>>, vector<178x128xf32>,
    %c0_38 = arith.constant 0 : index
    %c0_39 = arith.constant 0 : index
    %35 = vector.load %arg12[%c0_38, %c0_39] : memref<178x1152xf32, #tpu.memory_space<vmem>>, vector<178x1152xf32>
    %c0_40 = arith.constant 0 : index
    %c0_41 = arith.constant 0 : index
    %36 = vector.load %arg2[%c0_40, %c0_41] : memref<1152x128xf32, #tpu.memory_space<vmem>>, vector<1152x128xf32>
    %cst_42 = arith.constant dense<0.000000e+00> : vector<178x128xf32>
    %37 = tpu.matmul %35, %36, %cst_42 {dimension_numbers = #tpu.dot_dimension_numbers<[1], [0], [0], [1], [0, 0, 1, 1], [], []>} : vector<178x1152xf32>, vector<1152x128xf32>, vector<178x128xf32> -> vector<178x128xf32>
    %c0_43 = arith.constant 0 : index
    %c0_44 = arith.constant 0 : index
    %38 = vector.load %arg3[%c0_43, %c0_44] : memref<1x128xf32, #tpu.memory_space<vmem>>, vector<1x128xf32>
    %39 = vector.broadcast %38 : vector<1x128xf32> to vector<178x128xf32>
    %40 = arith.mulf %37, %39 : vector<178x128xf32>
    %c0_45 = arith.constant 0 : index
    %c0_46 = arith.constant 0 : index
    %41 = vector.load %arg4[%c0_45, %c0_46] : memref<1x128xf32, #tpu.memory_space<vmem>>, vector<1x128xf32>
    %42 = vector.broadcast %41 : vector<1x128xf32> to vector<178x128xf32>
    %43 = arith.addf %40, %42 : vector<178x128xf32>
    %cst_47 = arith.constant 0.000000e+00 : f32
    %44 = vector.broadcast %cst_47 : f32 to vector<178x128xf32>
    %45 = arith.maximumf %43, %44 : vector<178x128xf32>
    %46 = vector.broadcast %16 : vector<178x1xf32> to vector<178x128xf32>
    %47 = arith.mulf %45, %46 : vector<178x128xf32>
    %c11_48 = arith.constant 11 : index
    %c0_49 = arith.constant 0 : index
    %48 = vector.load %arg11[%c11_48, %c0_49] : memref<200x128xf32, #tpu.memory_space<vmem>>, vector<178x128xf32>
    tpu.vector_store %arg11[%c11_48, %c0_49], %47 {strides = array<i32>} : memref<200x128xf32, #tpu.memory_space<vmem>>, vector<178x128xf32>,
    %c0_50 = arith.constant 0 : index
    %c0_51 = arith.constant 0 : index
    %49 = vector.load %arg11[%c0_50, %c0_51] : memref<200x128xf32, #tpu.memory_space<vmem>>, vector<178x128xf32>
    %c0_52 = arith.constant 0 : index
    %c0_53 = arith.constant 0 : index
    %50 = vector.load %arg12[%c0_52, %c0_53] : memref<178x1152xf32, #tpu.memory_space<vmem>>, vector<178x128xf32>
    tpu.vector_store %arg12[%c0_52, %c0_53], %49 {strides = array<i32>} : memref<178x1152xf32, #tpu.memory_space<vmem>>, vector<178x128xf32>,
    %c1_54 = arith.constant 1 : index
    %c0_55 = arith.constant 0 : index
    %51 = vector.load %arg11[%c1_54, %c0_55] : memref<200x128xf32, #tpu.memory_space<vmem>>, vector<178x128xf32>
    %c0_56 = arith.constant 0 : index
    %c128_57 = arith.constant 128 : index
    %52 = vector.load %arg12[%c0_56, %c128_57] : memref<178x1152xf32, #tpu.memory_space<vmem>>, vector<178x128xf32>
    tpu.vector_store %arg12[%c0_56, %c128_57], %51 {strides = array<i32>} : memref<178x1152xf32, #tpu.memory_space<vmem>>, vector<178x128xf32>,
    %c2_58 = arith.constant 2 : index
    %c0_59 = arith.constant 0 : index
    %53 = vector.load %arg11[%c2_58, %c0_59] : memref<200x128xf32, #tpu.memory_space<vmem>>, vector<178x128xf32>
    %c0_60 = arith.constant 0 : index
    %c256_61 = arith.constant 256 : index
    %54 = vector.load %arg12[%c0_60, %c256_61] : memref<178x1152xf32, #tpu.memory_space<vmem>>, vector<178x128xf32>
    tpu.vector_store %arg12[%c0_60, %c256_61], %53 {strides = array<i32>} : memref<178x1152xf32, #tpu.memory_space<vmem>>, vector<178x128xf32>,
    %c10_62 = arith.constant 10 : index
    %c0_63 = arith.constant 0 : index
    %55 = vector.load %arg11[%c10_62, %c0_63] : memref<200x128xf32, #tpu.memory_space<vmem>>, vector<178x128xf32>
    %c0_64 = arith.constant 0 : index
    %c384_65 = arith.constant 384 : index
    %56 = vector.load %arg12[%c0_64, %c384_65] : memref<178x1152xf32, #tpu.memory_space<vmem>>, vector<178x128xf32>
    tpu.vector_store %arg12[%c0_64, %c384_65], %55 {strides = array<i32>} : memref<178x1152xf32, #tpu.memory_space<vmem>>, vector<178x128xf32>,
    %c11_66 = arith.constant 11 : index
    %c0_67 = arith.constant 0 : index
    %57 = vector.load %arg11[%c11_66, %c0_67] : memref<200x128xf32, #tpu.memory_space<vmem>>, vector<178x128xf32>
    %c0_68 = arith.constant 0 : index
    %c512_69 = arith.constant 512 : index
    %58 = vector.load %arg12[%c0_68, %c512_69] : memref<178x1152xf32, #tpu.memory_space<vmem>>, vector<178x128xf32>
    tpu.vector_store %arg12[%c0_68, %c512_69], %57 {strides = array<i32>} : memref<178x1152xf32, #tpu.memory_space<vmem>>, vector<178x128xf32>,
    %c12_70 = arith.constant 12 : index
    %c0_71 = arith.constant 0 : index
    %59 = vector.load %arg11[%c12_70, %c0_71] : memref<200x128xf32, #tpu.memory_space<vmem>>, vector<178x128xf32>
    %c0_72 = arith.constant 0 : index
    %c640_73 = arith.constant 640 : index
    %60 = vector.load %arg12[%c0_72, %c640_73] : memref<178x1152xf32, #tpu.memory_space<vmem>>, vector<178x128xf32>
    tpu.vector_store %arg12[%c0_72, %c640_73], %59 {strides = array<i32>} : memref<178x1152xf32, #tpu.memory_space<vmem>>, vector<178x128xf32>,
    %c20_74 = arith.constant 20 : index
    %c0_75 = arith.constant 0 : index
    %61 = vector.load %arg11[%c20_74, %c0_75] : memref<200x128xf32, #tpu.memory_space<vmem>>, vector<178x128xf32>
    %c0_76 = arith.constant 0 : index
    %c768_77 = arith.constant 768 : index
    %62 = vector.load %arg12[%c0_76, %c768_77] : memref<178x1152xf32, #tpu.memory_space<vmem>>, vector<178x128xf32>
    tpu.vector_store %arg12[%c0_76, %c768_77], %61 {strides = array<i32>} : memref<178x1152xf32, #tpu.memory_space<vmem>>, vector<178x128xf32>,
    %c21_78 = arith.constant 21 : index
    %c0_79 = arith.constant 0 : index
    %63 = vector.load %arg11[%c21_78, %c0_79] : memref<200x128xf32, #tpu.memory_space<vmem>>, vector<178x128xf32>
    %c0_80 = arith.constant 0 : index
    %c896_81 = arith.constant 896 : index
    %64 = vector.load %arg12[%c0_80, %c896_81] : memref<178x1152xf32, #tpu.memory_space<vmem>>, vector<178x128xf32>
    tpu.vector_store %arg12[%c0_80, %c896_81], %63 {strides = array<i32>} : memref<178x1152xf32, #tpu.memory_space<vmem>>, vector<178x128xf32>,
    %c22_82 = arith.constant 22 : index
    %c0_83 = arith.constant 0 : index
    %65 = vector.load %arg11[%c22_82, %c0_83] : memref<200x128xf32, #tpu.memory_space<vmem>>, vector<178x128xf32>
    %c0_84 = arith.constant 0 : index
    %c1024_85 = arith.constant 1024 : index
    %66 = vector.load %arg12[%c0_84, %c1024_85] : memref<178x1152xf32, #tpu.memory_space<vmem>>, vector<178x128xf32>
    tpu.vector_store %arg12[%c0_84, %c1024_85], %65 {strides = array<i32>} : memref<178x1152xf32, #tpu.memory_space<vmem>>, vector<178x128xf32>,
    %c0_86 = arith.constant 0 : index
    %c0_87 = arith.constant 0 : index
    %67 = vector.load %arg12[%c0_86, %c0_87] : memref<178x1152xf32, #tpu.memory_space<vmem>>, vector<178x1152xf32>
    %c0_88 = arith.constant 0 : index
    %c0_89 = arith.constant 0 : index
    %68 = vector.load %arg5[%c0_88, %c0_89] : memref<1152x128xf32, #tpu.memory_space<vmem>>, vector<1152x128xf32>
    %cst_90 = arith.constant dense<0.000000e+00> : vector<178x128xf32>
    %69 = tpu.matmul %67, %68, %cst_90 {dimension_numbers = #tpu.dot_dimension_numbers<[1], [0], [0], [1], [0, 0, 1, 1], [], []>} : vector<178x1152xf32>, vector<1152x128xf32>, vector<178x128xf32> -> vector<178x128xf32>
    %c0_91 = arith.constant 0 : index
    %c0_92 = arith.constant 0 : index
    %70 = vector.load %arg6[%c0_91, %c0_92] : memref<1x128xf32, #tpu.memory_space<vmem>>, vector<1x128xf32>
    %71 = vector.broadcast %70 : vector<1x128xf32> to vector<178x128xf32>
    %72 = arith.mulf %69, %71 : vector<178x128xf32>
    %c0_93 = arith.constant 0 : index
    %c0_94 = arith.constant 0 : index
    %73 = vector.load %arg7[%c0_93, %c0_94] : memref<1x128xf32, #tpu.memory_space<vmem>>, vector<1x128xf32>
    %74 = vector.broadcast %73 : vector<1x128xf32> to vector<178x128xf32>
    %75 = arith.addf %72, %74 : vector<178x128xf32>
    %cst_95 = arith.constant 0.000000e+00 : f32
    %76 = vector.broadcast %cst_95 : f32 to vector<178x128xf32>
    %77 = arith.maximumf %75, %76 : vector<178x128xf32>
    %78 = vector.broadcast %16 : vector<178x1xf32> to vector<178x128xf32>
    %79 = arith.mulf %77, %78 : vector<178x128xf32>
    %cst_96 = arith.constant 0.000000e+00 : f32
    %80 = vector.broadcast %cst_96 : f32 to vector<11x128xf32>
    %c0_97 = arith.constant 0 : index
    %c0_98 = arith.constant 0 : index
    %81 = vector.load %arg9[%c0_97, %c0_98] : memref<200x128xf32, #tpu.memory_space<vmem>>, vector<11x128xf32>
    tpu.vector_store %arg9[%c0_97, %c0_98], %80 {strides = array<i32>} : memref<200x128xf32, #tpu.memory_space<vmem>>, vector<11x128xf32>,
    %cst_99 = arith.constant 0.000000e+00 : f32
    %82 = vector.broadcast %cst_99 : f32 to vector<11x128xf32>
    %c189_100 = arith.constant 189 : index
    %c0_101 = arith.constant 0 : index
    %83 = vector.load %arg9[%c189_100, %c0_101] : memref<200x128xf32, #tpu.memory_space<vmem>>, vector<11x128xf32>
    tpu.vector_store %arg9[%c189_100, %c0_101], %82 {strides = array<i32>} : memref<200x128xf32, #tpu.memory_space<vmem>>, vector<11x128xf32>,
    %c11_102 = arith.constant 11 : index
    %c0_103 = arith.constant 0 : index
    %84 = vector.load %arg9[%c11_102, %c0_103] : memref<200x128xf32, #tpu.memory_space<vmem>>, vector<178x128xf32>
    tpu.vector_store %arg9[%c11_102, %c0_103], %79 {strides = array<i32>} : memref<200x128xf32, #tpu.memory_space<vmem>>, vector<178x128xf32>,
    return
  }
  func.func @transform_0(%arg0: i32) -> (i32, i32, i32) {
    %c0_i32 = arith.constant 0 : i32
    %c0_i32_0 = arith.constant 0 : i32
    %c0_i32_1 = arith.constant 0 : i32
    return %c0_i32, %arg0, %c0_i32_0 : i32, i32, i32
  }
  func.func @transform_1(%arg0: i32) -> (i32, i32) {
    %c0_i32 = arith.constant 0 : i32
    %c0_i32_0 = arith.constant 0 : i32
    %c0_i32_1 = arith.constant 0 : i32
    return %c0_i32, %c0_i32_0 : i32, i32
  }
  func.func @transform_2(%arg0: i32) -> (i32, i32) {
    %c0_i32 = arith.constant 0 : i32
    %c0_i32_0 = arith.constant 0 : i32
    %c0_i32_1 = arith.constant 0 : i32
    return %c0_i32, %c0_i32_0 : i32, i32
  }
  func.func @transform_3(%arg0: i32) -> (i32, i32) {
    %c0_i32 = arith.constant 0 : i32
    %c0_i32_0 = arith.constant 0 : i32
    %c0_i32_1 = arith.constant 0 : i32
    return %c0_i32, %c0_i32_0 : i32, i32
  }
  func.func @transform_4(%arg0: i32) -> (i32, i32) {
    %c0_i32 = arith.constant 0 : i32
    %c0_i32_0 = arith.constant 0 : i32
    %c0_i32_1 = arith.constant 0 : i32
    return %c0_i32, %c0_i32_0 : i32, i32
  }
  func.func @transform_5(%arg0: i32) -> (i32, i32) {
    %c0_i32 = arith.constant 0 : i32
    %c0_i32_0 = arith.constant 0 : i32
    %c0_i32_1 = arith.constant 0 : i32
    return %c0_i32, %c0_i32_0 : i32, i32
  }
  func.func @transform_6(%arg0: i32) -> (i32, i32) {
    %c0_i32 = arith.constant 0 : i32
    %c0_i32_0 = arith.constant 0 : i32
    %c0_i32_1 = arith.constant 0 : i32
    return %c0_i32, %c0_i32_0 : i32, i32
  }
  func.func @transform_7(%arg0: i32) -> (i32, i32) {
    %c0_i32 = arith.constant 0 : i32
    %c0_i32_0 = arith.constant 0 : i32
    %c0_i32_1 = arith.constant 0 : i32
    return %c0_i32, %c0_i32_0 : i32, i32
  }
  func.func @transform_8(%arg0: i32) -> (i32, i32) {
    %c0_i32 = arith.constant 0 : i32
    %c0_i32_0 = arith.constant 0 : i32
    return %arg0, %c0_i32 : i32, i32
  }
}

</mosaic_0001>

<bundles_post_ra>
// kernel: tpu_custom_call.1
= control target key start
LH: loop header
LB: loop body
LE: loop exit
PB: predicated region body
PF: predicated region fallthrough
CT: control target
= control target key end

     0   :  { %13 = vsyncpa [#allocation6], 0  ;;  %s5171_s0 = inlined_call_operand.hbm [shape: f32[4,200,128], index: 0, kind: input, shape index: {}]   ;;  %s5172_s1 = inlined_call_operand.hbm [shape: f32[1152,128], index: 1, kind: input, shape index: {}]   ;;  %s5173_s2 = inlined_call_operand.vmem [shape: f32[1,128], index: 2, kind: input, shape index: {}]   ;;  %s5174_s3 = inlined_call_operand.vmem [shape: f32[1,128], index: 3, kind: input, shape index: {}]   ;;  %s5175_s4 = inlined_call_operand.hbm [shape: f32[1152,128], index: 4, kind: input, shape index: {}]   ;;  %s5176_s5 = inlined_call_operand.vmem [shape: f32[1,128], index: 5, kind: input, shape index: {}]   ;;  %s5177_s6 = inlined_call_operand.vmem [shape: f32[1,128], index: 6, kind: input, shape index: {}]   ;;  %s5178_s7 = inlined_call_operand.vmem [shape: f32[178,1], index: 7, kind: input, shape index: {}]   ;;  %s5179_s8 = inlined_call_operand.hbm [shape: f32[200,128], index: 8, kind: output, shape index: {}]  }
   0x1   :  { %14 = vsyncpa [#allocation9], 0 }
   0x2   :  { %15 = vsyncpa [#allocation7], 0  ;;  %s33_s29 = sshll.u32 %s5172_s1, 4  ;;  %s3958_s30 = smov [#allocation8]   ;;  %s34_s29 = int_to_ptr.hbm [resolvable:$true] %s33_s29 }
   0x3   :  { %s35_s9 = sshll.u32 %s3958_s30, 4  ;;  %s20_s12 = sshll.u32 %s5171_s0, 4  ;;  %s36_s9 = int_to_ptr.vmem [resolvable:$true] %s35_s9  ;;  %s21_s12 = int_to_ptr.hbm [resolvable:$true] %s20_s12 }
   0x4   :  { %s3959_s13 = smov 128   ;;  %s3960_s14 = smov 8  }
   0x5   :  { %41 = dma.hbm_to_vmem [thread:$0]  %s34_s29, 18432, %s36_s9, [#allocation9], %s3959_s13, %s3959_s13, %s3960_s14  }
   0x6   :  { %s3961_s15 = smov [#allocation5]   ;;  %s50_s1 = sshll.u32 %s5175_s4, 4  ;;  %s51_s1 = int_to_ptr.hbm [resolvable:$true] %s50_s1 }
   0x7   :  { %s22_s16 = sshll.u32 %s3961_s15, 4  ;;  %s3962_s0 = smov [#allocation10]   ;;  %s23_s16 = int_to_ptr.vmem [resolvable:$true] %s22_s16 }
   0x8   :  { %28 = dma.hbm_to_vmem [thread:$0]  %s21_s12, 12800, %s23_s16, [#allocation6], %s3959_s13, %s3959_s13, %s3960_s14  }
   0x9   :  { %s52_s19 = sshll.u32 %s3962_s0, 4  ;;  %s53_s19 = int_to_ptr.vmem [resolvable:$true] %s52_s19 }
   0xa   :  { %58 = dma.hbm_to_vmem [thread:$0]  %s51_s1, 18432, %s53_s19, [#allocation9], %s3959_s13, %s3959_s13, %s3960_s14  }
   0xb   :  { %3952 = dma.done.wait [#allocation6], 12800  }
   0xc   :  { %3953 = vsyncadd [#allocation6], 4294954496 }
   0xd   :  { %3954 = dma.done.wait [#allocation9], 36864  }
   0xe   :  { %3955 = vsyncadd [#allocation9], 4294930432  ;;  %v943_v0 = vld [vmem:[#allocation8 + $0x78] sm:$0xff]  ;;  %v942_v2 = vld [vmem:[#allocation8 + $0x70] sm:$0xff]  ;;  %v3963_v4 = vmov 0.0   ;;  %s3756_s30 = sshll.u32 %s5179_s8, 4  ;;  %s3757_s30 = int_to_ptr.hbm [resolvable:$true] %s3756_s30 }
   0xf   :  { %v959_v1 = vld [vmem:[#allocation8 + $0xf8] sm:$0xff]  ;;  %1072 = vmatpush.msra.mxu0 %v943_v0  ;;  %3770 = vmatpush.msra.mxu2 %v943_v0  ;;  %v958_v3 = vld [vmem:[#allocation8 + $0xf0] sm:$0xff]  ;;  %280 = vst [vmem:[#allocation3] sm:$0xff] %v3963_v4  ;;  %v941_v5 = vld [vmem:[#allocation8 + $0x68] sm:$0xff] }
  0x10   :  { %3786 = vmatpush.msra.mxu3 %v959_v1  ;;  %1158 = vmatpush.msra.mxu1 %v959_v1  ;;  %v957_v6 = vld [vmem:[#allocation8 + $0xe8] sm:$0xff]  ;;  %3723 = vst [vmem:[#allocation11] sm:$0xff] %v3963_v4  ;;  %v940_v7 = vld [vmem:[#allocation8 + $0x60] sm:$0xff]  ;;  %v939_v9 = vld [vmem:[#allocation8 + $0x58] sm:$0xff] }
  0x11   :  { %1073 = vmatpush.msra.mxu0 %v942_v2  ;;  %3771 = vmatpush.msra.mxu2 %v942_v2  ;;  %3724 = vst [vmem:[#allocation11 + $0x8] sm:$0x7] %v3963_v4  ;;  %v956_v8 = vld [vmem:[#allocation8 + $0xe0] sm:$0xff]  ;;  %v955_v10 = vld [vmem:[#allocation8 + $0xd8] sm:$0xff]  ;;  %v938_v11 = vld [vmem:[#allocation8 + $0x50] sm:$0xff] }
  0x12   :  { %3787 = vmatpush.msra.mxu3 %v958_v3  ;;  %1159 = vmatpush.msra.mxu1 %v958_v3  ;;  %3725 = vst [vmem:[#allocation11 + $0xbd] sm:$0xff] %v3963_v4  ;;  %v954_v12 = vld [vmem:[#allocation8 + $0xd0] sm:$0xff]  ;;  %v937_v13 = vld [vmem:[#allocation8 + $0x48] sm:$0xff]  ;;  %v936_v15 = vld [vmem:[#allocation8 + $0x40] sm:$0xff] }
  0x13   :  { %1074 = vmatpush.msra.mxu0 %v941_v5  ;;  %3772 = vmatpush.msra.mxu2 %v941_v5  ;;  %3726 = vst [vmem:[#allocation11 + $0xc5] sm:$0x7] %v3963_v4  ;;  %v953_v14 = vld [vmem:[#allocation8 + $0xc8] sm:$0xff]  ;;  %v77_v16 = vld [vmem:[#allocation5] sm:$0xff]  ;;  %v154_v19 = vld [vmem:[#allocation5 + $0x190] sm:$0xff] }
  0x14   :  { %3788 = vmatpush.msra.mxu3 %v957_v6  ;;  %1160 = vmatpush.msra.mxu1 %v957_v6  ;;  %281 = vst [vmem:[#allocation3 + $0x8] sm:$0x7] %v3963_v4  ;;  %v952_v17 = vld [vmem:[#allocation8 + $0xc0] sm:$0xff]  ;;  %v103_v18 = vld [vmem:[#allocation5 + $0xc8] sm:$0xff]  ;;  %v180_v20 = vld [vmem:[#allocation5 + $0x258] sm:$0xff] }
  0x15   :  { %1075 = vmatpush.msra.mxu0 %v940_v7  ;;  %3773 = vmatpush.msra.mxu2 %v940_v7  ;;  %282 = vst [vmem:[#allocation3 + $0xbd] sm:$0xff] %v3963_v4  ;;  %v935_v21 = vld [vmem:[#allocation8 + $0x38] sm:$0xff]  ;;  %v128_v22 = vmax.f32 %v77_v16, %v103_v18  ;;  %v205_v23 = vmax.f32 %v154_v19, %v180_v20  ;;  %v89_v24 = vld [vmem:[#allocation5 + $0x60] sm:$0xff]  ;;  %v115_v25 = vld [vmem:[#allocation5 + $0x128] sm:$0xff] }
  0x16   :  { %3789 = vmatpush.msra.mxu3 %v956_v8  ;;  %1161 = vmatpush.msra.mxu1 %v956_v8  ;;  %283 = vst [vmem:[#allocation3 + $0xc5] sm:$0x7] %v3963_v4  ;;  %v166_v26 = vld [vmem:[#allocation5 + $0x1f0] sm:$0xff]  ;;  %v140_v27 = vmax.f32 %v89_v24, %v115_v25  ;;  %v192_v28 = vld [vmem:[#allocation5 + $0x2b8] sm:$0xff]  ;;  %v90_v29 = vld [vmem:[#allocation5 + $0x68] sm:$0xff] }
  0x17   :  { %1076 = vmatpush.msra.mxu0 %v939_v9  ;;  %3774 = vmatpush.msra.mxu2 %v939_v9  ;;  %v116_v30 = vld [vmem:[#allocation5 + $0x130] sm:$0xff]  ;;  %v951_v31 = vld [vmem:[#allocation8 + $0xb8] sm:$0xff]  ;;  %v4029_v32 = vmax.f32 %v128_v22, %v205_v23  ;;  %v217_v33 = vmax.f32 %v166_v26, %v192_v28  ;;  %v193_v36 = vld [vmem:[#allocation5 + $0x2c0] sm:$0xff] }
  0x18   :  { %3790 = vmatpush.msra.mxu3 %v955_v10  ;;  %1162 = vmatpush.msra.mxu1 %v955_v10  ;;  %v141_v34 = vmax.f32 %v90_v29, %v116_v30  ;;  %v167_v35 = vld [vmem:[#allocation5 + $0x1f8] sm:$0xff]  ;;  %v78_v38 = vld [vmem:[#allocation5 + $0x8] sm:$0xff]  ;;  %v104_v39 = vld [vmem:[#allocation5 + $0xd0] sm:$0xff] }
  0x19   :  { %1077 = vmatpush.msra.mxu0 %v938_v11  ;;  %3775 = vmatpush.msra.mxu2 %v938_v11  ;;  %v218_v37 = vmax.f32 %v167_v35, %v193_v36  ;;  %v155_v40 = vld [vmem:[#allocation5 + $0x198] sm:$0xff]  ;;  %v934_v41 = vld [vmem:[#allocation8 + $0x30] sm:$0xff]  ;;  %255 = vst [vmem:[#allocation2] sm:$0xff] %v4029_v32  ;;  %v4032_v42 = vmax.f32 %v140_v27, %v217_v33  ;;  %v181_v44 = vld [vmem:[#allocation5 + $0x260] sm:$0xff] }
  0x1a   :  { %3791 = vmatpush.msra.mxu3 %v954_v12  ;;  %1163 = vmatpush.msra.mxu1 %v954_v12  ;;  %v129_v43 = vmax.f32 %v78_v38, %v104_v39  ;;  %v950_v46 = vld [vmem:[#allocation8 + $0xb0] sm:$0xff]  ;;  %v933_v47 = vld [vmem:[#allocation8 + $0x28] sm:$0xff]  ;;  %v206_v49 = vmax.f32 %v155_v40, %v181_v44  ;;  %v117_v51 = vld [vmem:[#allocation5 + $0x138] sm:$0xff] }
  0x1b   :  { %1078 = vmatpush.msra.mxu0 %v937_v13  ;;  %3776 = vmatpush.msra.mxu2 %v937_v13  ;;  %v2130_v45 = vld [vmem:[#allocation3 + $0x1] sm:$0xff]  ;;  %v4034_v48 = vmax.f32 %v141_v34, %v218_v37  ;;  %v91_v50 = vld [vmem:[#allocation5 + $0x70] sm:$0xff]  ;;  %267 = vst [vmem:[#allocation2 + $0x60] sm:$0xff] %v4032_v42  ;;  %v105_v60 = vld [vmem:[#allocation5 + $0xd8] sm:$0xff] }
  0x1c   :  { %3792 = vmatpush.msra.mxu3 %v953_v14  ;;  %1164 = vmatpush.msra.mxu1 %v953_v14  ;;  %2153 = vst [vmem:[#allocation4 + $0x148] sm:$0xff] %v2130_v45  ;;  %v168_v52 = vld [vmem:[#allocation5 + $0x200] sm:$0xff]  ;;  %v194_v53 = vld [vmem:[#allocation5 + $0x2c8] sm:$0xff]  ;;  %v4038_v56 = vmax.f32 %v129_v43, %v206_v49  ;;  %v142_v57 = vmax.f32 %v91_v50, %v117_v51  ;;  %v79_v59 = vld [vmem:[#allocation5 + $0x10] sm:$0xff] }
  0x1d   :  { %1079 = vmatpush.msra.mxu0 %v936_v15  ;;  %3777 = vmatpush.msra.mxu2 %v936_v15  ;;  %v949_v54 = vld [vmem:[#allocation8 + $0xa8] sm:$0xff]  ;;  %v932_v55 = vld [vmem:[#allocation8 + $0x20] sm:$0xff]  ;;  %268 = vst [vmem:[#allocation2 + $0x68] sm:$0xff] %v4034_v48  ;;  %v219_v58 = vmax.f32 %v168_v52, %v194_v53  ;;  %v931_v0 = vld [vmem:[#allocation8 + $0x18] sm:$0xff]  ;;  %v130_v3 = vmax.f32 %v79_v59, %v105_v60 }
  0x1e   :  { %3793 = vmatpush.msra.mxu3 %v952_v17  ;;  %1165 = vmatpush.msra.mxu1 %v952_v17  ;;  %v156_v61 = vld [vmem:[#allocation5 + $0x1a0] sm:$0xff]  ;;  %v182_v62 = vld [vmem:[#allocation5 + $0x268] sm:$0xff]  ;;  %v947_v1 = vld [vmem:[#allocation8 + $0x98] sm:$0xff]  ;;  %256 = vst [vmem:[#allocation2 + $0x8] sm:$0xff] %v4038_v56 }
  0x1f   :  { %1080 = vmatpush.msra.mxu0 %v935_v21  ;;  %3778 = vmatpush.msra.mxu2 %v935_v21  ;;  %v948_v63 = vld [vmem:[#allocation8 + $0xa0] sm:$0xff]  ;;  %v4041_v2 = vmax.f32 %v142_v57, %v219_v58  ;;  %v207_v4 = vmax.f32 %v156_v61, %v182_v62  ;;  %v92_v5 = vld [vmem:[#allocation5 + $0x78] sm:$0xff]  ;;  %v169_v7 = vld [vmem:[#allocation5 + $0x208] sm:$0xff] }
  0x20   :  { %3794 = vmatpush.msra.mxu3 %v951_v31  ;;  %1166 = vmatpush.msra.mxu1 %v951_v31  ;;  %v118_v6 = vld [vmem:[#allocation5 + $0x140] sm:$0xff]  ;;  %v930_v8 = vld [vmem:[#allocation8 + $0x10] sm:$0xff]  ;;  %v80_v12 = vld [vmem:[#allocation5 + $0x18] sm:$0xff] }
  0x21   :  { %1081 = vmatpush.msra.mxu0 %v934_v41  ;;  %3779 = vmatpush.msra.mxu2 %v934_v41  ;;  %269 = vst [vmem:[#allocation2 + $0x70] sm:$0xff] %v4041_v2  ;;  %v4044_v9 = vmax.f32 %v130_v3, %v207_v4  ;;  %v143_v10 = vmax.f32 %v92_v5, %v118_v6  ;;  %v195_v11 = vld [vmem:[#allocation5 + $0x2d0] sm:$0xff]  ;;  %v106_v14 = vld [vmem:[#allocation5 + $0xe0] sm:$0xff]  ;;  %v157_v15 = vld [vmem:[#allocation5 + $0x1a8] sm:$0xff] }
  0x22   :  { %3795 = vmatpush.msra.mxu3 %v950_v46  ;;  %1167 = vmatpush.msra.mxu1 %v950_v46  ;;  %v220_v13 = vmax.f32 %v169_v7, %v195_v11  ;;  %v183_v16 = vld [vmem:[#allocation5 + $0x270] sm:$0xff]  ;;  %v131_v18 = vmax.f32 %v80_v12, %v106_v14  ;;  %v929_v20 = vld [vmem:[#allocation8 + $0x8] sm:$0xff]  ;;  %v93_v22 = vld [vmem:[#allocation5 + $0x80] sm:$0xff] }
  0x23   :  { %1082 = vmatpush.msra.mxu0 %v933_v47  ;;  %3780 = vmatpush.msra.mxu2 %v933_v47  ;;  %v946_v17 = vld [vmem:[#allocation8 + $0x90] sm:$0xff]  ;;  %257 = vst [vmem:[#allocation2 + $0x10] sm:$0xff] %v4044_v9  ;;  %v208_v19 = vmax.f32 %v157_v15, %v183_v16  ;;  %v119_v23 = vld [vmem:[#allocation5 + $0x148] sm:$0xff]  ;;  %v196_v28 = vld [vmem:[#allocation5 + $0x2d8] sm:$0xff] }
  0x24   :  { %3796 = vmatpush.msra.mxu3 %v949_v54  ;;  %1168 = vmatpush.msra.mxu1 %v949_v54  ;;  %v4047_v21 = vmax.f32 %v143_v10, %v220_v13  ;;  %v945_v24 = vld [vmem:[#allocation8 + $0x88] sm:$0xff]  ;;  %v144_v26 = vmax.f32 %v93_v22, %v119_v23  ;;  %v170_v27 = vld [vmem:[#allocation5 + $0x210] sm:$0xff]  ;;  %v928_v29 = vld [vmem:[#allocation8] sm:$0xff] }
  0x25   :  { %1083 = vmatpush.msra.mxu0 %v932_v55  ;;  %3781 = vmatpush.msra.mxu2 %v932_v55  ;;  %v4049_v25 = vmax.f32 %v131_v18, %v208_v19  ;;  %v221_v30 = vmax.f32 %v170_v27, %v196_v28  ;;  %v81_v31 = vld [vmem:[#allocation5 + $0x20] sm:$0xff]  ;;  %v107_v33 = vld [vmem:[#allocation5 + $0xe8] sm:$0xff]  ;;  %v158_v36 = vld [vmem:[#allocation5 + $0x1b0] sm:$0xff] }
  0x26   :  { %3797 = vmatpush.msra.mxu3 %v948_v63  ;;  %1169 = vmatpush.msra.mxu1 %v948_v63  ;;  %270 = vst [vmem:[#allocation2 + $0x78] sm:$0xff] %v4047_v21  ;;  %v944_v34 = vld [vmem:[#allocation8 + $0x80] sm:$0xff]  ;;  %v132_v35 = vmax.f32 %v81_v31, %v107_v33  ;;  %v184_v37 = vld [vmem:[#allocation5 + $0x278] sm:$0xff]  ;;  %v94_v45 = vld [vmem:[#allocation5 + $0x88] sm:$0xff] }
  0x27   :  { %1084 = vmatpush.msra.mxu0 %v931_v0  ;;  %3782 = vmatpush.msra.mxu2 %v931_v0  ;;  %258 = vst [vmem:[#allocation2 + $0x18] sm:$0xff] %v4049_v25  ;;  %v365_v38 = vld [vmem:[#allocation2 + $0x61] sm:$0xff]  ;;  %v4053_v41 = vmax.f32 %v144_v26, %v221_v30  ;;  %v209_v43 = vmax.f32 %v158_v36, %v184_v37  ;;  %v120_v46 = vld [vmem:[#allocation5 + $0x150] sm:$0xff]  ;;  %v82_v53 = vld [vmem:[#allocation5 + $0x28] sm:$0xff] }
  0x28   :  { %3798 = vmatpush.msra.mxu3 %v947_v1  ;;  %1170 = vmatpush.msra.mxu1 %v947_v1  ;;  %v975_v39 = vld [vmem:[#allocation8 + $0x178] sm:$0xff]  ;;  %v145_v51 = vmax.f32 %v94_v45, %v120_v46  ;;  %v197_v52 = vld [vmem:[#allocation5 + $0x2e0] sm:$0xff]  ;;  %v974_v54 = vld [vmem:[#allocation8 + $0x170] sm:$0xff] }
  0x29   :  { %1085 = vmatpush.msra.mxu0 %v930_v8  ;;  %3783 = vmatpush.msra.mxu2 %v930_v8  ;;  %v991_v40 = vld [vmem:[#allocation8 + $0x1f8] sm:$0xff]  ;;  %271 = vst [vmem:[#allocation2 + $0x80] sm:$0xff] %v4053_v41  ;;  %v4057_v50 = vmax.f32 %v132_v35, %v209_v43  ;;  %v990_v55 = vld [vmem:[#allocation8 + $0x1f0] sm:$0xff]  ;;  %v185_v60 = vld [vmem:[#allocation5 + $0x280] sm:$0xff] }
  0x2a   :  { %3799 = vmatpush.msra.mxu3 %v946_v17  ;;  %1171 = vmatpush.msra.mxu1 %v946_v17  ;;  %v1007_v44 = vld [vmem:[#allocation8 + $0x278] sm:$0xff]  ;;  %v108_v58 = vld [vmem:[#allocation5 + $0xf0] sm:$0xff]  ;;  %v973_v63 = vld [vmem:[#allocation8 + $0x168] sm:$0xff] }
  0x2b   :  { %1086 = vmatpush.msra.mxu0 %v929_v20  ;;  %3784 = vmatpush.msra.mxu2 %v929_v20  ;;  %v171_v47 = vld [vmem:[#allocation5 + $0x218] sm:$0xff]  ;;  %259 = vst [vmem:[#allocation2 + $0x20] sm:$0xff] %v4057_v50  ;;  %v95_v61 = vld [vmem:[#allocation5 + $0x90] sm:$0xff]  ;;  %v989_v0 = vld [vmem:[#allocation8 + $0x1e8] sm:$0xff] }
  0x2c   :  { %3800 = vmatpush.msra.mxu3 %v945_v24  ;;  %1172 = vmatpush.msra.mxu1 %v945_v24  ;;  %v353_v49 = vld [vmem:[#allocation2 + $0x1] sm:$0xff]  ;;  %v222_v57 = vmax.f32 %v171_v47, %v197_v52  ;;  %v1006_v62 = vld [vmem:[#allocation8 + $0x270] sm:$0xff]  ;;  %v366_v3 = vld [vmem:[#allocation2 + $0x69] sm:$0xff] }
  0x2d   :  { %1087 = vmatpush.msra.mxu0 %v928_v29  ;;  %3785 = vmatpush.msra.mxu2 %v928_v29  ;;  %v159_v59 = vld [vmem:[#allocation5 + $0x1b8] sm:$0xff]  ;;  %v972_v4 = vld [vmem:[#allocation8 + $0x160] sm:$0xff]  ;;  %v1005_v6 = vld [vmem:[#allocation8 + $0x268] sm:$0xff] }
  0x2e   :  { %3801 = vmatpush.msra.mxu3 %v944_v34  ;;  %1088 = vmatmul.f32.vlgmr.msra.gmra.mxu0 %v4029_v32  ;;  %v133_v32 = vmax.f32 %v82_v53, %v108_v58  ;;  %v4061_v1 = vmax.f32 %v145_v51, %v222_v57  ;;  %v121_v5 = vld [vmem:[#allocation5 + $0x158] sm:$0xff]  ;;  %v988_v7 = vld [vmem:[#allocation8 + $0x1e0] sm:$0xff]  ;;  %v198_v12 = vld [vmem:[#allocation5 + $0x2e8] sm:$0xff] }
  0x2f   :  { %1124 = vmatmul.f32.vlgmr.msra.gmra.mxu2 %v4032_v42  ;;  %1210 = vmatmul.f32.vlgmr.msra.gmra.mxu3 %v365_v38  ;;  %v210_v42 = vmax.f32 %v159_v59, %v185_v60  ;;  %v146_v10 = vmax.f32 %v95_v61, %v121_v5  ;;  %v172_v11 = vld [vmem:[#allocation5 + $0x220] sm:$0xff]  ;;  %v83_v13 = vld [vmem:[#allocation5 + $0x30] sm:$0xff]  ;;  %v971_v14 = vld [vmem:[#allocation8 + $0x158] sm:$0xff] }
  0x30   :  { %1244 = vmatpush.msrb.mxu2 %v975_v39  ;;  %1173 = vmatpush.msra.mxu1 %v944_v34  ;;  %272 = vst [vmem:[#allocation2 + $0x88] sm:$0xff] %v4061_v1  ;;  %v223_v15 = vmax.f32 %v172_v11, %v198_v12  ;;  %v109_v16 = vld [vmem:[#allocation5 + $0xf8] sm:$0xff]  ;;  %v160_v17 = vld [vmem:[#allocation5 + $0x1c0] sm:$0xff]  ;;  %v186_v18 = vld [vmem:[#allocation5 + $0x288] sm:$0xff] }
  0x31   :  { %1174 = vmatmul.f32.vlgmr.msra.gmra.mxu1 %v353_v49  ;;  %1330 = vmatpush.msrb.mxu3 %v991_v40  ;;  %v4064_v8 = vmax.f32 %v133_v32, %v210_v42  ;;  %v354_v19 = vld [vmem:[#allocation2 + $0x9] sm:$0xff]  ;;  %v134_v22 = vmax.f32 %v83_v13, %v109_v16  ;;  %v211_v23 = vmax.f32 %v160_v17, %v186_v18  ;;  %v96_v24 = vld [vmem:[#allocation5 + $0x98] sm:$0xff]  ;;  %v199_v30 = vld [vmem:[#allocation5 + $0x2f0] sm:$0xff] }
  0x32   :  { %1416 = vmatpush.msrb.mxu0 %v1007_v44  ;;  %1245 = vmatpush.msrb.mxu2 %v974_v54  ;;  %v1004_v20 = vld [vmem:[#allocation8 + $0x260] sm:$0xff]  ;;  %v4068_v27 = vmax.f32 %v146_v10, %v223_v15  ;;  %v173_v29 = vld [vmem:[#allocation5 + $0x228] sm:$0xff]  ;;  %v84_v31 = vld [vmem:[#allocation5 + $0x38] sm:$0xff] }
  0x33   :  { %1331 = vmatpush.msrb.mxu3 %v990_v55  ;;  %260 = vst [vmem:[#allocation2 + $0x28] sm:$0xff] %v4064_v8  ;;  %v122_v26 = vld [vmem:[#allocation5 + $0x160] sm:$0xff]  ;;  %v987_v33 = vld [vmem:[#allocation8 + $0x1d8] sm:$0xff]  ;;  %v970_v34 = vld [vmem:[#allocation8 + $0x150] sm:$0xff]  ;;  %v4071_v35 = vmax.f32 %v134_v22, %v211_v23  ;;  %v224_v36 = vmax.f32 %v173_v29, %v199_v30 }
  0x34   :  { %1417 = vmatpush.msrb.mxu0 %v1006_v62  ;;  %1246 = vmatpush.msrb.mxu2 %v973_v63  ;;  %v147_v28 = vmax.f32 %v96_v24, %v122_v26  ;;  %v110_v37 = vld [vmem:[#allocation5 + $0x100] sm:$0xff]  ;;  %273 = vst [vmem:[#allocation2 + $0x90] sm:$0xff] %v4068_v27  ;;  %v161_v38 = vld [vmem:[#allocation5 + $0x1c8] sm:$0xff]  ;;  %v187_v39 = vld [vmem:[#allocation5 + $0x290] sm:$0xff] }
  0x35   :  { %1332 = vmatpush.msrb.mxu3 %v989_v0  ;;  %v1003_v40 = vld [vmem:[#allocation8 + $0x258] sm:$0xff]  ;;  %v986_v43 = vld [vmem:[#allocation8 + $0x1d0] sm:$0xff]  ;;  %v969_v44 = vld [vmem:[#allocation8 + $0x148] sm:$0xff]  ;;  %261 = vst [vmem:[#allocation2 + $0x30] sm:$0xff] %v4071_v35  ;;  %v212_v45 = vmax.f32 %v161_v38, %v187_v39 }
  0x36   :  { %1091 = vmatmul.f32.gmra.mxu0 %v4038_v56  ;;  %1247 = vmatpush.msrb.mxu2 %v972_v4  ;;  %v135_v56 = vmax.f32 %v84_v31, %v110_v37  ;;  %v367_v46 = vld [vmem:[#allocation2 + $0x71] sm:$0xff]  ;;  %v97_v49 = vld [vmem:[#allocation5 + $0xa0] sm:$0xff]  ;;  %v200_v57 = vld [vmem:[#allocation5 + $0x2f8] sm:$0xff] }
  0x37   :  { %1127 = vmatmul.f32.gmra.mxu2 %v4034_v48  ;;  %1213 = vmatmul.f32.gmra.mxu3 %v366_v3  ;;  %v4075_v48 = vmax.f32 %v147_v28, %v224_v36  ;;  %v985_v47 = vld [vmem:[#allocation8 + $0x1c8] sm:$0xff]  ;;  %v1002_v52 = vld [vmem:[#allocation8 + $0x250] sm:$0xff]  ;;  %v968_v58 = vld [vmem:[#allocation8 + $0x140] sm:$0xff] }
  0x38   :  { %1418 = vmatpush.msrb.mxu0 %v1005_v6  ;;  %1333 = vmatpush.msrb.mxu3 %v988_v7  ;;  %v123_v51 = vld [vmem:[#allocation5 + $0x168] sm:$0xff]  ;;  %v4078_v53 = vmax.f32 %v135_v56, %v212_v45  ;;  %v174_v55 = vld [vmem:[#allocation5 + $0x230] sm:$0xff]  ;;  %v85_v59 = vld [vmem:[#allocation5 + $0x40] sm:$0xff] }
  0x39   :  { %1177 = vmatmul.f32.gmra.mxu1 %v354_v19  ;;  %1248 = vmatpush.msrb.mxu2 %v971_v14  ;;  %274 = vst [vmem:[#allocation2 + $0x98] sm:$0xff] %v4075_v48  ;;  %v148_v54 = vmax.f32 %v97_v49, %v123_v51  ;;  %v225_v32 = vmax.f32 %v174_v55, %v200_v57  ;;  %v111_v60 = vld [vmem:[#allocation5 + $0x108] sm:$0xff]  ;;  %v162_v62 = vld [vmem:[#allocation5 + $0x1d0] sm:$0xff]  ;;  %v188_v63 = vld [vmem:[#allocation5 + $0x298] sm:$0xff] }
  0x3a   :  { %1419 = vmatpush.msrb.mxu0 %v1004_v20  ;;  %1334 = vmatpush.msrb.mxu3 %v987_v33  ;;  %262 = vst [vmem:[#allocation2 + $0x38] sm:$0xff] %v4078_v53  ;;  %v136_v61 = vmax.f32 %v85_v59, %v111_v60  ;;  %v355_v0 = vld [vmem:[#allocation2 + $0x11] sm:$0xff]  ;;  %v984_v42 = vld [vmem:[#allocation8 + $0x1c0] sm:$0xff]  ;;  %v213_v4 = vmax.f32 %v162_v62, %v188_v63  ;;  %v967_v6 = vld [vmem:[#allocation8 + $0x138] sm:$0xff] }
  0x3b   :  { %1249 = vmatpush.msrb.mxu2 %v970_v34  ;;  %v4082_v3 = vmax.f32 %v148_v54, %v225_v32  ;;  %v1001_v5 = vld [vmem:[#allocation8 + $0x248] sm:$0xff]  ;;  %v983_v7 = vld [vmem:[#allocation8 + $0x1b8] sm:$0xff]  ;;  %v966_v11 = vld [vmem:[#allocation8 + $0x130] sm:$0xff] }
  0x3c   :  { %1420 = vmatpush.msrb.mxu0 %v1003_v40  ;;  %1335 = vmatpush.msrb.mxu3 %v986_v43  ;;  %v4086_v10 = vmax.f32 %v136_v61, %v213_v4  ;;  %v982_v12 = vld [vmem:[#allocation8 + $0x1b0] sm:$0xff]  ;;  %v965_v13 = vld [vmem:[#allocation8 + $0x128] sm:$0xff]  ;;  %v175_v15 = vld [vmem:[#allocation5 + $0x238] sm:$0xff] }
  0x3d   :  { %1250 = vmatpush.msrb.mxu2 %v969_v44  ;;  %275 = vst [vmem:[#allocation2 + $0xa0] sm:$0xff] %v4082_v3  ;;  %v124_v14 = vld [vmem:[#allocation5 + $0x170] sm:$0xff]  ;;  %v201_v16 = vld [vmem:[#allocation5 + $0x300] sm:$0xff]  ;;  %v86_v20 = vld [vmem:[#allocation5 + $0x48] sm:$0xff] }
  0x3e   :  { %1094 = vmatmul.f32.gmra.mxu0 %v4044_v9  ;;  %1336 = vmatpush.msrb.mxu3 %v985_v47  ;;  %v1000_v9 = vld [vmem:[#allocation8 + $0x240] sm:$0xff]  ;;  %263 = vst [vmem:[#allocation2 + $0x40] sm:$0xff] %v4086_v10  ;;  %v368_v17 = vld [vmem:[#allocation2 + $0x79] sm:$0xff]  ;;  %v226_v19 = vmax.f32 %v175_v15, %v201_v16  ;;  %v981_v34 = vld [vmem:[#allocation8 + $0x1a8] sm:$0xff] }
  0x3f   :  { %1130 = vmatmul.f32.gmra.mxu2 %v4041_v2  ;;  %1216 = vmatmul.f32.gmra.mxu3 %v367_v46  ;;  %v98_v2 = vld [vmem:[#allocation5 + $0xa8] sm:$0xff]  ;;  %v112_v22 = vld [vmem:[#allocation5 + $0x110] sm:$0xff]  ;;  %v999_v23 = vld [vmem:[#allocation8 + $0x238] sm:$0xff] }
  0x40   :  { %1421 = vmatpush.msrb.mxu0 %v1002_v52  ;;  %1251 = vmatpush.msrb.mxu2 %v968_v58  ;;  %v149_v18 = vmax.f32 %v98_v2, %v124_v14  ;;  %v137_v24 = vmax.f32 %v86_v20, %v112_v22  ;;  %v163_v26 = vld [vmem:[#allocation5 + $0x1d8] sm:$0xff]  ;;  %v189_v28 = vld [vmem:[#allocation5 + $0x2a0] sm:$0xff]  ;;  %v998_v33 = vld [vmem:[#allocation8 + $0x230] sm:$0xff] }
  0x41   :  { %1180 = vmatmul.f32.gmra.mxu1 %v355_v0  ;;  %1337 = vmatpush.msrb.mxu3 %v984_v42  ;;  %v356_v29 = vld [vmem:[#allocation2 + $0x19] sm:$0xff]  ;;  %v214_v31 = vmax.f32 %v163_v26, %v189_v28  ;;  %v964_v37 = vld [vmem:[#allocation8 + $0x120] sm:$0xff]  ;;  %v997_v56 = vld [vmem:[#allocation8 + $0x228] sm:$0xff] }
  0x42   :  { %1422 = vmatpush.msrb.mxu0 %v1001_v5  ;;  %1252 = vmatpush.msrb.mxu2 %v967_v6  ;;  %v4090_v30 = vmax.f32 %v149_v18, %v226_v19  ;;  %v99_v38 = vld [vmem:[#allocation5 + $0xb0] sm:$0xff]  ;;  %v125_v39 = vld [vmem:[#allocation5 + $0x178] sm:$0xff]  ;;  %v176_v43 = vld [vmem:[#allocation5 + $0x240] sm:$0xff] }
  0x43   :  { %1338 = vmatpush.msrb.mxu3 %v983_v7  ;;  %v4094_v36 = vmax.f32 %v137_v24, %v214_v31  ;;  %v150_v40 = vmax.f32 %v99_v38, %v125_v39  ;;  %v202_v44 = vld [vmem:[#allocation5 + $0x308] sm:$0xff]  ;;  %v87_v46 = vld [vmem:[#allocation5 + $0x50] sm:$0xff]  ;;  %v113_v47 = vld [vmem:[#allocation5 + $0x118] sm:$0xff] }
  0x44   :  { %1423 = vmatpush.msrb.mxu0 %v1000_v9  ;;  %1253 = vmatpush.msrb.mxu2 %v966_v11  ;;  %276 = vst [vmem:[#allocation2 + $0xa8] sm:$0xff] %v4090_v30  ;;  %v227_v45 = vmax.f32 %v176_v43, %v202_v44  ;;  %v164_v49 = vld [vmem:[#allocation5 + $0x1e0] sm:$0xff]  ;;  %v138_v51 = vmax.f32 %v87_v46, %v113_v47  ;;  %v190_v52 = vld [vmem:[#allocation5 + $0x2a8] sm:$0xff]  ;;  %v963_v32 = vld [vmem:[#allocation8 + $0x118] sm:$0xff] }
  0x45   :  { %1339 = vmatpush.msrb.mxu3 %v982_v12  ;;  %264 = vst [vmem:[#allocation2 + $0x48] sm:$0xff] %v4094_v36  ;;  %v357_v54 = vld [vmem:[#allocation2 + $0x21] sm:$0xff]  ;;  %v215_v57 = vmax.f32 %v164_v49, %v190_v52  ;;  %v1022_v62 = vld [vmem:[#allocation8 + $0x2f0] sm:$0xff]  ;;  %v358_v5 = vld [vmem:[#allocation2 + $0x29] sm:$0xff] }
  0x46   :  { %1097 = vmatmul.f32.gmra.mxu0 %v4049_v25  ;;  %1254 = vmatpush.msrb.mxu2 %v965_v13  ;;  %v980_v25 = vld [vmem:[#allocation8 + $0x1a0] sm:$0xff]  ;;  %v252_v55 = vmax.f32 %v150_v40, %v227_v45  ;;  %v979_v59 = vld [vmem:[#allocation8 + $0x198] sm:$0xff]  ;;  %v191_v4 = vld [vmem:[#allocation5 + $0x2b0] sm:$0xff] }
  0x47   :  { %1133 = vmatmul.f32.gmra.mxu2 %v4047_v21  ;;  %1219 = vmatmul.f32.gmra.mxu3 %v368_v17  ;;  %v369_v21 = vld [vmem:[#allocation2 + $0x81] sm:$0xff]  ;;  %v4099_v58 = vmax.f32 %v138_v51, %v215_v57  ;;  %v962_v7 = vld [vmem:[#allocation8 + $0x110] sm:$0xff]  ;;  %v1021_v9 = vld [vmem:[#allocation8 + $0x2e8] sm:$0xff] }
  0x48   :  { %1424 = vmatpush.msrb.mxu0 %v999_v23  ;;  %1340 = vmatpush.msrb.mxu3 %v981_v34  ;;  %277 = vst [vmem:[#allocation2 + $0xb0] sm:$0xff] %v252_v55  ;;  %v996_v60 = vld [vmem:[#allocation8 + $0x220] sm:$0xff]  ;;  %v1023_v61 = vld [vmem:[#allocation8 + $0x2f8] sm:$0xff]  ;;  %v978_v2 = vld [vmem:[#allocation8 + $0x190] sm:$0xff] }
  0x49   :  { %1183 = vmatmul.f32.gmra.mxu1 %v356_v29  ;;  %1255 = vmatpush.msrb.mxu2 %v964_v37  ;;  %265 = vst [vmem:[#allocation2 + $0x50] sm:$0xff] %v4099_v58  ;;  %v88_v63 = vld [vmem:[#allocation5 + $0x58] sm:$0xff]  ;;  %v114_v0 = vld [vmem:[#allocation5 + $0x120] sm:$0xff]  ;;  %v961_v15 = vld [vmem:[#allocation8 + $0x108] sm:$0xff] }
  0x4a   :  { %1425 = vmatpush.msrb.mxu0 %v998_v33  ;;  %1341 = vmatpush.msrb.mxu3 %v980_v25  ;;  %v139_v42 = vmax.f32 %v88_v63, %v114_v0  ;;  %v995_v14 = vld [vmem:[#allocation8 + $0x218] sm:$0xff]  ;;  %v371_v17 = vld [vmem:[#allocation2 + $0x91] sm:$0xff]  ;;  %v960_v23 = vld [vmem:[#allocation8 + $0x100] sm:$0xff] }
  0x4b   :  { %1256 = vmatpush.msrb.mxu2 %v963_v32  ;;  %1502 = vmatpush.msrb.mxu1 %v1023_v61  ;;  %v1019_v16 = vld [vmem:[#allocation8 + $0x2d8] sm:$0xff]  ;;  %v1018_v18 = vld [vmem:[#allocation8 + $0x2d0] sm:$0xff]  ;;  %v1017_v22 = vld [vmem:[#allocation8 + $0x2c8] sm:$0xff] }
  0x4c   :  { %1426 = vmatpush.msrb.mxu0 %v997_v56  ;;  %1342 = vmatpush.msrb.mxu3 %v979_v59  ;;  %v359_v19 = vld [vmem:[#allocation2 + $0x31] sm:$0xff]  ;;  %v1016_v24 = vld [vmem:[#allocation8 + $0x2c0] sm:$0xff]  ;;  %v1015_v28 = vld [vmem:[#allocation8 + $0x2b8] sm:$0xff] }
  0x4d   :  { %1503 = vmatpush.msrb.mxu1 %v1022_v62  ;;  %1257 = vmatpush.msrb.mxu2 %v962_v7  ;;  %v994_v20 = vld [vmem:[#allocation8 + $0x210] sm:$0xff]  ;;  %v976_v26 = vld [vmem:[#allocation8 + $0x180] sm:$0xff]  ;;  %v993_v29 = vld [vmem:[#allocation8 + $0x208] sm:$0xff] }
  0x4e   :  { %1100 = vmatmul.f32.gmra.mxu0 %v4057_v50  ;;  %v370_v50 = vld [vmem:[#allocation2 + $0x89] sm:$0xff]  ;;  %1343 = vmatpush.msrb.mxu3 %v978_v2  ;;  %v372_v31 = vld [vmem:[#allocation2 + $0x99] sm:$0xff] }
  0x4f   :  { %1136 = vmatmul.f32.gmra.mxu2 %v4053_v41  ;;  %1222 = vmatmul.f32.gmra.mxu3 %v369_v21  ;;  %v165_v41 = vld [vmem:[#allocation5 + $0x1e8] sm:$0xff]  ;;  %v1039_v34 = vld [vmem:[#allocation8 + $0x378] sm:$0xff]  ;;  %v1012_v25 = vld [vmem:[#allocation8 + $0x2a0] sm:$0xff] }
  0x50   :  { %1427 = vmatpush.msrb.mxu0 %v996_v60  ;;  %v216_v6 = vmax.f32 %v165_v41, %v191_v4  ;;  %1504 = vmatpush.msrb.mxu1 %v1021_v9  ;;  %v329_v11 = vld [vmem:[#allocation2 + $0xb0] sm:$0x3]  ;;  %v1055_v56 = vld [vmem:[#allocation8 + $0x3f8] sm:$0xff]  ;;  %v992_v38 = vld [vmem:[#allocation8 + $0x200] sm:$0xff] }
  0x51   :  { %1186 = vmatmul.f32.gmra.mxu1 %v357_v54  ;;  %v375_v12 = vld [vmem:[#allocation2 + $0xb1] sm:$0x3]  ;;  %352 = vst [vmem:[#allocation4 + $0x240] sm:$0x3] %v329_v11  ;;  %1258 = vmatpush.msrb.mxu2 %v961_v15  ;;  %v1011_v39 = vld [vmem:[#allocation8 + $0x298] sm:$0xff]  ;;  %v1010_v21 = vld [vmem:[#allocation8 + $0x290] sm:$0xff] }
  0x52   :  { %v4104_v13 = vmax.f32 %v139_v42, %v216_v6  ;;  %1428 = vmatpush.msrb.mxu0 %v995_v14  ;;  %398 = vst [vmem:[#allocation4 + $0xd0] sm:$0x3] %v375_v12  ;;  %v2176_v33 = vld [vmem:[#allocation3 + $0x2] sm:$0xff]  ;;  %v1071_v43 = vld [vmem:[#allocation8 + $0x478] sm:$0xff]  ;;  %v1038_v45 = vld [vmem:[#allocation8 + $0x370] sm:$0xff] }
  0x53   :  { %1259 = vmatpush.msrb.mxu2 %v960_v23  ;;  %v1013_v37 = vld [vmem:[#allocation8 + $0x2a8] sm:$0xff]  ;;  %2199 = vst [vmem:[#allocation4 + $0x598] sm:$0xff] %v2176_v33  ;;  %v1008_v44 = vld [vmem:[#allocation8 + $0x280] sm:$0xff]  ;;  %v1054_v46 = vld [vmem:[#allocation8 + $0x3f0] sm:$0xff] }
  0x54   :  { %266 = vst [vmem:[#allocation2 + $0x58] sm:$0xff] %v4104_v13  ;;  %1429 = vmatpush.msrb.mxu0 %v994_v20  ;;  %v1009_v40 = vld [vmem:[#allocation8 + $0x288] sm:$0xff]  ;;  %v1036_v59 = vld [vmem:[#allocation8 + $0x360] sm:$0xff]  ;;  %v1035_v0 = vld [vmem:[#allocation8 + $0x358] sm:$0xff] }
  0x55   :  { %1588 = vmatpush.msra.mxu2 %v1039_v34  ;;  %v374_v47 = vld [vmem:[#allocation2 + $0xa9] sm:$0xff]  ;;  %v446_v61 = vld [vmem:[#allocation2 + $0x12] sm:$0xff]  ;;  %v447_v41 = vld [vmem:[#allocation2 + $0x1a] sm:$0xff] }
  0x56   :  { %1103 = vmatmul.f32.gmra.mxu0 %v4064_v8  ;;  %v1020_v8 = vld [vmem:[#allocation8 + $0x2e0] sm:$0xff]  ;;  %v1037_v49 = vld [vmem:[#allocation8 + $0x368] sm:$0xff]  ;;  %v1051_v4 = vld [vmem:[#allocation8 + $0x3d8] sm:$0xff] }
  0x57   :  { %1139 = vmatmul.f32.gmra.mxu2 %v4061_v1  ;;  %1225 = vmatmul.f32.gmra.mxu3 %v370_v50  ;;  %v977_v1 = vld [vmem:[#allocation8 + $0x188] sm:$0xff]  ;;  %v1068_v63 = vld [vmem:[#allocation8 + $0x460] sm:$0xff]  ;;  %v539_v7 = vld [vmem:[#allocation2 + $0x1c] sm:$0xff] }
  0x58   :  { %1505 = vmatpush.msrb.mxu1 %v1020_v8  ;;  %1344 = vmatpush.msrb.mxu3 %v977_v1  ;;  %v919_v51 = vld [vmem:[#allocation4 + $0x240] sm:$0x3]  ;;  %v492_v50 = vld [vmem:[#allocation2 + $0x13] sm:$0xff]  ;;  %v448_v6 = vld [vmem:[#allocation2 + $0x22] sm:$0xff] }
  0x59   :  { %1189 = vmatmul.f32.gmra.mxu1 %v358_v5  ;;  %1430 = vmatpush.msrb.mxu0 %v993_v29  ;;  %v920_v52 = vld [vmem:[#allocation4 + $0xd0] sm:$0x3]  ;;  %v1053_v55 = vld [vmem:[#allocation8 + $0x3e8] sm:$0xff]  ;;  %v1034_v11 = vld [vmem:[#allocation8 + $0x350] sm:$0xff] }
  0x5a   :  { %1506 = vmatpush.msrb.mxu1 %v1019_v16  ;;  %1345 = vmatpush.msrb.mxu3 %v976_v26  ;;  %v445_v57 = vld [vmem:[#allocation2 + $0xa] sm:$0xff]  ;;  %v538_v42 = vld [vmem:[#allocation2 + $0x14] sm:$0xff]  ;;  %v1067_v9 = vld [vmem:[#allocation8 + $0x458] sm:$0xff] }
  0x5b   :  { %1431 = vmatpush.msrb.mxu0 %v992_v38  ;;  %1589 = vmatpush.msra.mxu2 %v1038_v45  ;;  %v363_v54 = vld [vmem:[#allocation2 + $0x51] sm:$0xff]  ;;  %v493_v5 = vld [vmem:[#allocation2 + $0x1b] sm:$0xff]  ;;  %v494_v12 = vld [vmem:[#allocation2 + $0x23] sm:$0xff] }
  0x5c   :  { %1507 = vmatpush.msrb.mxu1 %v1018_v18  ;;  %1674 = vmatpush.msra.mxu3 %v1055_v56  ;;  %v1069_v32 = vld [vmem:[#allocation8 + $0x468] sm:$0xff]  ;;  %v540_v14 = vld [vmem:[#allocation2 + $0x24] sm:$0xff]  ;;  %v1066_v16 = vld [vmem:[#allocation8 + $0x450] sm:$0xff] }
  0x5d   :  { %1760 = vmatpush.msra.mxu0 %v1071_v43  ;;  %1590 = vmatpush.msra.mxu2 %v1037_v49  ;;  %v491_v60 = vld [vmem:[#allocation2 + $0xb] sm:$0xff]  ;;  %v496_v26 = vld [vmem:[#allocation2 + $0x33] sm:$0xff]  ;;  %v497_v56 = vld [vmem:[#allocation2 + $0x3b] sm:$0xff] }
  0x5e   :  { %1106 = vmatmul.f32.gmra.mxu0 %v4071_v35  ;;  %1508 = vmatpush.msrb.mxu1 %v1017_v22  ;;  %v1014_v35 = vld [vmem:[#allocation8 + $0x2b0] sm:$0xff]  ;;  %v537_v62 = vld [vmem:[#allocation2 + $0xc] sm:$0xff]  ;;  %v452_v38 = vld [vmem:[#allocation2 + $0x42] sm:$0xff] }
  0x5f   :  { %1142 = vmatmul.f32.gmra.mxu2 %v4068_v27  ;;  %1228 = vmatmul.f32.gmra.mxu3 %v371_v17  ;;  %v360_v27 = vld [vmem:[#allocation2 + $0x39] sm:$0xff]  ;;  %v449_v2 = vld [vmem:[#allocation2 + $0x2a] sm:$0xff] }
  0x60   :  { %1509 = vmatpush.msrb.mxu1 %v1016_v24  ;;  %1675 = vmatpush.msra.mxu3 %v1054_v46  ;;  %v495_v15 = vld [vmem:[#allocation2 + $0x2b] sm:$0xff]  ;;  %v542_v29 = vld [vmem:[#allocation2 + $0x34] sm:$0xff]  ;;  %v1031_v45 = vld [vmem:[#allocation8 + $0x338] sm:$0xff] }
  0x61   :  { %1192 = vmatmul.f32.gmra.mxu1 %v359_v19  ;;  %1591 = vmatpush.msra.mxu2 %v1036_v59  ;;  %v1033_v1 = vld [vmem:[#allocation8 + $0x348] sm:$0xff]  ;;  %v1047_v46 = vld [vmem:[#allocation8 + $0x3b8] sm:$0xff] }
  0x62   :  { %1510 = vmatpush.msrb.mxu1 %v1015_v28  ;;  %1676 = vmatpush.msra.mxu3 %v1053_v55  ;;  %v450_v17 = vld [vmem:[#allocation2 + $0x32] sm:$0xff]  ;;  %v451_v28 = vld [vmem:[#allocation2 + $0x3a] sm:$0xff] }
  0x63   :  { %1592 = vmatpush.msra.mxu2 %v1035_v0  ;;  %v541_v18 = vld [vmem:[#allocation2 + $0x2c] sm:$0xff]  ;;  %v1063_v55 = vld [vmem:[#allocation8 + $0x438] sm:$0xff]  ;;  %v1062_v0 = vld [vmem:[#allocation8 + $0x430] sm:$0xff] }
  0x64   :  { %1511 = vmatpush.msrb.mxu1 %v1014_v35  ;;  %v1049_v19 = vld [vmem:[#allocation8 + $0x3c8] sm:$0xff]  ;;  %v1032_v35 = vld [vmem:[#allocation8 + $0x340] sm:$0xff] }
  0x65   :  { %1593 = vmatpush.msra.mxu2 %v1034_v11  ;;  %v456_v11 = vld [vmem:[#allocation2 + $0x62] sm:$0xff] }
  0x66   :  { %1109 = vmatmul.f32.gmra.mxu0 %v4078_v53  ;;  %1512 = vmatpush.msrb.mxu1 %v1013_v37  ;;  %v373_v53 = vld [vmem:[#allocation2 + $0xa1] sm:$0xff] }
  0x67   :  { %1145 = vmatmul.f32.gmra.mxu2 %v4075_v48  ;;  %1231 = vmatmul.f32.gmra.mxu3 %v372_v31  ;;  %v361_v48 = vld [vmem:[#allocation2 + $0x41] sm:$0xff]  ;;  %v1065_v31 = vld [vmem:[#allocation8 + $0x448] sm:$0xff] }
  0x68   :  { %1513 = vmatpush.msrb.mxu1 %v1012_v25  ;;  %1594 = vmatpush.msra.mxu2 %v1033_v1  ;;  %v1048_v25 = vld [vmem:[#allocation8 + $0x3c0] sm:$0xff] }
  0x69   :  { %1195 = vmatmul.f32.gmra.mxu1 %v360_v27  ;;  %v502_v1 = vld [vmem:[#allocation2 + $0x63] sm:$0xff] }
  0x6a   :  { %1514 = vmatpush.msrb.mxu1 %v1011_v39  ;;  %1595 = vmatpush.msra.mxu2 %v1032_v35  ;;  %v543_v39 = vld [vmem:[#allocation2 + $0x3c] sm:$0xff] }
  0x6c   :  { %1515 = vmatpush.msrb.mxu1 %v1010_v21  ;;  %1596 = vmatpush.msra.mxu2 %v1031_v45  ;;  %v504_v45 = vld [vmem:[#allocation2 + $0x73] sm:$0xff] }
  0x6e   :  { %1112 = vmatmul.f32.gmra.mxu0 %v4086_v10  ;;  %1516 = vmatpush.msrb.mxu1 %v1009_v40  ;;  %v362_v10 = vld [vmem:[#allocation2 + $0x49] sm:$0xff] }
  0x6f   :  { %1148 = vmatmul.f32.gmra.mxu2 %v4082_v3  ;;  %1234 = vmatmul.f32.gmra.mxu3 %v373_v53  ;;  %v1070_v3 = vld [vmem:[#allocation8 + $0x470] sm:$0xff] }
  0x70   :  { %1517 = vmatpush.msrb.mxu1 %v1008_v44  ;;  %1761 = vmatpush.msra.mxu0 %v1070_v3  ;;  %v1064_v44 = vld [vmem:[#allocation8 + $0x440] sm:$0xff] }
  0x71   :  { %1198 = vmatmul.f32.gmra.mxu1 %v361_v48  ;;  %v498_v48 = vld [vmem:[#allocation2 + $0x43] sm:$0xff] }
  0x72   :  { %1762 = vmatpush.msra.mxu0 %v1069_v32  ;;  %v1046_v32 = vld [vmem:[#allocation8 + $0x3b0] sm:$0xff] }
  0x74   :  { %1763 = vmatpush.msra.mxu0 %v1068_v63  ;;  %v546_v63 = vld [vmem:[#allocation2 + $0x54] sm:$0xff] }
  0x76   :  { %1115 = vmatmul.f32.gmra.mxu0 %v4094_v36  ;;  %v399_v36 = vld [vmem:[#allocation2 + $0x2] sm:$0xff] }
  0x77   :  { %1151 = vmatmul.f32.gmra.mxu2 %v4090_v30  ;;  %1237 = vmatmul.f32.gmra.mxu3 %v374_v47  ;;  %v364_v30 = vld [vmem:[#allocation2 + $0x59] sm:$0xff]  ;;  %v453_v47 = vld [vmem:[#allocation2 + $0x4a] sm:$0xff] }
  0x78   :  { %1764 = vmatpush.msra.mxu0 %v1067_v9  ;;  %v1045_v9 = vld [vmem:[#allocation8 + $0x3a8] sm:$0xff] }
  0x79   :  { %1201 = vmatmul.f32.gmra.mxu1 %v362_v10  ;;  %v544_v10 = vld [vmem:[#allocation2 + $0x44] sm:$0xff] }
  0x7a   :  { %1765 = vmatpush.msra.mxu0 %v1066_v16 }
  0x7c   :  { %1766 = vmatpush.msra.mxu0 %v1065_v31 }
  0x7e   :  { %1118 = vmatmul.f32.gmra.mxu0 %v4099_v58  ;;  %v1052_v58 = vld [vmem:[#allocation8 + $0x3e0] sm:$0xff] }
  0x7f   :  { %1154 = vmatmul.f32.gmra.mxu2 %v919_v51  ;;  %1240 = vmatmul.f32.gmra.mxu3 %v920_v52 }
  0x80   :  { %1677 = vmatpush.msra.mxu3 %v1052_v58  ;;  %1767 = vmatpush.msra.mxu0 %v1064_v44 }
  0x81   :  { %1204 = vmatmul.f32.gmra.mxu1 %v363_v54  ;;  %v499_v54 = vld [vmem:[#allocation2 + $0x4b] sm:$0xff] }
  0x82   :  { %1678 = vmatpush.msra.mxu3 %v1051_v4  ;;  %1768 = vmatpush.msra.mxu0 %v1063_v55 }
  0x84   :  { %1769 = vmatpush.msra.mxu0 %v1062_v0 }
  0x86   :  { %1121 = vmatmul.f32.gmra.mxu0 %v4104_v13  ;;  %v1050_v13 = vld [vmem:[#allocation8 + $0x3d0] sm:$0xff] }
  0x87   :  { %1260 = vmatmul.f32.vlgmr.msrb.gmra.mxu2 %v399_v36  ;;  %1346 = vmatmul.f32.vlgmr.msrb.gmra.mxu3 %v445_v57  ;;  %v454_v36 = vld [vmem:[#allocation2 + $0x52] sm:$0xff] }
  0x88   :  { %1679 = vmatpush.msra.mxu3 %v1050_v13  ;;  %v547_v13 = vld [vmem:[#allocation2 + $0x5c] sm:$0xff] }
  0x89   :  { %1207 = vmatmul.f32.gmra.mxu1 %v364_v30  ;;  %v1030_v30 = vld [vmem:[#allocation8 + $0x330] sm:$0xff] }
  0x8a   :  { %1680 = vmatpush.msra.mxu3 %v1049_v19  ;;  %1597 = vmatpush.msra.mxu2 %v1030_v30  ;;  %v548_v19 = vld [vmem:[#allocation2 + $0x64] sm:$0xff] }
  0x8b   :  { %v460_v30 = vld [vmem:[#allocation2 + $0x82] sm:$0xff] }
  0x8c   :  { %1681 = vmatpush.msra.mxu3 %v1048_v25 }
  0x8e   :  { %1432 = vmatmul.f32.vlgmr.msrb.gmra.mxu0 %v491_v60  ;;  %1682 = vmatpush.msra.mxu3 %v1047_v46  ;;  %v459_v46 = vld [vmem:[#allocation2 + $0x7a] sm:$0xff] }
  0x8f   :  { %1263 = vmatmul.f32.gmra.mxu2 %v445_v57  ;;  %1349 = vmatmul.f32.gmra.mxu3 %v446_v61  ;;  %v545_v57 = vld [vmem:[#allocation2 + $0x4c] sm:$0xff] }
  0x90   :  { %1683 = vmatpush.msra.mxu3 %v1046_v32  ;;  %v1059_v32 = vld [vmem:[#allocation8 + $0x418] sm:$0xff] }
  0x91   :  { %1518 = vmatmul.f32.vlgmr.msrb.gmra.mxu1 %v537_v62  ;;  %v500_v62 = vld [vmem:[#allocation2 + $0x53] sm:$0xff] }
  0x92   :  { %1684 = vmatpush.msra.mxu3 %v1045_v9 }
  0x96   :  { %1435 = vmatmul.f32.gmra.mxu0 %v492_v50  ;;  %v455_v50 = vld [vmem:[#allocation2 + $0x5a] sm:$0xff] }
  0x97   :  { %1266 = vmatmul.f32.gmra.mxu2 %v446_v61  ;;  %1352 = vmatmul.f32.gmra.mxu3 %v447_v41 }
  0x99   :  { %1521 = vmatmul.f32.gmra.mxu1 %v538_v42 }
  0x9e   :  { %1438 = vmatmul.f32.gmra.mxu0 %v493_v5 }
  0x9f   :  { %1269 = vmatmul.f32.gmra.mxu2 %v447_v41  ;;  %1355 = vmatmul.f32.gmra.mxu3 %v448_v6 }
  0xa1   :  { %1524 = vmatmul.f32.gmra.mxu1 %v539_v7  ;;  %v1029_v7 = vld [vmem:[#allocation8 + $0x328] sm:$0xff] }
  0xa2   :  { %1598 = vmatpush.msra.mxu2 %v1029_v7 }
  0xa6   :  { %1441 = vmatmul.f32.gmra.mxu0 %v494_v12 }
  0xa7   :  { %1272 = vmatmul.f32.gmra.mxu2 %v448_v6  ;;  %1358 = vmatmul.f32.gmra.mxu3 %v449_v2  ;;  %v501_v6 = vld [vmem:[#allocation2 + $0x5b] sm:$0xff] }
  0xa9   :  { %1527 = vmatmul.f32.gmra.mxu1 %v540_v14 }
  0xab   :  { %v4117_v8 = vpop.f32.mrf.mxu0 }
  0xae   :  { %1444 = vmatmul.f32.gmra.mxu0 %v495_v15  ;;  %v4143_v12 = vpop.f32.mrf.mxu1 }
  0xaf   :  { %1275 = vmatmul.f32.gmra.mxu2 %v449_v2  ;;  %1361 = vmatmul.f32.gmra.mxu3 %v450_v17 }
  0xb1   :  { %1530 = vmatmul.f32.gmra.mxu1 %v541_v18  ;;  %v457_v18 = vld [vmem:[#allocation2 + $0x6a] sm:$0xff] }
  0xb2   :  { %v1125_v20 = vpop.f32.mrf.mxu2  ;;  %v1211_v22 = vpop.f32.mrf.mxu3 }
  0xb3   :  { %v4119_v23 = vadd.f32 %v1211_v22, %v1125_v20  ;;  %v4121_v24 = vpop.f32.mrf.mxu0  ;;  %v1028_v22 = vld [vmem:[#allocation8 + $0x320] sm:$0xff] }
  0xb4   :  { %1599 = vmatpush.msra.mxu2 %v1028_v22  ;;  %v552_v22 = vld [vmem:[#allocation2 + $0x84] sm:$0xff] }
  0xb6   :  { %1447 = vmatmul.f32.gmra.mxu0 %v496_v26  ;;  %v4149_v20 = vpop.f32.mrf.mxu1  ;;  %v1044_v26 = vld [vmem:[#allocation8 + $0x3a0] sm:$0xff] }
  0xb7   :  { %1278 = vmatmul.f32.gmra.mxu2 %v450_v17  ;;  %1364 = vmatmul.f32.gmra.mxu3 %v451_v28  ;;  %v1061_v17 = vld [vmem:[#allocation8 + $0x428] sm:$0xff] }
  0xb8   :  { %1770 = vmatpush.msra.mxu0 %v1061_v17  ;;  %1685 = vmatpush.msra.mxu3 %v1044_v26  ;;  %v461_v17 = vld [vmem:[#allocation2 + $0x8a] sm:$0xff] }
  0xb9   :  { %1533 = vmatmul.f32.gmra.mxu1 %v542_v29 }
  0xba   :  { %v1128_v27 = vpop.f32.mrf.mxu2  ;;  %v1214_v33 = vpop.f32.mrf.mxu3 }
  0xbb   :  { %v4123_v34 = vadd.f32 %v1214_v33, %v1128_v27  ;;  %v4125_v37 = vpop.f32.mrf.mxu0  ;;  %v503_v27 = vld [vmem:[#allocation2 + $0x6b] sm:$0xff] }
  0xbc   :  { %v458_v33 = vld [vmem:[#allocation2 + $0x72] sm:$0xff] }
  0xbe   :  { %1450 = vmatmul.f32.gmra.mxu0 %v497_v56  ;;  %v549_v56 = vld [vmem:[#allocation2 + $0x6c] sm:$0xff]  ;;  %v4155_v25 = vpop.f32.mrf.mxu1 }
  0xbf   :  { %1281 = vmatmul.f32.gmra.mxu2 %v451_v28  ;;  %1367 = vmatmul.f32.gmra.mxu3 %v452_v38 }
  0xc1   :  { %1536 = vmatmul.f32.gmra.mxu1 %v543_v39  ;;  %v1027_v39 = vld [vmem:[#allocation8 + $0x318] sm:$0xff] }
  0xc2   :  { %v1131_v53 = vpop.f32.mrf.mxu2  ;;  %v1217_v21 = vpop.f32.mrf.mxu3  ;;  %1600 = vmatpush.msra.mxu2 %v1027_v39 }
  0xc3   :  { %v4127_v40 = vadd.f32 %v1217_v21, %v1131_v53  ;;  %v4129_v43 = vpop.f32.mrf.mxu0 }
  0xc6   :  { %1453 = vmatmul.f32.gmra.mxu0 %v498_v48 }
  0xc7   :  { %1284 = vmatmul.f32.gmra.mxu2 %v452_v38  ;;  %1370 = vmatmul.f32.gmra.mxu3 %v453_v47  ;;  %v1060_v38 = vld [vmem:[#allocation8 + $0x420] sm:$0xff] }
  0xc8   :  { %1771 = vmatpush.msra.mxu0 %v1060_v38 }
  0xc9   :  { %1539 = vmatmul.f32.gmra.mxu1 %v544_v10  ;;  %v550_v10 = vld [vmem:[#allocation2 + $0x74] sm:$0xff] }
  0xca   :  { %v1134_v3 = vpop.f32.mrf.mxu2  ;;  %v1220_v49 = vpop.f32.mrf.mxu3  ;;  %1772 = vmatpush.msra.mxu0 %v1059_v32 }
  0xcb   :  { %v4131_v51 = vadd.f32 %v1220_v49, %v1134_v3  ;;  %v4133_v52 = vpop.f32.mrf.mxu0 }
  0xce   :  { %1456 = vmatmul.f32.gmra.mxu0 %v499_v54  ;;  %v4161_v54 = vpop.f32.mrf.mxu1 }
  0xcf   :  { %1287 = vmatmul.f32.gmra.mxu2 %v453_v47  ;;  %1373 = vmatmul.f32.gmra.mxu3 %v454_v36  ;;  %v1043_v47 = vld [vmem:[#allocation8 + $0x398] sm:$0xff] }
  0xd0   :  { %1686 = vmatpush.msra.mxu3 %v1043_v47  ;;  %v1041_v47 = vld [vmem:[#allocation8 + $0x388] sm:$0xff] }
  0xd1   :  { %1542 = vmatmul.f32.gmra.mxu1 %v545_v57  ;;  %v505_v57 = vld [vmem:[#allocation2 + $0x7b] sm:$0xff] }
  0xd2   :  { %v1137_v59 = vpop.f32.mrf.mxu2  ;;  %v1223_v60 = vpop.f32.mrf.mxu3 }
  0xd3   :  { %v4135_v58 = vadd.f32 %v1223_v60, %v1137_v59  ;;  %v4137_v61 = vpop.f32.mrf.mxu0  ;;  %v551_v59 = vld [vmem:[#allocation2 + $0x7c] sm:$0xff] }
  0xd4   :  { %v1026_v60 = vld [vmem:[#allocation8 + $0x310] sm:$0xff] }
  0xd5   :  { %1601 = vmatpush.msra.mxu2 %v1026_v60 }
  0xd6   :  { %1459 = vmatmul.f32.gmra.mxu0 %v500_v62  ;;  %v1042_v62 = vld [vmem:[#allocation8 + $0x390] sm:$0xff] }
  0xd7   :  { %1290 = vmatmul.f32.gmra.mxu2 %v454_v36  ;;  %1376 = vmatmul.f32.gmra.mxu3 %v455_v50 }
  0xd8   :  { %1687 = vmatpush.msra.mxu3 %v1042_v62 }
  0xd9   :  { %1545 = vmatmul.f32.gmra.mxu1 %v546_v63 }
  0xda   :  { %v1140_v41 = vpop.f32.mrf.mxu2  ;;  %v1226_v42 = vpop.f32.mrf.mxu3  ;;  %1688 = vmatpush.msra.mxu3 %v1041_v47 }
  0xdb   :  { %v4139_v4 = vadd.f32 %v1226_v42, %v1140_v41  ;;  %v4141_v5 = vpop.f32.mrf.mxu0  ;;  %v506_v41 = vld [vmem:[#allocation2 + $0x83] sm:$0xff] }
  0xdc   :  { %v100_v42 = vld [vmem:[#allocation5 + $0xb8] sm:$0xff] }
  0xde   :  { %1462 = vmatmul.f32.gmra.mxu0 %v501_v6  ;;  %v126_v6 = vld [vmem:[#allocation5 + $0x180] sm:$0xff] }
  0xdf   :  { %1293 = vmatmul.f32.gmra.mxu2 %v455_v50  ;;  %1379 = vmatmul.f32.gmra.mxu3 %v456_v11  ;;  %v2720_v50 = vld [vmem:[#allocation10 + $0x78] sm:$0xff] }
  0xe0   :  { %2849 = vmatpush.msra.mxu1 %v2720_v50  ;;  %v508_v50 = vld [vmem:[#allocation2 + $0x93] sm:$0xff] }
  0xe1   :  { %1548 = vmatmul.f32.gmra.mxu1 %v547_v13  ;;  %v284_v13 = vld [vmem:[%s5178_s7] sm:$0xff] }
  0xe2   :  { %v1143_v2 = vpop.f32.mrf.mxu2  ;;  %v1229_v14 = vpop.f32.mrf.mxu3 }
  0xe3   :  { %v4145_v15 = vadd.f32 %v1229_v14, %v1143_v2  ;;  %v4147_v16 = vpop.f32.mrf.mxu0  ;;  %v151_v2 = vmax.f32 %v100_v42, %v126_v6  ;;  %v177_v14 = vld [vmem:[#allocation5 + $0x248] sm:$0xff] }
  0xe4   :  { %v1057_v6 = vld [vmem:[#allocation8 + $0x408] sm:$0xff] }
  0xe6   :  { %1465 = vmatmul.f32.gmra.mxu0 %v502_v1  ;;  %v203_v1 = vld [vmem:[#allocation5 + $0x310] sm:$0xff] }
  0xe7   :  { %1296 = vmatmul.f32.gmra.mxu2 %v456_v11  ;;  %1382 = vmatmul.f32.gmra.mxu3 %v457_v18  ;;  %v3964_v11 = vmov 0  }
  0xe8   :  { %3810 = vset.pattern.permute.xlu0 %v3964_v11  ;;  %3811 = vset.pattern.permute.xlu1 %v3964_v11 }
  0xe9   :  { %1551 = vmatmul.f32.gmra.mxu1 %v548_v19  ;;  %1925 = vperm.xlu0 %3810, %v284_v13   ;;  %v4174_v19 = vpop.f32.mrf.mxu1  ;;  %v1024_v13 = vld [vmem:[#allocation8 + $0x300] sm:$0xff] }
  0xea   :  { %v1146_v28 = vpop.f32.mrf.mxu2  ;;  %v1232_v29 = vpop.f32.mrf.mxu3  ;;  %3812 = vset.pattern.permute.xlu2 %v3964_v11 }
  0xeb   :  { %v4151_v31 = vadd.f32 %v1232_v29, %v1146_v28  ;;  %v4153_v35 = vpop.f32.mrf.mxu0  ;;  %v1058_v28 = vld [vmem:[#allocation8 + $0x410] sm:$0xff]  ;;  %v1176_v29 = vadd.f32 %v4143_v12, %v4117_v8  ;;  %v421_v8 = vld [vmem:[#allocation2 + $0xb2] sm:$0x3] }
  0xec   :  { %1773 = vmatpush.msra.mxu0 %v1058_v28  ;;  %444 = vst [vmem:[#allocation4 + $0x208] sm:$0x3] %v421_v8 }
  0xee   :  { %1468 = vmatmul.f32.gmra.mxu0 %v503_v27  ;;  %v1025_v27 = vld [vmem:[#allocation8 + $0x308] sm:$0xff] }
  0xef   :  { %1299 = vmatmul.f32.gmra.mxu2 %v457_v18  ;;  %1385 = vmatmul.f32.gmra.mxu3 %v458_v33  ;;  %v228_v18 = vmax.f32 %v177_v14, %v203_v1  ;;  %v1182_v14 = vadd.f32 %v4155_v25, %v4125_v37  ;;  %v293_v37 = vld [vmem:[%s5178_s7 + $0x48] sm:$0xff] }
  0xf0   :  { %1602 = vmatpush.msra.mxu2 %v1025_v27  ;;  %1774 = vmatpush.msra.mxu0 %v1057_v6  ;;  %v509_v27 = vld [vmem:[#allocation2 + $0x9b] sm:$0xff]  ;;  %v294_v6 = vld [vmem:[%s5178_s7 + $0x50] sm:$0xff] }
  0xf1   :  { %1554 = vmatmul.f32.gmra.mxu1 %v549_v56  ;;  %v253_v26 = vmax.f32 %v151_v2, %v228_v18  ;;  %v4181_v12 = vpop.f32.mrf.mxu1  ;;  %v1040_v2 = vld [vmem:[#allocation8 + $0x380] sm:$0xff] }
  0xf2   :  { %v1149_v53 = vpop.f32.mrf.mxu2  ;;  %v1235_v21 = vpop.f32.mrf.mxu3  ;;  %1603 = vmatpush.msra.mxu2 %v1024_v13  ;;  %1689 = vmatpush.msra.mxu3 %v1040_v2  ;;  %v464_v25 = vld [vmem:[#allocation2 + $0xa2] sm:$0xff] }
  0xf3   :  { %v4157_v48 = vadd.f32 %v1235_v21, %v1149_v53  ;;  %v4159_v44 = vpop.f32.mrf.mxu0  ;;  %278 = vst [vmem:[#allocation2 + $0xb8] sm:$0xff] %v253_v26  ;;  %v507_v53 = vld [vmem:[#allocation2 + $0x8b] sm:$0xff] }
  0xf4   :  { %v285_v21 = vld [vmem:[%s5178_s7 + $0x8] sm:$0xff] }
  0xf5   :  { %1930 = vperm.xlu0 %3810, %v285_v21   ;;  %v1185_v21 = vadd.f32 %v4161_v54, %v4129_v43  ;;  %v556_v54 = vld [vmem:[#allocation2 + $0xa4] sm:$0xff] }
  0xf6   :  { %1471 = vmatmul.f32.gmra.mxu0 %v504_v45  ;;  %v462_v45 = vld [vmem:[#allocation2 + $0x92] sm:$0xff] }
  0xf7   :  { %1302 = vmatmul.f32.gmra.mxu2 %v458_v33  ;;  %1388 = vmatmul.f32.gmra.mxu3 %v459_v46 }
  0xf9   :  { %1557 = vmatmul.f32.gmra.mxu1 %v550_v10  ;;  %v553_v10 = vld [vmem:[#allocation2 + $0x8c] sm:$0xff]  ;;  %v4197_v1 = vpop.f32.mrf.mxu1 }
  0xfa   :  { %v1152_v3 = vpop.f32.mrf.mxu2  ;;  %v1238_v49 = vpop.f32.mrf.mxu3  ;;  %v559_v26 = vld [vmem:[#allocation2 + $0xbc] sm:$0x3] }
  0xfb   :  { %v4163_v55 = vadd.f32 %v1238_v49, %v1152_v3  ;;  %v4165_v36 = vpop.f32.mrf.mxu0  ;;  %v2719_v49 = vld [vmem:[#allocation10 + $0x70] sm:$0xff]  ;;  %582 = vst [vmem:[#allocation4 + $0x608] sm:$0x3] %v559_v26 }
  0xfc   :  { %2850 = vmatpush.msra.mxu1 %v2719_v49  ;;  %v510_v49 = vld [vmem:[#allocation2 + $0xa3] sm:$0xff] }
  0xfe   :  { %1474 = vmatmul.f32.gmra.mxu0 %v505_v57  ;;  %v467_v57 = vld [vmem:[#allocation2 + $0xba] sm:$0x3] }
  0xff   :  { %1305 = vmatmul.f32.gmra.mxu2 %v459_v46  ;;  %1391 = vmatmul.f32.gmra.mxu3 %v460_v30  ;;  %490 = vst [vmem:[#allocation4 + $0x228] sm:$0x3] %v467_v57  ;;  %v291_v57 = vld [vmem:[%s5178_s7 + $0x38] sm:$0xff] }
 0x101   :  { %1560 = vmatmul.f32.gmra.mxu1 %v551_v59  ;;  %v4209_v47 = vpop.f32.mrf.mxu1 }
 0x102   :  { %v1155_v63 = vpop.f32.mrf.mxu2  ;;  %v1241_v0 = vpop.f32.mrf.mxu3 }
 0x103   :  { %v4167_v7 = vadd.f32 %v1241_v0, %v1155_v63  ;;  %v4169_v9 = vpop.f32.mrf.mxu0  ;;  %v286_v63 = vld [vmem:[%s5178_s7 + $0x10] sm:$0xff] }
 0x104   :  { %v290_v0 = vld [vmem:[%s5178_s7 + $0x30] sm:$0xff]  ;;  %1935 = vperm.xlu1 %3811, %v286_v63  }
 0x105   :  { %1955 = vperm.xlu0 %3810, %v290_v0  }
 0x106   :  { %1477 = vmatmul.f32.gmra.mxu0 %v506_v41  ;;  %v463_v41 = vld [vmem:[#allocation2 + $0x9a] sm:$0xff] }
 0x107   :  { %1308 = vmatmul.f32.gmra.mxu2 %v460_v30  ;;  %1394 = vmatmul.f32.gmra.mxu3 %v461_v17  ;;  %v1179_v30 = vadd.f32 %v4149_v20, %v4121_v24  ;;  %v554_v24 = vld [vmem:[#allocation2 + $0x94] sm:$0xff] }
 0x108   :  { %v513_v20 = vld [vmem:[#allocation2 + $0xbb] sm:$0x3] }
 0x109   :  { %1563 = vmatmul.f32.gmra.mxu1 %v552_v22  ;;  %536 = vst [vmem:[#allocation4 + $0x2f0] sm:$0x3] %v513_v20  ;;  %v466_v20 = vld [vmem:[#allocation2 + $0xb2] sm:$0xff]  ;;  %v4227_v13 = vpop.f32.mrf.mxu1 }
 0x10a   :  { %v1261_v33 = vpop.f32.mrf.mxu2  ;;  %v1347_v56 = vpop.f32.mrf.mxu3 }
 0x10b   :  { %v1262_v38 = vadd.f32 %v1261_v33, %v1176_v29  ;;  %v1433_v39 = vpop.f32.mrf.mxu0  ;;  %v287_v33 = vld [vmem:[%s5178_s7 + $0x18] sm:$0xff] }
 0x10c   :  { %1940 = vperm.xlu1 %3811, %v287_v33   ;;  %v302_v33 = vld [vmem:[%s5178_s7 + $0x90] sm:$0xff] }
 0x10d   :  { %v1348_v46 = vadd.f32 %v1347_v56, %v1262_v38  ;;  %1970 = vperm.xlu0 %3810, %v293_v37   ;;  %v555_v38 = vld [vmem:[#allocation2 + $0x9c] sm:$0xff]  ;;  %v921_v37 = vld [vmem:[#allocation4 + $0x208] sm:$0x3] }
 0x10e   :  { %1480 = vmatmul.f32.gmra.mxu0 %v507_v53  ;;  %v1056_v53 = vld [vmem:[#allocation8 + $0x400] sm:$0xff] }
 0x10f   :  { %v4183_v3 = vadd.f32 %v1433_v39, %v1348_v46  ;;  %1311 = vmatmul.f32.gmra.mxu2 %v461_v17  ;;  %1397 = vmatmul.f32.gmra.mxu3 %v462_v45  ;;  %v2718_v17 = vld [vmem:[#allocation10 + $0x68] sm:$0xff] }
 0x110   :  { %2851 = vmatpush.msra.mxu1 %v2718_v17  ;;  %1775 = vmatpush.msra.mxu0 %v1056_v53  ;;  %v1191_v17 = vadd.f32 %v4181_v12, %v4137_v61  ;;  %v558_v61 = vld [vmem:[#allocation2 + $0xb4] sm:$0xff]  ;;  %v1194_v53 = vadd.f32 %v4197_v1, %v4141_v5 }
 0x111   :  { %1566 = vmatmul.f32.gmra.mxu1 %v553_v10  ;;  %v4239_v12 = vpop.f32.mrf.mxu1  ;;  %v2715_v5 = vld [vmem:[#allocation10 + $0x50] sm:$0xff] }
 0x112   :  { %v1264_v32 = vpop.f32.mrf.mxu2  ;;  %v1350_v59 = vpop.f32.mrf.mxu3  ;;  %v924_v1 = vld [vmem:[#allocation4 + $0x608] sm:$0x3] }
 0x113   :  { %v1265_v60 = vadd.f32 %v1264_v32, %v1179_v30  ;;  %v1436_v62 = vpop.f32.mrf.mxu0  ;;  %v296_v30 = vld [vmem:[%s5178_s7 + $0x60] sm:$0xff]  ;;  %v465_v32 = vld [vmem:[#allocation2 + $0xaa] sm:$0xff] }
 0x114   :  { %1960 = vperm.xlu1 %3811, %v291_v57   ;;  %v305_v57 = vld [vmem:[%s5178_s7 + $0xa8] sm:$0xff] }
 0x115   :  { %v1351_v42 = vadd.f32 %v1350_v59, %v1265_v60  ;;  %1985 = vperm.xlu0 %3810, %v296_v30   ;;  %v2717_v60 = vld [vmem:[#allocation10 + $0x60] sm:$0xff]  ;;  %v583_v30 = vld [vmem:[#allocation2 + $0x14] sm:$0xff] }
 0x116   :  { %1483 = vmatmul.f32.gmra.mxu0 %v508_v50  ;;  %2852 = vmatpush.msra.mxu1 %v2717_v60  ;;  %v1197_v60 = vadd.f32 %v4209_v47, %v4147_v16 }
 0x117   :  { %v4193_v11 = vadd.f32 %v1436_v62, %v1351_v42  ;;  %1314 = vmatmul.f32.gmra.mxu2 %v462_v45  ;;  %1400 = vmatmul.f32.gmra.mxu3 %v463_v41  ;;  %v1188_v62 = vadd.f32 %v4174_v19, %v4133_v52  ;;  %v511_v42 = vld [vmem:[#allocation2 + $0xab] sm:$0xff] }
 0x118   :  { %v557_v19 = vld [vmem:[#allocation2 + $0xac] sm:$0xff] }
 0x119   :  { %1569 = vmatmul.f32.gmra.mxu1 %v554_v24  ;;  %v299_v24 = vld [vmem:[%s5178_s7 + $0x78] sm:$0xff] }
 0x11a   :  { %v1267_v18 = vpop.f32.mrf.mxu2  ;;  %v1353_v22 = vpop.f32.mrf.mxu3 }
 0x11b   :  { %v1268_v28 = vadd.f32 %v1267_v18, %v1182_v14  ;;  %v1439_v29 = vpop.f32.mrf.mxu0  ;;  %v2716_v14 = vld [vmem:[#allocation10 + $0x58] sm:$0xff] }
 0x11c   :  { %1975 = vperm.xlu1 %3811, %v294_v6   ;;  %2853 = vmatpush.msra.mxu1 %v2716_v14  ;;  %v288_v6 = vld [vmem:[%s5178_s7 + $0x20] sm:$0xff]  ;;  %v1200_v14 = vadd.f32 %v4227_v13, %v4153_v35  ;;  %v1203_v13 = vadd.f32 %v4239_v12, %v4159_v44 }
 0x11d   :  { %v1354_v56 = vadd.f32 %v1353_v22, %v1268_v28  ;;  %2000 = vperm.xlu0 %3810, %v299_v24   ;;  %v303_v24 = vld [vmem:[%s5178_s7 + $0x98] sm:$0xff]  ;;  %1945 = vperm.xlu2 %3812, %v288_v6  }
 0x11e   :  { %1486 = vmatmul.f32.gmra.mxu0 %v509_v27  ;;  %v297_v27 = vld [vmem:[%s5178_s7 + $0x68] sm:$0xff]  ;;  %2854 = vmatpush.msra.mxu1 %v2715_v5 }
 0x11f   :  { %v4205_v39 = vadd.f32 %v1439_v29, %v1354_v56  ;;  %1317 = vmatmul.f32.gmra.mxu2 %v463_v41  ;;  %1403 = vmatmul.f32.gmra.mxu3 %v464_v25  ;;  %v512_v29 = vld [vmem:[#allocation2 + $0xb3] sm:$0xff] }
 0x121   :  { %1572 = vmatmul.f32.gmra.mxu1 %v555_v38 }
 0x122   :  { %v1270_v45 = vpop.f32.mrf.mxu2  ;;  %v1356_v46 = vpop.f32.mrf.mxu3 }
 0x123   :  { %v1271_v10 = vadd.f32 %v1270_v45, %v1185_v21  ;;  %v1442_v8 = vpop.f32.mrf.mxu0 }
 0x124   :  { %1990 = vperm.xlu1 %3811, %v297_v27   ;;  %v306_v27 = vld [vmem:[%s5178_s7 + $0xb0] sm:$0x3] }
 0x125   :  { %v1357_v43 = vadd.f32 %v1356_v46, %v1271_v10  ;;  %2015 = vperm.xlu0 %3810, %v302_v33   ;;  %v585_v33 = vld [vmem:[#allocation2 + $0x24] sm:$0xff] }
 0x126   :  { %1489 = vmatmul.f32.gmra.mxu0 %v510_v49  ;;  %v300_v49 = vld [vmem:[%s5178_s7 + $0x80] sm:$0xff] }
 0x127   :  { %v4217_v59 = vadd.f32 %v1442_v8, %v1357_v43  ;;  %1320 = vmatmul.f32.gmra.mxu2 %v464_v25  ;;  %1406 = vmatmul.f32.gmra.mxu3 %v465_v32  ;;  %v922_v25 = vld [vmem:[#allocation4 + $0x228] sm:$0x3]  ;;  %v923_v8 = vld [vmem:[#allocation4 + $0x2f0] sm:$0x3] }
 0x129   :  { %1575 = vmatmul.f32.gmra.mxu1 %v556_v54 }
 0x12a   :  { %v1273_v50 = vpop.f32.mrf.mxu2  ;;  %v1359_v63 = vpop.f32.mrf.mxu3 }
 0x12b   :  { %v1274_v0 = vadd.f32 %v1273_v50, %v1188_v62  ;;  %v1445_v41 = vpop.f32.mrf.mxu0  ;;  %v1205_v62 = vpop.f32.mrf.mxu1 }
 0x12c   :  { %2005 = vperm.xlu1 %3811, %v300_v49   ;;  %v1206_v44 = vadd.f32 %v1205_v62, %v4165_v36  ;;  %v2712_v36 = vld [vmem:[#allocation10 + $0x38] sm:$0xff] }
 0x12d   :  { %v1360_v52 = vadd.f32 %v1359_v63, %v1274_v0  ;;  %2030 = vperm.xlu0 %3810, %v305_v57   ;;  %v2713_v57 = vld [vmem:[#allocation10 + $0x40] sm:$0xff] }
 0x12e   :  { %1492 = vmatmul.f32.gmra.mxu0 %v511_v42  ;;  %v675_v42 = vld [vmem:[#allocation2 + $0x16] sm:$0xff] }
 0x12f   :  { %v4229_v2 = vadd.f32 %v1445_v41, %v1360_v52  ;;  %1323 = vmatmul.f32.gmra.mxu2 %v465_v32  ;;  %1409 = vmatmul.f32.gmra.mxu3 %v466_v20  ;;  %v629_v32 = vld [vmem:[#allocation2 + $0x15] sm:$0xff]  ;;  %v630_v52 = vld [vmem:[#allocation2 + $0x1d] sm:$0xff] }
 0x130   :  { %v584_v20 = vld [vmem:[#allocation2 + $0x1c] sm:$0xff] }
 0x131   :  { %1578 = vmatmul.f32.gmra.mxu1 %v557_v19  ;;  %v2714_v19 = vld [vmem:[#allocation10 + $0x48] sm:$0xff] }
 0x132   :  { %v1276_v18 = vpop.f32.mrf.mxu2  ;;  %v1362_v22 = vpop.f32.mrf.mxu3  ;;  %2855 = vmatpush.msra.mxu1 %v2714_v19  ;;  %v298_v19 = vld [vmem:[%s5178_s7 + $0x70] sm:$0xff] }
 0x133   :  { %v1277_v26 = vadd.f32 %v1276_v18, %v1191_v17  ;;  %v1448_v28 = vpop.f32.mrf.mxu0 }
 0x134   :  { %2020 = vperm.xlu1 %3811, %v303_v24   ;;  %2856 = vmatpush.msra.mxu1 %v2713_v57  ;;  %v590_v57 = vld [vmem:[#allocation2 + $0x4c] sm:$0xff] }
 0x135   :  { %v1363_v56 = vadd.f32 %v1362_v22, %v1277_v26 }
 0x136   :  { %1495 = vmatmul.f32.gmra.mxu0 %v512_v29  ;;  %v289_v29 = vld [vmem:[%s5178_s7 + $0x28] sm:$0xff]  ;;  %2857 = vmatpush.msra.mxu1 %v2712_v36 }
 0x137   :  { %v4241_v38 = vadd.f32 %v1448_v28, %v1363_v56  ;;  %1326 = vmatmul.f32.gmra.mxu2 %v921_v37  ;;  %1412 = vmatmul.f32.gmra.mxu3 %v922_v25  ;;  %v676_v28 = vld [vmem:[#allocation2 + $0x1e] sm:$0xff] }
 0x138   :  { %v631_v37 = vld [vmem:[#allocation2 + $0x25] sm:$0xff]  ;;  %1950 = vperm.xlu2 %3812, %v289_v29  }
 0x139   :  { %1581 = vmatmul.f32.gmra.mxu1 %v558_v61 }
 0x13a   :  { %v1279_v21 = vpop.f32.mrf.mxu2  ;;  %v1365_v45 = vpop.f32.mrf.mxu3 }
 0x13b   :  { %v1280_v46 = vadd.f32 %v1279_v21, %v1194_v53  ;;  %v1451_v10 = vpop.f32.mrf.mxu0 }
 0x13c   :  { %2035 = vperm.xlu1 %3811, %v306_v27  }
 0x13d   :  { %v1366_v43 = vadd.f32 %v1365_v45, %v1280_v46  ;;  %v677_v45 = vld [vmem:[#allocation2 + $0x26] sm:$0xff] }
 0x13e   :  { %1498 = vmatmul.f32.gmra.mxu0 %v923_v8  ;;  %v292_v46 = vld [vmem:[%s5178_s7 + $0x40] sm:$0xff]  ;;  %v632_v8 = vld [vmem:[#allocation2 + $0x2d] sm:$0xff] }
 0x13f   :  { %v4251_v54 = vadd.f32 %v1451_v10, %v1366_v43  ;;  %1604 = vmatmul.f32.vlgmr.msra.gmra.mxu2 %v583_v30  ;;  %1690 = vmatmul.f32.vlgmr.msra.gmra.mxu3 %v629_v32  ;;  %v586_v10 = vld [vmem:[#allocation2 + $0x2c] sm:$0xff] }
 0x140   :  { %1965 = vperm.xlu2 %3812, %v292_v46  }
 0x141   :  { %1584 = vmatmul.f32.gmra.mxu1 %v924_v1  ;;  %v678_v1 = vld [vmem:[#allocation2 + $0x2e] sm:$0xff] }
 0x142   :  { %v1282_v50 = vpop.f32.mrf.mxu2  ;;  %v1368_v63 = vpop.f32.mrf.mxu3 }
 0x143   :  { %v1283_v0 = vadd.f32 %v1282_v50, %v1197_v60  ;;  %v1454_v41 = vpop.f32.mrf.mxu0  ;;  %v295_v60 = vld [vmem:[%s5178_s7 + $0x58] sm:$0xff] }
 0x144   :  { %v587_v50 = vld [vmem:[#allocation2 + $0x34] sm:$0xff] }
 0x145   :  { %v1369_v16 = vadd.f32 %v1368_v63, %v1283_v0  ;;  %v633_v63 = vld [vmem:[#allocation2 + $0x35] sm:$0xff] }
 0x146   :  { %1776 = vmatmul.f32.vlgmr.msra.gmra.mxu0 %v675_v42 }
 0x147   :  { %v4261_v47 = vadd.f32 %v1454_v41, %v1369_v16  ;;  %1607 = vmatmul.f32.gmra.mxu2 %v584_v20  ;;  %1693 = vmatmul.f32.gmra.mxu3 %v630_v52  ;;  %v1208_v41 = vpop.f32.mrf.mxu1  ;;  %v679_v16 = vld [vmem:[#allocation2 + $0x36] sm:$0xff] }
 0x148   :  { %1980 = vperm.xlu2 %3812, %v295_v60   ;;  %v1209_v62 = vadd.f32 %v1208_v41, %v4169_v9  ;;  %v2711_v9 = vld [vmem:[#allocation10 + $0x30] sm:$0xff] }
 0x149   :  { %2858 = vmatpush.msra.mxu1 %v2711_v9  ;;  %v637_v41 = vld [vmem:[#allocation2 + $0x55] sm:$0xff] }
 0x14a   :  { %v1285_v17 = vpop.f32.mrf.mxu2  ;;  %v1371_v18 = vpop.f32.mrf.mxu3 }
 0x14b   :  { %v1286_v22 = vadd.f32 %v1285_v17, %v1200_v14  ;;  %v1457_v26 = vpop.f32.mrf.mxu0  ;;  %v588_v14 = vld [vmem:[#allocation2 + $0x3c] sm:$0xff] }
 0x14c   :  { %v634_v17 = vld [vmem:[#allocation2 + $0x3d] sm:$0xff] }
 0x14d   :  { %v1372_v25 = vadd.f32 %v1371_v18, %v1286_v22 }
 0x14e   :  { %1779 = vmatmul.f32.gmra.mxu0 %v676_v28 }
 0x14f   :  { %v4271_v35 = vadd.f32 %v1457_v26, %v1372_v25  ;;  %1610 = vmatmul.f32.gmra.mxu2 %v585_v33  ;;  %1696 = vmatmul.f32.gmra.mxu3 %v631_v37  ;;  %v4290_v22 = vpop.f32.mrf.mxu1  ;;  %v680_v37 = vld [vmem:[#allocation2 + $0x3e] sm:$0xff]  ;;  %v301_v25 = vld [vmem:[%s5178_s7 + $0x88] sm:$0xff] }
 0x150   :  { %1995 = vperm.xlu2 %3812, %v298_v19   ;;  %v683_v19 = vld [vmem:[#allocation2 + $0x56] sm:$0xff] }
 0x152   :  { %v1288_v56 = vpop.f32.mrf.mxu2  ;;  %v1374_v61 = vpop.f32.mrf.mxu3 }
 0x153   :  { %v1289_v53 = vadd.f32 %v1288_v56, %v1203_v13  ;;  %v1460_v21 = vpop.f32.mrf.mxu0  ;;  %v589_v13 = vld [vmem:[#allocation2 + $0x44] sm:$0xff] }
 0x154   :  { %v635_v56 = vld [vmem:[#allocation2 + $0x45] sm:$0xff] }
 0x155   :  { %v1375_v49 = vadd.f32 %v1374_v61, %v1289_v53 }
 0x156   :  { %1782 = vmatmul.f32.gmra.mxu0 %v677_v45 }
 0x157   :  { %v4278_v30 = vadd.f32 %v1460_v21, %v1375_v49  ;;  %1613 = vmatmul.f32.gmra.mxu2 %v586_v10  ;;  %1699 = vmatmul.f32.gmra.mxu3 %v632_v8  ;;  %v4300_v21 = vpop.f32.mrf.mxu1  ;;  %v681_v8 = vld [vmem:[#allocation2 + $0x46] sm:$0xff] }
 0x158   :  { %2010 = vperm.xlu2 %3812, %v301_v25   ;;  %v304_v49 = vld [vmem:[%s5178_s7 + $0xa0] sm:$0xff] }
 0x159   :  { %v593_v25 = vld [vmem:[#allocation2 + $0x64] sm:$0xff] }
 0x15a   :  { %v1291_v12 = vpop.f32.mrf.mxu2  ;;  %v1377_v32 = vpop.f32.mrf.mxu3 }
 0x15b   :  { %v1292_v43 = vadd.f32 %v1291_v12, %v1206_v44  ;;  %v1463_v5 = vpop.f32.mrf.mxu0  ;;  %v636_v44 = vld [vmem:[#allocation2 + $0x4d] sm:$0xff] }
 0x15d   :  { %v1378_v0 = vadd.f32 %v1377_v32, %v1292_v43  ;;  %v2710_v43 = vld [vmem:[#allocation10 + $0x28] sm:$0xff] }
 0x15e   :  { %1785 = vmatmul.f32.gmra.mxu0 %v678_v1  ;;  %2859 = vmatpush.msra.mxu1 %v2710_v43  ;;  %v2707_v43 = vld [vmem:[#allocation10 + $0x10] sm:$0xff] }
 0x15f   :  { %v4284_v42 = vadd.f32 %v1463_v5, %v1378_v0  ;;  %1616 = vmatmul.f32.gmra.mxu2 %v587_v50  ;;  %1702 = vmatmul.f32.gmra.mxu3 %v633_v63  ;;  %v682_v63 = vld [vmem:[#allocation2 + $0x4e] sm:$0xff] }
 0x160   :  { %2025 = vperm.xlu2 %3812, %v304_v49   ;;  %v591_v0 = vld [vmem:[#allocation2 + $0x54] sm:$0xff]  ;;  %v594_v49 = vld [vmem:[#allocation2 + $0x6c] sm:$0xff] }
 0x162   :  { %v1294_v6 = vpop.f32.mrf.mxu2  ;;  %v1380_v24 = vpop.f32.mrf.mxu3 }
 0x163   :  { %v1295_v20 = vadd.f32 %v1294_v6, %v1209_v62  ;;  %v1466_v52 = vpop.f32.mrf.mxu0  ;;  %v2709_v6 = vld [vmem:[#allocation10 + $0x20] sm:$0xff] }
 0x164   :  { %2860 = vmatpush.msra.mxu1 %v2709_v6 }
 0x165   :  { %v1381_v18 = vadd.f32 %v1380_v24, %v1295_v20 }
 0x166   :  { %1788 = vmatmul.f32.gmra.mxu0 %v679_v16 }
 0x167   :  { %v4292_v26 = vadd.f32 %v1466_v52, %v1381_v18  ;;  %1619 = vmatmul.f32.gmra.mxu2 %v588_v14  ;;  %1705 = vmatmul.f32.gmra.mxu3 %v634_v17  ;;  %v592_v14 = vld [vmem:[#allocation2 + $0x5c] sm:$0xff] }
 0x16a   :  { %v1297_v28 = vpop.f32.mrf.mxu2  ;;  %v1383_v29 = vpop.f32.mrf.mxu3 }
 0x16b   :  { %v1298_v27 = vadd.f32 %v1297_v28, %v4119_v23  ;;  %v1469_v33 = vpop.f32.mrf.mxu0 }
 0x16d   :  { %v1384_v61 = vadd.f32 %v1383_v29, %v1298_v27 }
 0x16e   :  { %1791 = vmatmul.f32.gmra.mxu0 %v680_v37  ;;  %v684_v37 = vld [vmem:[#allocation2 + $0x5e] sm:$0xff] }
 0x16f   :  { %v4298_v53 = vadd.f32 %v1469_v33, %v1384_v61  ;;  %1622 = vmatmul.f32.gmra.mxu2 %v589_v13  ;;  %1708 = vmatmul.f32.gmra.mxu3 %v635_v56  ;;  %v2708_v56 = vld [vmem:[#allocation10 + $0x18] sm:$0xff] }
 0x170   :  { %2861 = vmatpush.msra.mxu1 %v2708_v56 }
 0x172   :  { %v1300_v45 = vpop.f32.mrf.mxu2  ;;  %v1386_v46 = vpop.f32.mrf.mxu3  ;;  %2862 = vmatpush.msra.mxu1 %v2707_v43  ;;  %v598_v43 = vld [vmem:[#allocation2 + $0x8c] sm:$0xff] }
 0x173   :  { %v1301_v23 = vadd.f32 %v1300_v45, %v4123_v34  ;;  %v1472_v10 = vpop.f32.mrf.mxu0  ;;  %v4308_v34 = vpop.f32.mrf.mxu1 }
 0x175   :  { %v1387_v12 = vadd.f32 %v1386_v46, %v1301_v23 }
 0x176   :  { %1794 = vmatmul.f32.gmra.mxu0 %v681_v8 }
 0x177   :  { %v4306_v32 = vadd.f32 %v1472_v10, %v1387_v12  ;;  %1625 = vmatmul.f32.gmra.mxu2 %v590_v57  ;;  %1711 = vmatmul.f32.gmra.mxu3 %v636_v44  ;;  %v640_v57 = vld [vmem:[#allocation2 + $0x6d] sm:$0xff] }
 0x17a   :  { %v1303_v5 = vpop.f32.mrf.mxu2  ;;  %v1389_v1 = vpop.f32.mrf.mxu3 }
 0x17b   :  { %v1304_v60 = vadd.f32 %v1303_v5, %v4127_v40  ;;  %v1475_v50 = vpop.f32.mrf.mxu0  ;;  %v638_v40 = vld [vmem:[#allocation2 + $0x5d] sm:$0xff]  ;;  %v4314_v17 = vpop.f32.mrf.mxu1 }
 0x17d   :  { %v1390_v36 = vadd.f32 %v1389_v1, %v1304_v60 }
 0x17e   :  { %1797 = vmatmul.f32.gmra.mxu0 %v682_v63 }
 0x17f   :  { %v4311_v62 = vadd.f32 %v1475_v50, %v1390_v36  ;;  %1628 = vmatmul.f32.gmra.mxu2 %v591_v0  ;;  %1714 = vmatmul.f32.gmra.mxu3 %v637_v41  ;;  %v595_v0 = vld [vmem:[#allocation2 + $0x74] sm:$0xff] }
 0x180   :  { %v641_v41 = vld [vmem:[#allocation2 + $0x75] sm:$0xff] }
 0x182   :  { %v1306_v24 = vpop.f32.mrf.mxu2  ;;  %v1392_v20 = vpop.f32.mrf.mxu3 }
 0x183   :  { %v1307_v52 = vadd.f32 %v1306_v24, %v4131_v51  ;;  %v1478_v16 = vpop.f32.mrf.mxu0  ;;  %v639_v51 = vld [vmem:[#allocation2 + $0x65] sm:$0xff]  ;;  %v4319_v61 = vpop.f32.mrf.mxu1 }
 0x185   :  { %v1393_v18 = vadd.f32 %v1392_v20, %v1307_v52 }
 0x186   :  { %1800 = vmatmul.f32.gmra.mxu0 %v683_v19 }
 0x187   :  { %v4316_v9 = vadd.f32 %v1478_v16, %v1393_v18  ;;  %1631 = vmatmul.f32.gmra.mxu2 %v592_v14  ;;  %1717 = vmatmul.f32.gmra.mxu3 %v638_v40  ;;  %v687_v14 = vld [vmem:[#allocation2 + $0x76] sm:$0xff] }
 0x188   :  { %v596_v40 = vld [vmem:[#allocation2 + $0x7c] sm:$0xff] }
 0x18a   :  { %v1309_v28 = vpop.f32.mrf.mxu2  ;;  %v1395_v29 = vpop.f32.mrf.mxu3 }
 0x18b   :  { %v1310_v27 = vadd.f32 %v1309_v28, %v4135_v58  ;;  %v1481_v33 = vpop.f32.mrf.mxu0  ;;  %v685_v58 = vld [vmem:[#allocation2 + $0x66] sm:$0xff]  ;;  %v4326_v5 = vpop.f32.mrf.mxu1  ;;  %v2706_v28 = vld [vmem:[#allocation10 + $0x8] sm:$0xff] }
 0x18c   :  { %2863 = vmatpush.msra.mxu1 %v2706_v28  ;;  %v101_v28 = vld [vmem:[#allocation5 + $0xc0] sm:$0xff] }
 0x18d   :  { %v1396_v13 = vadd.f32 %v1395_v29, %v1310_v27 }
 0x18e   :  { %1803 = vmatmul.f32.gmra.mxu0 %v684_v37 }
 0x18f   :  { %v4321_v45 = vadd.f32 %v1481_v33, %v1396_v13  ;;  %1634 = vmatmul.f32.gmra.mxu2 %v593_v25  ;;  %1720 = vmatmul.f32.gmra.mxu3 %v639_v51  ;;  %v688_v51 = vld [vmem:[#allocation2 + $0x7e] sm:$0xff] }
 0x190   :  { %v597_v13 = vld [vmem:[#allocation2 + $0x84] sm:$0xff] }
 0x192   :  { %v1312_v46 = vpop.f32.mrf.mxu2  ;;  %v1398_v23 = vpop.f32.mrf.mxu3 }
 0x193   :  { %v1313_v10 = vadd.f32 %v1312_v46, %v4139_v4  ;;  %v1484_v8 = vpop.f32.mrf.mxu0  ;;  %v686_v4 = vld [vmem:[#allocation2 + $0x6e] sm:$0xff]  ;;  %v4331_v52 = vpop.f32.mrf.mxu1 }
 0x195   :  { %v1399_v44 = vadd.f32 %v1398_v23, %v1313_v10  ;;  %v2705_v10 = vld [vmem:[#allocation10] sm:$0xff] }
 0x196   :  { %1806 = vmatmul.f32.gmra.mxu0 %v685_v58  ;;  %2864 = vmatpush.msra.mxu1 %v2705_v10 }
 0x197   :  { %v4324_v12 = vadd.f32 %v1484_v8, %v1399_v44  ;;  %1637 = vmatmul.f32.gmra.mxu2 %v594_v49  ;;  %1723 = vmatmul.f32.gmra.mxu3 %v640_v57  ;;  %v3817_v8 = vld [vmem:[#allocation3] sm:$0xff] }
 0x198   :  { %2865 = vmatmul.f32.vlgmr.msra.gmra.mxu1 %v3817_v8  ;;  %v689_v44 = vld [vmem:[#allocation2 + $0x86] sm:$0xff] }
 0x199   :  { %v2732_v8 = vld [vmem:[#allocation10 + $0xd8] sm:$0xff] }
 0x19a   :  { %v1315_v1 = vpop.f32.mrf.mxu2  ;;  %v1401_v60 = vpop.f32.mrf.mxu3 }
 0x19b   :  { %v1316_v50 = vadd.f32 %v1315_v1, %v4145_v15  ;;  %v1487_v63 = vpop.f32.mrf.mxu0  ;;  %v642_v15 = vld [vmem:[#allocation2 + $0x7d] sm:$0xff]  ;;  %v4337_v56 = vpop.f32.mrf.mxu1  ;;  %v644_v1 = vld [vmem:[#allocation2 + $0x8d] sm:$0xff] }
 0x19d   :  { %v1402_v36 = vadd.f32 %v1401_v60, %v1316_v50 }
 0x19e   :  { %1809 = vmatmul.f32.gmra.mxu0 %v686_v4  ;;  %v2736_v4 = vld [vmem:[#allocation10 + $0xf8] sm:$0xff] }
 0x19f   :  { %v4329_v6 = vadd.f32 %v1487_v63, %v1402_v36  ;;  %1640 = vmatmul.f32.gmra.mxu2 %v595_v0  ;;  %1726 = vmatmul.f32.gmra.mxu3 %v641_v41  ;;  %v2752_v0 = vld [vmem:[#allocation10 + $0x178] sm:$0xff]  ;;  %v2735_v41 = vld [vmem:[#allocation10 + $0xf0] sm:$0xff] }
 0x1a0   :  { %2935 = vmatpush.msrb.mxu2 %v2736_v4  ;;  %3021 = vmatpush.msrb.mxu3 %v2752_v0  ;;  %v2751_v36 = vld [vmem:[#allocation10 + $0x170] sm:$0xff] }
 0x1a1   :  { %v2747_v4 = vld [vmem:[#allocation10 + $0x150] sm:$0xff] }
 0x1a2   :  { %v1318_v24 = vpop.f32.mrf.mxu2  ;;  %v1404_v20 = vpop.f32.mrf.mxu3  ;;  %2936 = vmatpush.msrb.mxu2 %v2735_v41  ;;  %3022 = vmatpush.msrb.mxu3 %v2751_v36  ;;  %v2767_v0 = vld [vmem:[#allocation10 + $0x1f0] sm:$0xff] }
 0x1a3   :  { %v1319_v16 = vadd.f32 %v1318_v24, %v4151_v31  ;;  %v1490_v19 = vpop.f32.mrf.mxu0  ;;  %v643_v31 = vld [vmem:[#allocation2 + $0x85] sm:$0xff]  ;;  %v4342_v50 = vpop.f32.mrf.mxu1 }
 0x1a5   :  { %v1405_v18 = vadd.f32 %v1404_v20, %v1319_v16  ;;  %v599_v20 = vld [vmem:[#allocation2 + $0x94] sm:$0xff] }
 0x1a6   :  { %1812 = vmatmul.f32.gmra.mxu0 %v687_v14  ;;  %v645_v16 = vld [vmem:[#allocation2 + $0x95] sm:$0xff] }
 0x1a7   :  { %v4334_v29 = vadd.f32 %v1490_v19, %v1405_v18  ;;  %1643 = vmatmul.f32.gmra.mxu2 %v596_v40  ;;  %1729 = vmatmul.f32.gmra.mxu3 %v642_v15  ;;  %v690_v19 = vld [vmem:[#allocation2 + $0x8e] sm:$0xff] }
 0x1a8   :  { %v2734_v15 = vld [vmem:[#allocation10 + $0xe8] sm:$0xff] }
 0x1a9   :  { %v2750_v18 = vld [vmem:[#allocation10 + $0x168] sm:$0xff]  ;;  %2937 = vmatpush.msrb.mxu2 %v2734_v15  ;;  %v2745_v15 = vld [vmem:[#allocation10 + $0x140] sm:$0xff] }
 0x1aa   :  { %v1321_v27 = vpop.f32.mrf.mxu2  ;;  %v1407_v33 = vpop.f32.mrf.mxu3  ;;  %3023 = vmatpush.msrb.mxu3 %v2750_v18  ;;  %v2765_v18 = vld [vmem:[#allocation10 + $0x1e0] sm:$0xff] }
 0x1ab   :  { %v1322_v37 = vadd.f32 %v1321_v27, %v4157_v48  ;;  %v1493_v25 = vpop.f32.mrf.mxu0  ;;  %v127_v27 = vld [vmem:[#allocation5 + $0x188] sm:$0xff] }
 0x1ad   :  { %v1408_v46 = vadd.f32 %v1407_v33, %v1322_v37  ;;  %v178_v33 = vld [vmem:[#allocation5 + $0x250] sm:$0xff]  ;;  %v204_v37 = vld [vmem:[#allocation5 + $0x318] sm:$0xff] }
 0x1ae   :  { %1815 = vmatmul.f32.gmra.mxu0 %v688_v51  ;;  %v2733_v51 = vld [vmem:[#allocation10 + $0xe0] sm:$0xff] }
 0x1af   :  { %v4339_v23 = vadd.f32 %v1493_v25, %v1408_v46  ;;  %1646 = vmatmul.f32.gmra.mxu2 %v597_v13  ;;  %1732 = vmatmul.f32.gmra.mxu3 %v643_v31  ;;  %v2749_v13 = vld [vmem:[#allocation10 + $0x160] sm:$0xff]  ;;  %v152_v31 = vmax.f32 %v101_v28, %v127_v27  ;;  %v229_v46 = vmax.f32 %v178_v33, %v204_v37  ;;  %v4361_v27 = vld [vmem:[%s5174_s3] ss:$0 sm:$0xff] }
 0x1b0   :  { %2938 = vmatpush.msrb.mxu2 %v2733_v51  ;;  %3024 = vmatpush.msrb.mxu3 %v2749_v13  ;;  %v2728_v33 = vld [vmem:[#allocation10 + $0xb8] sm:$0xff]  ;;  %v1523_v37 = vadd.f32 %v4300_v21, %v4193_v11 }
 0x1b1   :  { %v2744_v51 = vld [vmem:[#allocation10 + $0x138] sm:$0xff] }
 0x1b2   :  { %v1324_v58 = vpop.f32.mrf.mxu2  ;;  %v1410_v49 = vpop.f32.mrf.mxu3  ;;  %2939 = vmatpush.msrb.mxu2 %v2732_v8  ;;  %v2764_v13 = vld [vmem:[#allocation10 + $0x1d8] sm:$0xff]  ;;  %v2727_v8 = vld [vmem:[#allocation10 + $0xb0] sm:$0xff] }
 0x1b3   :  { %v1325_v48 = vadd.f32 %v1324_v58, %v4163_v55  ;;  %v1496_v57 = vpop.f32.mrf.mxu0  ;;  %v2748_v58 = vld [vmem:[#allocation10 + $0x158] sm:$0xff] }
 0x1b4   :  { %3025 = vmatpush.msrb.mxu3 %v2748_v58  ;;  %v2743_v58 = vld [vmem:[#allocation10 + $0x130] sm:$0xff] }
 0x1b5   :  { %v1411_v60 = vadd.f32 %v1410_v49, %v1325_v48  ;;  %v254_v49 = vmax.f32 %v152_v31, %v229_v46  ;;  %v1520_v48 = vadd.f32 %v4290_v22, %v4183_v3  ;;  %v2730_v3 = vld [vmem:[#allocation10 + $0xc8] sm:$0xff]  ;;  %v692_v21 = vld [vmem:[#allocation2 + $0x9e] sm:$0xff] }
 0x1b6   :  { %1818 = vmatmul.f32.gmra.mxu0 %v689_v44  ;;  %v2784_v44 = vld [vmem:[#allocation10 + $0x278] sm:$0xff]  ;;  %3026 = vmatpush.msrb.mxu3 %v2747_v4  ;;  %v2746_v22 = vld [vmem:[#allocation10 + $0x148] sm:$0xff] }
 0x1b7   :  { %v4344_v63 = vadd.f32 %v1496_v57, %v1411_v60  ;;  %1649 = vmatmul.f32.gmra.mxu2 %v598_v43  ;;  %1735 = vmatmul.f32.gmra.mxu3 %v644_v1  ;;  %v4351_v57 = vpop.f32.mrf.mxu1  ;;  %279 = vst [vmem:[#allocation2 + $0xc0] sm:$0xff] %v254_v49  ;;  %v2731_v60 = vld [vmem:[#allocation10 + $0xd0] sm:$0xff]  ;;  %v601_v4 = vld [vmem:[#allocation2 + $0xa4] sm:$0xff] }
 0x1b8   :  { %3193 = vmatpush.msrb.mxu1 %v2784_v44  ;;  %2940 = vmatpush.msrb.mxu2 %v2731_v60  ;;  %v2763_v49 = vld [vmem:[#allocation10 + $0x1d0] sm:$0xff]  ;;  %v4369_v60 = vpop.permute.xlu0 %1925 }
 0x1b9   :  { %3027 = vmatpush.msrb.mxu3 %v2746_v22  ;;  %5203 = vst [vmem:[#allocation15_spill] sm:$0xff] %v4369_v60 }
 0x1ba   :  { %v1327_v24 = vpop.f32.mrf.mxu2  ;;  %v1413_v55 = vpop.f32.mrf.mxu3  ;;  %2941 = vmatpush.msrb.mxu2 %v2730_v3  ;;  %v2725_v3 = vld [vmem:[#allocation10 + $0xa0] sm:$0xff] }
 0x1bb   :  { %v1328_v14 = vadd.f32 %v1327_v24, %v4167_v7  ;;  %v1499_v40 = vpop.f32.mrf.mxu0  ;;  %v2768_v7 = vld [vmem:[#allocation10 + $0x1f8] sm:$0xff]  ;;  %3028 = vmatpush.msrb.mxu3 %v2745_v15  ;;  %v2761_v15 = vld [vmem:[#allocation10 + $0x1c0] sm:$0xff] }
 0x1bc   :  { %3107 = vmatpush.msrb.mxu0 %v2768_v7  ;;  %v600_v24 = vld [vmem:[#allocation2 + $0x9c] sm:$0xff] }
 0x1bd   :  { %v1414_v25 = vadd.f32 %v1413_v55, %v1328_v14  ;;  %v646_v55 = vld [vmem:[#allocation2 + $0x9d] sm:$0xff]  ;;  %3029 = vmatpush.msrb.mxu3 %v2744_v51 }
 0x1be   :  { %1821 = vmatmul.f32.gmra.mxu0 %v690_v19  ;;  %v4356_v14 = vld [vmem:[%s5173_s2] ss:$0 sm:$0xff]  ;;  %v605_v31 = vld [vmem:[#allocation2 + $0xc4] sm:$0x3] }
 0x1bf   :  { %v4347_v10 = vadd.f32 %v1499_v40, %v1414_v25  ;;  %1652 = vmatmul.f32.gmra.mxu2 %v599_v20  ;;  %1738 = vmatmul.f32.gmra.mxu3 %v645_v16  ;;  %v691_v20 = vld [vmem:[#allocation2 + $0x96] sm:$0xff]  ;;  %v2729_v40 = vld [vmem:[#allocation10 + $0xc0] sm:$0xff]  ;;  %628 = vst [vmem:[#allocation4 + $0x360] sm:$0x3] %v605_v31  ;;  %v2760_v31 = vld [vmem:[#allocation10 + $0x1b8] sm:$0xff] }
 0x1c0   :  { %3108 = vmatpush.msrb.mxu0 %v2767_v0  ;;  %v2766_v16 = vld [vmem:[#allocation10 + $0x1e8] sm:$0xff]  ;;  %2942 = vmatpush.msrb.mxu2 %v2729_v40  ;;  %v647_v0 = vld [vmem:[#allocation2 + $0xa5] sm:$0xff] }
 0x1c1   :  { %3030 = vmatpush.msrb.mxu3 %v2743_v58  ;;  %v697_v40 = vld [vmem:[#allocation2 + $0xc6] sm:$0x3] }
 0x1c2   :  { %v1605_v43 = vpop.f32.mrf.mxu2  ;;  %v1691_v1 = vpop.f32.mrf.mxu3  ;;  %3109 = vmatpush.msrb.mxu0 %v2766_v16  ;;  %2943 = vmatpush.msrb.mxu2 %v2728_v33  ;;  %720 = vst [vmem:[#allocation4 + $0x438] sm:$0x3] %v697_v40  ;;  %v2382_v40 = vld [vmem:[#allocation3 + $0xc4] sm:$0x3] }
 0x1c3   :  { %v1606_v41 = vadd.f32 %v1605_v43, %v1520_v48  ;;  %v1777_v36 = vpop.f32.mrf.mxu0  ;;  %v4366_v48 = vpop.f32.mrf.mxu1 }
 0x1c4   :  { %3110 = vmatpush.msrb.mxu0 %v2765_v18  ;;  %2944 = vmatpush.msrb.mxu2 %v2727_v8  ;;  %v2724_v18 = vld [vmem:[#allocation10 + $0x98] sm:$0xff] }
 0x1c5   :  { %v1692_v19 = vadd.f32 %v1691_v1, %v1606_v41  ;;  %v651_v1 = vld [vmem:[#allocation2 + $0xc5] sm:$0x3]  ;;  %v2726_v41 = vld [vmem:[#allocation10 + $0xa8] sm:$0xff] }
 0x1c6   :  { %1824 = vmatmul.f32.gmra.mxu0 %v691_v20  ;;  %674 = vst [vmem:[#allocation4 + $0x4a8] sm:$0x3] %v651_v1  ;;  %v2762_v20 = vld [vmem:[#allocation10 + $0x1c8] sm:$0xff]  ;;  %2945 = vmatpush.msrb.mxu2 %v2726_v41  ;;  %v2759_v1 = vld [vmem:[#allocation10 + $0x1b0] sm:$0xff] }
 0x1c7   :  { %v1778_v28 = vadd.f32 %v1777_v36, %v1692_v19  ;;  %1655 = vmatmul.f32.gmra.mxu2 %v600_v24  ;;  %1741 = vmatmul.f32.gmra.mxu3 %v646_v55  ;;  %v2742_v55 = vld [vmem:[#allocation10 + $0x128] sm:$0xff]  ;;  %v2741_v19 = vld [vmem:[#allocation10 + $0x120] sm:$0xff] }
 0x1c8   :  { %3111 = vmatpush.msrb.mxu0 %v2764_v13  ;;  %3031 = vmatpush.msrb.mxu3 %v2742_v55  ;;  %v2738_v41 = vld [vmem:[#allocation10 + $0x108] sm:$0xff] }
 0x1c9   :  { %v1850_v25 = vmul.f32 %v4356_v14, %v1778_v28  ;;  %v1526_v28 = vadd.f32 %v4308_v34, %v4205_v39  ;;  %2946 = vmatpush.msrb.mxu2 %v2725_v3  ;;  %v2739_v39 = vld [vmem:[#allocation10 + $0x110] sm:$0xff]  ;;  %v602_v34 = vld [vmem:[#allocation2 + $0xac] sm:$0xff] }
 0x1ca   :  { %v1608_v46 = vpop.f32.mrf.mxu2  ;;  %v1694_v7 = vpop.f32.mrf.mxu3  ;;  %3112 = vmatpush.msrb.mxu0 %v2763_v49  ;;  %3032 = vmatpush.msrb.mxu3 %v2741_v19  ;;  %v693_v49 = vld [vmem:[#allocation2 + $0xa6] sm:$0xff]  ;;  %v2758_v55 = vld [vmem:[#allocation10 + $0x1a8] sm:$0xff] }
 0x1cb   :  { %v1877_v44 = vadd.f32 %v4361_v27, %v1850_v25  ;;  %v1609_v43 = vadd.f32 %v1608_v46, %v1523_v37  ;;  %v1780_v11 = vpop.f32.mrf.mxu0  ;;  %v2783_v37 = vld [vmem:[#allocation10 + $0x270] sm:$0xff]  ;;  %v2740_v25 = vld [vmem:[#allocation10 + $0x118] sm:$0xff]  ;;  %2947 = vmatpush.msrb.mxu2 %v2724_v18  ;;  %v2757_v18 = vld [vmem:[#allocation10 + $0x1a0] sm:$0xff] }
 0x1cc   :  { %3113 = vmatpush.msrb.mxu0 %v2762_v20  ;;  %3194 = vmatpush.msrb.mxu1 %v2783_v37  ;;  %v2723_v46 = vld [vmem:[#allocation10 + $0x90] sm:$0xff]  ;;  %v2721_v20 = vld [vmem:[#allocation10 + $0x80] sm:$0xff]  ;;  %v4384_v37 = vld [vmem:[#allocation4 + $0x360] sm:$0x3] }
 0x1cd   :  { %v1900_v36 = vmax.f32 %v1877_v44, 0.0  ;;  %v1695_v24 = vadd.f32 %v1694_v7, %v1609_v43  ;;  %v648_v44 = vld [vmem:[#allocation2 + $0xad] sm:$0xff]  ;;  %3033 = vmatpush.msrb.mxu3 %v2740_v25  ;;  %v4376_v43 = vpop.f32.mrf.mxu1  ;;  %2948 = vmatpush.msrb.mxu2 %v2723_v46  ;;  %2405 = vst [vmem:[#allocation4 + $0x360] sm:$0x3] %v2382_v40  ;;  %v4387_v46 = vld [vmem:[#allocation4 + $0x4a8] sm:$0x3] }
 0x1ce   :  { %1827 = vmatmul.f32.gmra.mxu0 %v692_v21  ;;  %v2473_v25 = vld [vmem:[#allocation3 + $0xbe] sm:$0xff] }
 0x1cf   :  { %v2038_v22 = vmul.f32 %v4369_v60, %v1900_v36  ;;  %v1781_v16 = vadd.f32 %v1780_v11, %v1695_v24  ;;  %1658 = vmatmul.f32.gmra.mxu2 %v601_v4  ;;  %1744 = vmatmul.f32.gmra.mxu3 %v647_v0  ;;  %v2722_v4 = vld [vmem:[#allocation10 + $0x88] sm:$0xff]  ;;  %v4378_v0 = vpop.permute.xlu0 %1930  ;;  %2496 = vst [vmem:[#allocation4 + $0x150] sm:$0xff] %v2473_v25  ;;  %v4403_v40 = vld [vmem:[#allocation4 + $0x438] sm:$0x3]  ;;  %v650_v25 = vld [vmem:[#allocation2 + $0xbd] sm:$0xff] }
 0x1d0   :  { %3114 = vmatpush.msrb.mxu0 %v2761_v15  ;;  %5204 = vst [vmem:[#allocation16_spill] sm:$0xff] %v4378_v0  ;;  %3034 = vmatpush.msrb.mxu3 %v2739_v39  ;;  %v2428_v15 = vld [vmem:[#allocation3 + $0xc5] sm:$0x3] }
 0x1d1   :  { %2061 = vst [vmem:[#allocation3 + $0xb] sm:$0xff] %v2038_v22  ;;  %v1851_v33 = vmul.f32 %v4356_v14, %v1781_v16  ;;  %2949 = vmatpush.msrb.mxu2 %v2722_v4  ;;  %v2737_v22 = vld [vmem:[#allocation10 + $0x100] sm:$0xff]  ;;  %v1529_v16 = vadd.f32 %v4314_v17, %v4217_v59 }
 0x1d2   :  { %v1611_v51 = vpop.f32.mrf.mxu2  ;;  %v1697_v13 = vpop.f32.mrf.mxu3  ;;  %3115 = vmatpush.msrb.mxu0 %v2760_v31  ;;  %3035 = vmatpush.msrb.mxu3 %v2738_v41  ;;  %v694_v17 = vld [vmem:[#allocation2 + $0xae] sm:$0xff]  ;;  %2451 = vst [vmem:[#allocation4 + $0x4a8] sm:$0x3] %v2428_v15  ;;  %v2755_v41 = vld [vmem:[#allocation10 + $0x190] sm:$0xff] }
 0x1d3   :  { %v1878_v7 = vadd.f32 %v4361_v27, %v1851_v33  ;;  %v1612_v8 = vadd.f32 %v1611_v51, %v1526_v28  ;;  %v1783_v58 = vpop.f32.mrf.mxu0  ;;  %v2782_v51 = vld [vmem:[#allocation10 + $0x268] sm:$0xff]  ;;  %2950 = vmatpush.msrb.mxu2 %v2721_v20  ;;  %v2474_v20 = vld [vmem:[#allocation3 + $0xc6] sm:$0x3] }
 0x1d4   :  { %3116 = vmatpush.msrb.mxu0 %v2759_v1  ;;  %3195 = vmatpush.msrb.mxu1 %v2782_v51  ;;  %2497 = vst [vmem:[#allocation4 + $0x438] sm:$0x3] %v2474_v20 }
 0x1d5   :  { %v1901_v11 = vmax.f32 %v1878_v7, 0.0  ;;  %v1698_v21 = vadd.f32 %v1697_v13, %v1612_v8  ;;  %3036 = vmatpush.msrb.mxu3 %v2737_v22  ;;  %v4391_v8 = vpop.permute.xlu1 %1935 }
 0x1d6   :  { %1830 = vmatmul.f32.gmra.mxu0 %v693_v49  ;;  %5205 = vst [vmem:[#allocation17_spill] sm:$0xff] %v4391_v8  ;;  %v649_v49 = vld [vmem:[#allocation2 + $0xb5] sm:$0xff] }
 0x1d7   :  { %v2039_v36 = vmul.f32 %v4378_v0, %v1901_v11  ;;  %v1784_v24 = vadd.f32 %v1783_v58, %v1698_v21  ;;  %1661 = vmatmul.f32.gmra.mxu2 %v602_v34  ;;  %1747 = vmatmul.f32.gmra.mxu3 %v648_v44  ;;  %v603_v58 = vld [vmem:[#allocation2 + $0xb4] sm:$0xff]  ;;  %v2756_v11 = vld [vmem:[#allocation10 + $0x198] sm:$0xff]  ;;  %v4395_v21 = vpop.f32.mrf.mxu1 }
 0x1d8   :  { %v2085_v3 = vld [vmem:[#allocation3 + $0x8] sm:$0xff]  ;;  %3117 = vmatpush.msrb.mxu0 %v2758_v55 }
 0x1d9   :  { %2062 = vst [vmem:[#allocation3 + $0x13] sm:$0xff] %v2039_v36  ;;  %v1852_v19 = vmul.f32 %v4356_v14, %v1784_v24  ;;  %2868 = vmatmul.f32.gmra.mxu1 %v2085_v3  ;;  %v4389_v7 = vld [vmem:[#allocation3 + $0x9] sm:$0xff]  ;;  %v1532_v24 = vadd.f32 %v4319_v61, %v4229_v2  ;;  %v604_v61 = vld [vmem:[#allocation2 + $0xbc] sm:$0xff] }
 0x1da   :  { %v1614_v28 = vpop.f32.mrf.mxu2  ;;  %v1700_v33 = vpop.f32.mrf.mxu3  ;;  %3118 = vmatpush.msrb.mxu0 %v2757_v18  ;;  %v4393_v39 = vld [vmem:[#allocation3 + $0xa] sm:$0xff] }
 0x1db   :  { %v1879_v13 = vadd.f32 %v4361_v27, %v1852_v19  ;;  %v1615_v31 = vadd.f32 %v1614_v28, %v1529_v16  ;;  %v1786_v59 = vpop.f32.mrf.mxu0  ;;  %v2754_v3 = vld [vmem:[#allocation10 + $0x188] sm:$0xff] }
 0x1dc   :  { %3119 = vmatpush.msrb.mxu0 %v2756_v11  ;;  %v695_v2 = vld [vmem:[#allocation2 + $0xb6] sm:$0xff] }
 0x1dd   :  { %v1902_v34 = vmax.f32 %v1879_v13, 0.0  ;;  %v1701_v44 = vadd.f32 %v1700_v33, %v1615_v31  ;;  %v2268_v51 = vld [vmem:[#allocation3 + $0xb] sm:$0xff] }
 0x1de   :  { %1833 = vmatmul.f32.gmra.mxu0 %v694_v17  ;;  %2291 = vst [vmem:[#allocation4 + $0xa0] sm:$0xff] %v2268_v51 }
 0x1df   :  { %v2040_v1 = vmul.f32 %v4391_v8, %v1902_v34  ;;  %v1787_v4 = vadd.f32 %v1786_v59, %v1701_v44  ;;  %1664 = vmatmul.f32.gmra.mxu2 %v603_v58  ;;  %1750 = vmatmul.f32.gmra.mxu3 %v649_v49  ;;  %v2753_v59 = vld [vmem:[#allocation10 + $0x180] sm:$0xff]  ;;  %v4408_v58 = vpop.permute.xlu1 %1940 }
 0x1e0   :  { %v2086_v36 = vld [vmem:[#allocation3 + $0x10] sm:$0xff]  ;;  %3120 = vmatpush.msrb.mxu0 %v2755_v41  ;;  %5206 = vst [vmem:[#allocation18_spill] sm:$0xff] %v4408_v58 }
 0x1e1   :  { %2063 = vst [vmem:[#allocation3 + $0x1b] sm:$0xff] %v2040_v1  ;;  %v1853_v55 = vmul.f32 %v4356_v14, %v1787_v4  ;;  %2871 = vmatmul.f32.gmra.mxu1 %v2086_v36  ;;  %v4401_v22 = vld [vmem:[#allocation3 + $0x11] sm:$0xff]  ;;  %v1535_v1 = vadd.f32 %v4326_v5, %v4241_v38  ;;  %v4415_v4 = vpop.f32.mrf.mxu1  ;;  %v2781_v36 = vld [vmem:[#allocation10 + $0x260] sm:$0xff] }
 0x1e2   :  { %v1617_v16 = vpop.f32.mrf.mxu2  ;;  %v1703_v19 = vpop.f32.mrf.mxu3  ;;  %v4405_v15 = vld [vmem:[#allocation3 + $0x12] sm:$0xff]  ;;  %3121 = vmatpush.msrb.mxu0 %v2754_v3  ;;  %3196 = vmatpush.msrb.mxu1 %v2781_v36 }
 0x1e3   :  { %v1880_v18 = vadd.f32 %v4361_v27, %v1853_v55  ;;  %v1618_v28 = vadd.f32 %v1617_v16, %v1532_v24  ;;  %v1789_v33 = vpop.f32.mrf.mxu0  ;;  %v2269_v17 = vld [vmem:[#allocation3 + $0x13] sm:$0xff] }
 0x1e4   :  { %3122 = vmatpush.msrb.mxu0 %v2753_v59  ;;  %2292 = vst [vmem:[#allocation4 + $0x358] sm:$0xff] %v2269_v17  ;;  %v2314_v38 = vld [vmem:[#allocation3 + $0xc] sm:$0xff]  ;;  %v1538_v59 = vadd.f32 %v4331_v52, %v4251_v54 }
 0x1e5   :  { %v1903_v13 = vmax.f32 %v1880_v18, 0.0  ;;  %v1704_v31 = vadd.f32 %v1703_v19, %v1618_v28  ;;  %v696_v18 = vld [vmem:[#allocation2 + $0xbe] sm:$0xff]  ;;  %2337 = vst [vmem:[#allocation4 + $0x658] sm:$0xff] %v2314_v38 }
 0x1e6   :  { %1836 = vmatmul.f32.gmra.mxu0 %v695_v2 }
 0x1e7   :  { %v2041_v49 = vmul.f32 %v4408_v58, %v1903_v13  ;;  %v1790_v34 = vadd.f32 %v1789_v33, %v1704_v31  ;;  %1667 = vmatmul.f32.gmra.mxu2 %v604_v61  ;;  %1753 = vmatmul.f32.gmra.mxu3 %v650_v25  ;;  %v4421_v33 = vpop.permute.xlu2 %1945 }
 0x1e8   :  { %v2087_v44 = vld [vmem:[#allocation3 + $0x18] sm:$0xff]  ;;  %5207 = vst [vmem:[#allocation19_spill] sm:$0xff] %v4421_v33 }
 0x1e9   :  { %v4411_v11 = vld [vmem:[#allocation3 + $0x19] sm:$0xff]  ;;  %2064 = vst [vmem:[#allocation3 + $0x23] sm:$0xff] %v2041_v49  ;;  %v1854_v41 = vmul.f32 %v4356_v14, %v1790_v34  ;;  %2874 = vmatmul.f32.gmra.mxu1 %v2087_v44 }
 0x1ea   :  { %v4418_v24 = vld [vmem:[#allocation3 + $0x1a] sm:$0xff]  ;;  %v1620_v55 = vpop.f32.mrf.mxu2  ;;  %v1706_v20 = vpop.f32.mrf.mxu3 }
 0x1eb   :  { %v1881_v3 = vadd.f32 %v4361_v27, %v1854_v41  ;;  %v1621_v16 = vadd.f32 %v1620_v55, %v1535_v1  ;;  %v1792_v19 = vpop.f32.mrf.mxu0  ;;  %v2270_v28 = vld [vmem:[#allocation3 + $0x1b] sm:$0xff] }
 0x1ec   :  { %v2360_v61 = vld [vmem:[#allocation3 + $0x14] sm:$0xff]  ;;  %2293 = vst [vmem:[#allocation4 + $0x108] sm:$0xff] %v2270_v28 }
 0x1ed   :  { %v1904_v5 = vmax.f32 %v1881_v3, 0.0  ;;  %v1707_v2 = vadd.f32 %v1706_v20, %v1621_v16  ;;  %2383 = vst [vmem:[#allocation4 + $0x628] sm:$0xff] %v2360_v61  ;;  %v2780_v49 = vld [vmem:[#allocation10 + $0x258] sm:$0xff]  ;;  %v2499_v20 = vld [vmem:[#allocation4 + $0x148] sm:$0xff]  ;;  %v2500_v3 = vld [vmem:[#allocation4 + $0x598] sm:$0xff] }
 0x1ee   :  { %1839 = vmatmul.f32.gmra.mxu0 %v696_v18  ;;  %3197 = vmatpush.msrb.mxu1 %v2780_v49 }
 0x1ef   :  { %v2042_v25 = vmul.f32 %v4421_v33, %v1904_v5  ;;  %v1793_v51 = vadd.f32 %v1792_v19, %v1707_v2  ;;  %1670 = vmatmul.f32.gmra.mxu2 %v4384_v37  ;;  %1756 = vmatmul.f32.gmra.mxu3 %v4387_v46  ;;  %v4433_v37 = vpop.f32.mrf.mxu1  ;;  %v4436_v19 = vpop.permute.xlu2 %1950  ;;  %v1541_v2 = vadd.f32 %v4337_v56, %v4261_v47 }
 0x1f0   :  { %v2088_v13 = vld [vmem:[#allocation3 + $0x20] sm:$0xff]  ;;  %5208 = vst [vmem:[#allocation20_spill] sm:$0xff] %v4436_v19  ;;  %v4450_v56 = vpop.permute.xlu0 %1955 }
 0x1f1   :  { %v4426_v31 = vld [vmem:[#allocation3 + $0x21] sm:$0xff]  ;;  %2065 = vst [vmem:[#allocation3 + $0x2b] sm:$0xff] %v2042_v25  ;;  %v1855_v17 = vmul.f32 %v4356_v14, %v1793_v51  ;;  %2877 = vmatmul.f32.gmra.mxu1 %v2088_v13  ;;  %v2779_v25 = vld [vmem:[#allocation10 + $0x250] sm:$0xff] }
 0x1f2   :  { %v4431_v34 = vld [vmem:[#allocation3 + $0x22] sm:$0xff]  ;;  %v1623_v44 = vpop.f32.mrf.mxu2  ;;  %v1709_v1 = vpop.f32.mrf.mxu3  ;;  %3198 = vmatpush.msrb.mxu1 %v2779_v25  ;;  %5209 = vst [vmem:[#allocation21_spill] sm:$0xff] %v4450_v56 }
 0x1f3   :  { %v1882_v46 = vadd.f32 %v4361_v27, %v1855_v17  ;;  %v1624_v41 = vadd.f32 %v1623_v44, %v1538_v59  ;;  %v1795_v36 = vpop.f32.mrf.mxu0  ;;  %v2271_v55 = vld [vmem:[#allocation3 + $0x23] sm:$0xff] }
 0x1f4   :  { %v2361_v16 = vld [vmem:[#allocation3 + $0x1c] sm:$0xff]  ;;  %2294 = vst [vmem:[#allocation4 + $0x2c0] sm:$0xff] %v2271_v55 }
 0x1f5   :  { %v1905_v54 = vmax.f32 %v1882_v46, 0.0  ;;  %v1710_v52 = vadd.f32 %v1709_v1, %v1624_v41  ;;  %2384 = vst [vmem:[#allocation4 + $0x280] sm:$0xff] %v2361_v16  ;;  %v2406_v1 = vld [vmem:[#allocation3 + $0x15] sm:$0xff] }
 0x1f6   :  { %1842 = vmatmul.f32.gmra.mxu0 %v4403_v40  ;;  %2429 = vst [vmem:[#allocation4 + $0x248] sm:$0xff] %v2406_v1  ;;  %v1547_v1 = vadd.f32 %v4351_v57, %v4278_v30 }
 0x1f7   :  { %v2043_v18 = vmul.f32 %v4436_v19, %v1905_v54  ;;  %v1796_v28 = vadd.f32 %v1795_v36, %v1710_v52  ;;  %2951 = vmatmul.f32.vlgmr.msrb.gmra.mxu2 %v2499_v20  ;;  %3037 = vmatmul.f32.vlgmr.msrb.gmra.mxu3 %v2500_v3  ;;  %v4448_v46 = vpop.f32.mrf.mxu1  ;;  %v1544_v54 = vadd.f32 %v4342_v50, %v4271_v35  ;;  %v2843_v19 = vld [vmem:[#allocation10 + $0x450] sm:$0xff] }
 0x1f8   :  { %v2089_v38 = vld [vmem:[#allocation3 + $0x28] sm:$0xff] }
 0x1f9   :  { %v4440_v5 = vld [vmem:[#allocation3 + $0x29] sm:$0xff]  ;;  %2066 = vst [vmem:[#allocation3 + $0x33] sm:$0xff] %v2043_v18  ;;  %v1856_v61 = vmul.f32 %v4356_v14, %v1796_v28  ;;  %2880 = vmatmul.f32.gmra.mxu1 %v2089_v38 }
 0x1fa   :  { %v4445_v51 = vld [vmem:[#allocation3 + $0x2a] sm:$0xff]  ;;  %v1626_v40 = vpop.f32.mrf.mxu2  ;;  %v1712_v13 = vpop.f32.mrf.mxu3 }
 0x1fb   :  { %v1883_v59 = vadd.f32 %v4361_v27, %v1856_v61  ;;  %v1627_v17 = vadd.f32 %v1626_v40, %v1541_v2  ;;  %v1798_v49 = vpop.f32.mrf.mxu0  ;;  %v2272_v44 = vld [vmem:[#allocation3 + $0x2b] sm:$0xff] }
 0x1fc   :  { %2295 = vst [vmem:[#allocation4 + $0x310] sm:$0xff] %v2272_v44  ;;  %v2362_v61 = vld [vmem:[#allocation3 + $0x24] sm:$0xff] }
 0x1fd   :  { %v1906_v41 = vmax.f32 %v1883_v59, 0.0  ;;  %v1713_v47 = vadd.f32 %v1712_v13, %v1627_v17  ;;  %v2407_v13 = vld [vmem:[#allocation3 + $0x1d] sm:$0xff]  ;;  %v4464_v59 = vpop.permute.xlu1 %1960  ;;  %2385 = vst [vmem:[#allocation4 + $0x8] sm:$0xff] %v2362_v61  ;;  %v1550_v61 = vadd.f32 %v4366_v48, %v4284_v42  ;;  %v4496_v48 = vpop.permute.xlu0 %1970 }
 0x1fe   :  { %3123 = vmatmul.f32.vlgmr.msrb.gmra.mxu0 %v4393_v39  ;;  %5210 = vst [vmem:[#allocation22_spill] sm:$0xff] %v4464_v59 }
 0x1ff   :  { %v2044_v36 = vmul.f32 %v4450_v56, %v1906_v41  ;;  %v1799_v55 = vadd.f32 %v1798_v49, %v1713_v47  ;;  %2954 = vmatmul.f32.gmra.mxu2 %v4389_v7  ;;  %3040 = vmatmul.f32.gmra.mxu3 %v4393_v39  ;;  %v4467_v35 = vpop.f32.mrf.mxu1  ;;  %2430 = vst [vmem:[#allocation4 + $0x560] sm:$0xff] %v2407_v13  ;;  %v2778_v47 = vld [vmem:[#allocation10 + $0x248] sm:$0xff]  ;;  %v2777_v13 = vld [vmem:[#allocation10 + $0x240] sm:$0xff] }
 0x200   :  { %v2090_v20 = vld [vmem:[#allocation3 + $0x30] sm:$0xff]  ;;  %3199 = vmatpush.msrb.mxu1 %v2778_v47  ;;  %5212 = vst [vmem:[#allocation24_spill] sm:$0xff] %v4496_v48 }
 0x201   :  { %v4456_v3 = vld [vmem:[#allocation3 + $0x31] sm:$0xff]  ;;  %2067 = vst [vmem:[#allocation3 + $0x3b] sm:$0xff] %v2044_v36  ;;  %v1857_v52 = vmul.f32 %v4356_v14, %v1799_v55  ;;  %2883 = vmatmul.f32.gmra.mxu1 %v2090_v20 }
 0x202   :  { %v4461_v16 = vld [vmem:[#allocation3 + $0x32] sm:$0xff]  ;;  %v1629_v18 = vpop.f32.mrf.mxu2  ;;  %v1715_v28 = vpop.f32.mrf.mxu3  ;;  %3200 = vmatpush.msrb.mxu1 %v2777_v13 }
 0x203   :  { %v1884_v38 = vadd.f32 %v4361_v27, %v1857_v52  ;;  %v1630_v7 = vadd.f32 %v1629_v18, %v1544_v54  ;;  %v1801_v2 = vpop.f32.mrf.mxu0  ;;  %v2273_v39 = vld [vmem:[#allocation3 + $0x33] sm:$0xff] }
 0x204   :  { %2296 = vst [vmem:[#allocation4 + $0xc0] sm:$0xff] %v2273_v39 }
 0x205   :  { %v1907_v25 = vmax.f32 %v1884_v38, 0.0  ;;  %v1716_v40 = vadd.f32 %v1715_v28, %v1630_v7  ;;  %v2363_v38 = vld [vmem:[#allocation3 + $0x2c] sm:$0xff]  ;;  %v4480_v7 = vpop.permute.xlu2 %1965 }
 0x206   :  { %3126 = vmatmul.f32.gmra.mxu0 %v4405_v15  ;;  %5211 = vst [vmem:[#allocation23_spill] sm:$0xff] %v4480_v7 }
 0x207   :  { %v2045_v50 = vmul.f32 %v4464_v59, %v1907_v25  ;;  %v1802_v17 = vadd.f32 %v1801_v2, %v1716_v40  ;;  %2957 = vmatmul.f32.gmra.mxu2 %v4401_v22  ;;  %3043 = vmatmul.f32.gmra.mxu3 %v4405_v15  ;;  %2386 = vst [vmem:[#allocation4 + $0x3a8] sm:$0xff] %v2363_v38  ;;  %v4490_v25 = vpop.f32.mrf.mxu1 }
 0x208   :  { %v2091_v49 = vld [vmem:[#allocation3 + $0x38] sm:$0xff] }
 0x209   :  { %v4472_v44 = vld [vmem:[#allocation3 + $0x39] sm:$0xff]  ;;  %2068 = vst [vmem:[#allocation3 + $0x43] sm:$0xff] %v2045_v50  ;;  %v1858_v41 = vmul.f32 %v4356_v14, %v1802_v17  ;;  %2886 = vmatmul.f32.gmra.mxu1 %v2091_v49 }
 0x20a   :  { %v4477_v36 = vld [vmem:[#allocation3 + $0x3a] sm:$0xff]  ;;  %v1632_v55 = vpop.f32.mrf.mxu2  ;;  %v1718_v20 = vpop.f32.mrf.mxu3 }
 0x20b   :  { %v1885_v22 = vadd.f32 %v4361_v27, %v1858_v41  ;;  %v1633_v15 = vadd.f32 %v1632_v55, %v1547_v1  ;;  %v1804_v54 = vpop.f32.mrf.mxu0  ;;  %v2274_v52 = vld [vmem:[#allocation3 + $0x3b] sm:$0xff]  ;;  %v2408_v41 = vld [vmem:[#allocation3 + $0x25] sm:$0xff] }
 0x20c   :  { %2297 = vst [vmem:[#allocation4 + $0x300] sm:$0xff] %v2274_v52  ;;  %v1553_v52 = vadd.f32 %v4376_v43, %v4292_v26  ;;  %v4512_v26 = vpop.permute.xlu1 %1975  ;;  %v3827_v33 = vld [vmem:[#allocation4 + $0xc0] sm:$0xff] }
 0x20d   :  { %v1908_v18 = vmax.f32 %v1885_v22, 0.0  ;;  %v1719_v28 = vadd.f32 %v1718_v20, %v1633_v15  ;;  %2431 = vst [vmem:[#allocation4 + $0x378] sm:$0xff] %v2408_v41  ;;  %v1556_v41 = vadd.f32 %v4395_v21, %v4298_v53  ;;  %v2410_v53 = vld [vmem:[#allocation3 + $0x35] sm:$0xff]  ;;  %v4528_v21 = vpop.permute.xlu2 %1980 }
 0x20e   :  { %3129 = vmatmul.f32.gmra.mxu0 %v4418_v24  ;;  %5213 = vst [vmem:[#allocation25_spill] sm:$0xff] %v4512_v26 }
 0x20f   :  { %v2046_v30 = vmul.f32 %v4480_v7, %v1908_v18  ;;  %v1805_v57 = vadd.f32 %v1804_v54, %v1719_v28  ;;  %2960 = vmatmul.f32.gmra.mxu2 %v4411_v11  ;;  %3046 = vmatmul.f32.gmra.mxu3 %v4418_v24  ;;  %5214 = vst [vmem:[#allocation26_spill] sm:$0xff] %v4528_v21 }
 0x210   :  { %v2092_v2 = vld [vmem:[#allocation3 + $0x40] sm:$0xff]  ;;  %2433 = vst [vmem:[#allocation4 + $0x3b0] sm:$0xff] %v2410_v53 }
 0x211   :  { %v4486_v39 = vld [vmem:[#allocation3 + $0x41] sm:$0xff]  ;;  %2069 = vst [vmem:[#allocation3 + $0x4b] sm:$0xff] %v2046_v30  ;;  %v1859_v40 = vmul.f32 %v4356_v14, %v1805_v57  ;;  %2889 = vmatmul.f32.gmra.mxu1 %v2092_v2  ;;  %v4509_v57 = vpop.f32.mrf.mxu1 }
 0x212   :  { %v4493_v50 = vld [vmem:[#allocation3 + $0x42] sm:$0xff]  ;;  %v1635_v17 = vpop.f32.mrf.mxu2  ;;  %v1721_v11 = vpop.f32.mrf.mxu3 }
 0x213   :  { %v1886_v24 = vadd.f32 %v4361_v27, %v1859_v40  ;;  %v1636_v49 = vadd.f32 %v1635_v17, %v1550_v61  ;;  %v1807_v1 = vpop.f32.mrf.mxu0  ;;  %v2275_v47 = vld [vmem:[#allocation3 + $0x43] sm:$0xff]  ;;  %v2364_v61 = vld [vmem:[#allocation3 + $0x34] sm:$0xff] }
 0x214   :  { %2298 = vst [vmem:[#allocation4 + $0x418] sm:$0xff] %v2275_v47  ;;  %v2409_v40 = vld [vmem:[#allocation3 + $0x2d] sm:$0xff] }
 0x215   :  { %v1909_v55 = vmax.f32 %v1886_v24, 0.0  ;;  %v1722_v42 = vadd.f32 %v1721_v11, %v1636_v49  ;;  %2387 = vst [vmem:[#allocation4 + $0x460] sm:$0xff] %v2364_v61 }
 0x216   :  { %3132 = vmatmul.f32.gmra.mxu0 %v4431_v34  ;;  %2432 = vst [vmem:[#allocation4 + $0xf0] sm:$0xff] %v2409_v40  ;;  %v1559_v40 = vadd.f32 %v4415_v4, %v4306_v32 }
 0x217   :  { %v2047_v20 = vmul.f32 %v4496_v48, %v1909_v55  ;;  %v1808_v22 = vadd.f32 %v1807_v1, %v1722_v42  ;;  %2963 = vmatmul.f32.gmra.mxu2 %v4426_v31  ;;  %3049 = vmatmul.f32.gmra.mxu3 %v4431_v34  ;;  %v2776_v55 = vld [vmem:[#allocation10 + $0x238] sm:$0xff] }
 0x218   :  { %v2093_v15 = vld [vmem:[#allocation3 + $0x48] sm:$0xff]  ;;  %3201 = vmatpush.msrb.mxu1 %v2776_v55 }
 0x219   :  { %v4502_v54 = vld [vmem:[#allocation3 + $0x49] sm:$0xff]  ;;  %2070 = vst [vmem:[#allocation3 + $0x53] sm:$0xff] %v2047_v20  ;;  %v1860_v18 = vmul.f32 %v4356_v14, %v1808_v22  ;;  %2892 = vmatmul.f32.gmra.mxu1 %v2093_v15 }
 0x21a   :  { %v4507_v28 = vld [vmem:[#allocation3 + $0x4a] sm:$0xff]  ;;  %v1638_v38 = vpop.f32.mrf.mxu2  ;;  %v1724_v30 = vpop.f32.mrf.mxu3 }
 0x21b   :  { %v1887_v31 = vadd.f32 %v4361_v27, %v1860_v18  ;;  %v1639_v34 = vadd.f32 %v1638_v38, %v1553_v52  ;;  %v1810_v2 = vpop.f32.mrf.mxu0  ;;  %v2276_v11 = vld [vmem:[#allocation3 + $0x4b] sm:$0xff]  ;;  %v2365_v52 = vld [vmem:[#allocation3 + $0x3c] sm:$0xff]  ;;  %v4526_v18 = vpop.f32.mrf.mxu1 }
 0x21c   :  { %2299 = vst [vmem:[#allocation4 + $0x160] sm:$0xff] %v2276_v11 }
 0x21d   :  { %v1910_v13 = vmax.f32 %v1887_v31, 0.0  ;;  %v1725_v17 = vadd.f32 %v1724_v30, %v1639_v34  ;;  %2388 = vst [vmem:[#allocation4 + $0x368] sm:$0xff] %v2365_v52  ;;  %v1562_v52 = vadd.f32 %v4433_v37, %v4311_v62 }
 0x21e   :  { %3135 = vmatmul.f32.gmra.mxu0 %v4445_v51 }
 0x21f   :  { %v2048_v43 = vmul.f32 %v4512_v26, %v1910_v13  ;;  %v1811_v24 = vadd.f32 %v1810_v2, %v1725_v17  ;;  %2966 = vmatmul.f32.gmra.mxu2 %v4440_v5  ;;  %3052 = vmatmul.f32.gmra.mxu3 %v4445_v51  ;;  %v2775_v17 = vld [vmem:[#allocation10 + $0x230] sm:$0xff] }
 0x220   :  { %v2094_v49 = vld [vmem:[#allocation3 + $0x50] sm:$0xff]  ;;  %3202 = vmatpush.msrb.mxu1 %v2775_v17 }
 0x221   :  { %v4518_v1 = vld [vmem:[#allocation3 + $0x51] sm:$0xff]  ;;  %2071 = vst [vmem:[#allocation3 + $0x5b] sm:$0xff] %v2048_v43  ;;  %v1861_v47 = vmul.f32 %v4356_v14, %v1811_v24  ;;  %2895 = vmatmul.f32.gmra.mxu1 %v2094_v49 }
 0x222   :  { %v4523_v42 = vld [vmem:[#allocation3 + $0x52] sm:$0xff]  ;;  %v1641_v20 = vpop.f32.mrf.mxu2  ;;  %v1727_v22 = vpop.f32.mrf.mxu3 }
 0x223   :  { %v1888_v5 = vadd.f32 %v4361_v27, %v1861_v47  ;;  %v1642_v51 = vadd.f32 %v1641_v20, %v1556_v41  ;;  %v1813_v15 = vpop.f32.mrf.mxu0  ;;  %v2277_v41 = vld [vmem:[#allocation3 + $0x53] sm:$0xff]  ;;  %v2366_v20 = vld [vmem:[#allocation3 + $0x44] sm:$0xff]  ;;  %v4545_v32 = vpop.f32.mrf.mxu1 }
 0x224   :  { %2300 = vst [vmem:[#allocation4 + $0x200] sm:$0xff] %v2277_v41  ;;  %v4809_v26 = vld [vmem:[#allocation3 + $0x2e] sm:$0xff] }
 0x225   :  { %v1911_v38 = vmax.f32 %v1888_v5, 0.0  ;;  %v1728_v30 = vadd.f32 %v1727_v22, %v1642_v51  ;;  %v4542_v22 = vpop.permute.xlu0 %1985  ;;  %2389 = vst [vmem:[#allocation4 + $0x5c8] sm:$0xff] %v2366_v20 }
 0x226   :  { %3138 = vmatmul.f32.gmra.mxu0 %v4461_v16  ;;  %5215 = vst [vmem:[#allocation27_spill] sm:$0xff] %v4542_v22 }
 0x227   :  { %v2049_v31 = vmul.f32 %v4528_v21, %v1911_v38  ;;  %v1814_v34 = vadd.f32 %v1813_v15, %v1728_v30  ;;  %2969 = vmatmul.f32.gmra.mxu2 %v4456_v3  ;;  %3055 = vmatmul.f32.gmra.mxu3 %v4461_v16 }
 0x228   :  { %v2095_v2 = vld [vmem:[#allocation3 + $0x58] sm:$0xff] }
 0x229   :  { %v4534_v61 = vld [vmem:[#allocation3 + $0x59] sm:$0xff]  ;;  %2072 = vst [vmem:[#allocation3 + $0x63] sm:$0xff] %v2049_v31  ;;  %v1862_v13 = vmul.f32 %v4356_v14, %v1814_v34  ;;  %2898 = vmatmul.f32.gmra.mxu1 %v2095_v2 }
 0x22a   :  { %v4539_v11 = vld [vmem:[#allocation3 + $0x5a] sm:$0xff]  ;;  %v1644_v43 = vpop.f32.mrf.mxu2  ;;  %v1730_v24 = vpop.f32.mrf.mxu3 }
 0x22b   :  { %v1889_v3 = vadd.f32 %v4361_v27, %v1862_v13  ;;  %v1645_v16 = vadd.f32 %v1644_v43, %v1559_v40  ;;  %v1816_v49 = vpop.f32.mrf.mxu0  ;;  %v2278_v40 = vld [vmem:[#allocation3 + $0x5b] sm:$0xff]  ;;  %v4558_v43 = vpop.permute.xlu1 %1990 }
 0x22c   :  { %5216 = vst [vmem:[#allocation28_spill] sm:$0xff] %v4558_v43 }
 0x22d   :  { %v1912_v47 = vmax.f32 %v1889_v3, 0.0  ;;  %v1731_v55 = vadd.f32 %v1730_v24, %v1645_v16  ;;  %2301 = vst [vmem:[#allocation4 + $0x640] sm:$0xff] %v2278_v40  ;;  %v1565_v24 = vadd.f32 %v4448_v46, %v4316_v9  ;;  %v4568_v3 = vpop.f32.mrf.mxu1  ;;  %v4573_v16 = vld [vmem:[%s5173_s2] ss:$0 sm:$0xff] }
 0x22e   :  { %3141 = vmatmul.f32.gmra.mxu0 %v4477_v36  ;;  %v4581_v9 = vld [vmem:[%s5174_s3] ss:$0 sm:$0xff] }
 0x22f   :  { %v2050_v4 = vmul.f32 %v4542_v22, %v1912_v47  ;;  %v1817_v5 = vadd.f32 %v1816_v49, %v1731_v55  ;;  %2972 = vmatmul.f32.gmra.mxu2 %v4472_v44  ;;  %3058 = vmatmul.f32.gmra.mxu3 %v4477_v36  ;;  %v2411_v36 = vld [vmem:[#allocation3 + $0x3d] sm:$0xff] }
 0x230   :  { %v2096_v51 = vld [vmem:[#allocation3 + $0x60] sm:$0xff]  ;;  %2434 = vst [vmem:[#allocation4 + $0x518] sm:$0xff] %v2411_v36  ;;  %v1568_v36 = vadd.f32 %v4467_v35, %v4321_v45  ;;  %v2413_v45 = vld [vmem:[#allocation3 + $0x4d] sm:$0xff]  ;;  %v4600_v35 = vpop.permute.xlu0 %2000 }
 0x231   :  { %v4550_v15 = vld [vmem:[#allocation3 + $0x61] sm:$0xff]  ;;  %2073 = vst [vmem:[#allocation3 + $0x6b] sm:$0xff] %v2050_v4  ;;  %v1863_v38 = vmul.f32 %v4356_v14, %v1817_v5  ;;  %2901 = vmatmul.f32.gmra.mxu1 %v2096_v51  ;;  %v2367_v4 = vld [vmem:[#allocation3 + $0x4c] sm:$0xff] }
 0x232   :  { %v4555_v30 = vld [vmem:[#allocation3 + $0x62] sm:$0xff]  ;;  %v1647_v53 = vpop.f32.mrf.mxu2  ;;  %v1733_v31 = vpop.f32.mrf.mxu3  ;;  %2390 = vst [vmem:[#allocation4 + $0x4d0] sm:$0xff] %v2367_v4  ;;  %v1571_v4 = vadd.f32 %v4490_v25, %v4324_v12 }
 0x233   :  { %v1890_v34 = vadd.f32 %v4361_v27, %v1863_v38  ;;  %v1648_v44 = vadd.f32 %v1647_v53, %v1562_v52  ;;  %v1819_v2 = vpop.f32.mrf.mxu0  ;;  %v2412_v5 = vld [vmem:[#allocation3 + $0x45] sm:$0xff]  ;;  %v4584_v53 = vpop.permute.xlu2 %1995  ;;  %5218 = vst [vmem:[#allocation30_spill] sm:$0xff] %v4600_v35  ;;  %v2369_v12 = vld [vmem:[#allocation3 + $0x5c] sm:$0xff] }
 0x234   :  { %v2279_v38 = vld [vmem:[#allocation3 + $0x63] sm:$0xff]  ;;  %5217 = vst [vmem:[#allocation29_spill] sm:$0xff] %v4584_v53  ;;  %v4616_v25 = vpop.permute.xlu1 %2005 }
 0x235   :  { %v1913_v13 = vmax.f32 %v1890_v34, 0.0  ;;  %v1734_v17 = vadd.f32 %v1733_v31, %v1648_v44  ;;  %2435 = vst [vmem:[#allocation4 + $0x2e0] sm:$0xff] %v2412_v5 }
 0x236   :  { %3144 = vmatmul.f32.gmra.mxu0 %v4493_v50  ;;  %2302 = vst [vmem:[#allocation4 + $0x2f8] sm:$0xff] %v2279_v38 }
 0x237   :  { %v2051_v62 = vmul.f32 %v4558_v43, %v1913_v13  ;;  %v1820_v14 = vadd.f32 %v1819_v2, %v1734_v17  ;;  %2975 = vmatmul.f32.gmra.mxu2 %v4486_v39  ;;  %3061 = vmatmul.f32.gmra.mxu3 %v4493_v50  ;;  %v2774_v39 = vld [vmem:[#allocation10 + $0x228] sm:$0xff]  ;;  %v2773_v13 = vld [vmem:[#allocation10 + $0x220] sm:$0xff]  ;;  %2436 = vst [vmem:[#allocation4 + $0x550] sm:$0xff] %v2413_v45 }
 0x238   :  { %v2097_v27 = vld [vmem:[#allocation3 + $0x68] sm:$0xff]  ;;  %3203 = vmatpush.msrb.mxu1 %v2774_v39  ;;  %5219 = vst [vmem:[#allocation31_spill] sm:$0xff] %v4616_v25 }
 0x239   :  { %v4564_v37 = vld [vmem:[#allocation3 + $0x69] sm:$0xff]  ;;  %2074 = vst [vmem:[#allocation3 + $0x73] sm:$0xff] %v2051_v62  ;;  %v1864_v49 = vmul.f32 %v4573_v16, %v1820_v14  ;;  %2904 = vmatmul.f32.gmra.mxu1 %v2097_v27 }
 0x23a   :  { %v4576_v50 = vld [vmem:[#allocation3 + $0x6a] sm:$0xff]  ;;  %v1650_v41 = vpop.f32.mrf.mxu2  ;;  %v1736_v47 = vpop.f32.mrf.mxu3  ;;  %3204 = vmatpush.msrb.mxu1 %v2773_v13  ;;  %2392 = vst [vmem:[#allocation4 + $0x4e8] sm:$0xff] %v2369_v12 }
 0x23b   :  { %v1891_v46 = vadd.f32 %v4581_v9, %v1864_v49  ;;  %v1651_v55 = vadd.f32 %v1650_v41, %v1565_v24  ;;  %v1822_v20 = vpop.f32.mrf.mxu0  ;;  %v4598_v24 = vpop.f32.mrf.mxu1  ;;  %v2368_v49 = vld [vmem:[#allocation3 + $0x54] sm:$0xff]  ;;  %v2822_v43 = vld [vmem:[#allocation10 + $0x3a8] sm:$0xff] }
 0x23c   :  { %2391 = vst [vmem:[#allocation4 + $0x458] sm:$0xff] %v2368_v49 }
 0x23d   :  { %v1914_v51 = vmax.f32 %v1891_v46, 0.0  ;;  %v1737_v52 = vadd.f32 %v1736_v47, %v1651_v55 }
 0x23e   :  { %3147 = vmatmul.f32.gmra.mxu0 %v4507_v28 }
 0x23f   :  { %v2052_v31 = vmul.f32 %v4584_v53, %v1914_v51  ;;  %v1823_v34 = vadd.f32 %v1822_v20, %v1737_v52  ;;  %2978 = vmatmul.f32.gmra.mxu2 %v4502_v54  ;;  %3064 = vmatmul.f32.gmra.mxu3 %v4507_v28  ;;  %v2772_v51 = vld [vmem:[#allocation10 + $0x218] sm:$0xff] }
 0x240   :  { %v2098_v44 = vld [vmem:[#allocation3 + $0x70] sm:$0xff]  ;;  %3205 = vmatpush.msrb.mxu1 %v2772_v51  ;;  %v4630_v51 = vpop.permute.xlu2 %2010 }
 0x241   :  { %v4590_v2 = vld [vmem:[#allocation3 + $0x71] sm:$0xff]  ;;  %2075 = vst [vmem:[#allocation3 + $0x7b] sm:$0xff] %v2052_v31  ;;  %v1865_v40 = vmul.f32 %v4573_v16, %v1823_v34  ;;  %2907 = vmatmul.f32.gmra.mxu1 %v2098_v44 }
 0x242   :  { %v4595_v17 = vld [vmem:[#allocation3 + $0x72] sm:$0xff]  ;;  %v1653_v62 = vpop.f32.mrf.mxu2  ;;  %v1739_v14 = vpop.f32.mrf.mxu3  ;;  %5220 = vst [vmem:[#allocation32_spill] sm:$0xff] %v4630_v51 }
 0x243   :  { %v1892_v54 = vadd.f32 %v4581_v9, %v1865_v40  ;;  %v1654_v28 = vadd.f32 %v1653_v62, %v1568_v36  ;;  %v1825_v27 = vpop.f32.mrf.mxu0  ;;  %v2280_v44 = vld [vmem:[#allocation3 + $0x6b] sm:$0xff]  ;;  %v4614_v36 = vpop.f32.mrf.mxu1 }
 0x244   :  { %2303 = vst [vmem:[#allocation4 + $0x510] sm:$0xff] %v2280_v44  ;;  %v2771_v44 = vld [vmem:[#allocation10 + $0x210] sm:$0xff] }
 0x245   :  { %v1915_v39 = vmax.f32 %v1892_v54, 0.0  ;;  %v1740_v41 = vadd.f32 %v1739_v14, %v1654_v28  ;;  %3206 = vmatpush.msrb.mxu1 %v2771_v44  ;;  %v4861_v0 = vld [vmem:[#allocation3 + $0x6e] sm:$0xff] }
 0x246   :  { %3150 = vmatmul.f32.gmra.mxu0 %v4523_v42 }
 0x247   :  { %v2053_v47 = vmul.f32 %v4600_v35, %v1915_v39  ;;  %v1826_v46 = vadd.f32 %v1825_v27, %v1740_v41  ;;  %2981 = vmatmul.f32.gmra.mxu2 %v4518_v1  ;;  %3067 = vmatmul.f32.gmra.mxu3 %v4523_v42  ;;  %v1574_v27 = vadd.f32 %v4509_v57, %v4329_v6 }
 0x248   :  { %v2099_v55 = vld [vmem:[#allocation3 + $0x78] sm:$0xff] }
 0x249   :  { %v4606_v20 = vld [vmem:[#allocation3 + $0x79] sm:$0xff]  ;;  %2076 = vst [vmem:[#allocation3 + $0x83] sm:$0xff] %v2053_v47  ;;  %v1866_v5 = vmul.f32 %v4573_v16, %v1826_v46  ;;  %2910 = vmatmul.f32.gmra.mxu1 %v2099_v55 }
 0x24a   :  { %v4611_v52 = vld [vmem:[#allocation3 + $0x7a] sm:$0xff]  ;;  %v1656_v38 = vpop.f32.mrf.mxu2  ;;  %v1742_v31 = vpop.f32.mrf.mxu3 }
 0x24b   :  { %v1893_v1 = vadd.f32 %v4581_v9, %v1866_v5  ;;  %v1657_v42 = vadd.f32 %v1656_v38, %v1571_v4  ;;  %v1828_v34 = vpop.f32.mrf.mxu0  ;;  %v2281_v55 = vld [vmem:[#allocation3 + $0x73] sm:$0xff] }
 0x24c   :  { %2304 = vst [vmem:[#allocation4 + $0x3c0] sm:$0xff] %v2281_v55 }
 0x24d   :  { %v1916_v40 = vmax.f32 %v1893_v1, 0.0  ;;  %v1743_v13 = vadd.f32 %v1742_v31, %v1657_v42  ;;  %v1577_v42 = vadd.f32 %v4526_v18, %v4334_v29  ;;  %v4648_v29 = vld [vmem:[#allocation3 + $0x7b] sm:$0xff]  ;;  %v4650_v18 = vpop.permute.xlu0 %2015 }
 0x24e   :  { %3153 = vmatmul.f32.gmra.mxu0 %v4539_v11  ;;  %5221 = vst [vmem:[#allocation33_spill] sm:$0xff] %v4650_v18 }
 0x24f   :  { %v2054_v62 = vmul.f32 %v4616_v25, %v1916_v40  ;;  %v1829_v14 = vadd.f32 %v1828_v34, %v1743_v13  ;;  %2984 = vmatmul.f32.gmra.mxu2 %v4534_v61  ;;  %3070 = vmatmul.f32.gmra.mxu3 %v4539_v11  ;;  %v2414_v11 = vld [vmem:[#allocation3 + $0x55] sm:$0xff]  ;;  %v2825_v25 = vld [vmem:[#allocation10 + $0x3c0] sm:$0xff] }
 0x250   :  { %v2100_v54 = vld [vmem:[#allocation3 + $0x80] sm:$0xff]  ;;  %2437 = vst [vmem:[#allocation4 + $0x38] sm:$0xff] %v2414_v11  ;;  %v1580_v11 = vadd.f32 %v4545_v32, %v4339_v23  ;;  %v4670_v23 = vpop.permute.xlu1 %2020 }
 0x251   :  { %v4622_v28 = vld [vmem:[#allocation3 + $0x81] sm:$0xff]  ;;  %2077 = vst [vmem:[#allocation3 + $0x8b] sm:$0xff] %v2054_v62  ;;  %v1867_v49 = vmul.f32 %v4573_v16, %v1829_v14  ;;  %2913 = vmatmul.f32.gmra.mxu1 %v2100_v54 }
 0x252   :  { %v4627_v39 = vld [vmem:[#allocation3 + $0x82] sm:$0xff]  ;;  %v1659_v41 = vpop.f32.mrf.mxu2  ;;  %v1745_v45 = vpop.f32.mrf.mxu3  ;;  %5222 = vst [vmem:[#allocation34_spill] sm:$0xff] %v4670_v23 }
 0x253   :  { %v1894_v47 = vadd.f32 %v4581_v9, %v1867_v49  ;;  %v1660_v61 = vadd.f32 %v1659_v41, %v1574_v27  ;;  %v1831_v46 = vpop.f32.mrf.mxu0  ;;  %v2370_v14 = vld [vmem:[#allocation3 + $0x64] sm:$0xff] }
 0x254   :  { %v4646_v54 = vld [vmem:[#allocation3 + $0x5d] sm:$0xff]  ;;  %2393 = vst [vmem:[#allocation4 + $0x3d8] sm:$0xff] %v2370_v14 }
 0x255   :  { %v1917_v4 = vmax.f32 %v1894_v47, 0.0  ;;  %v1746_v5 = vadd.f32 %v1745_v45, %v1660_v61  ;;  %v2816_v14 = vld [vmem:[#allocation10 + $0x378] sm:$0xff] }
 0x256   :  { %3156 = vmatmul.f32.gmra.mxu0 %v4555_v30  ;;  %v4633_v6 = vpop.f32.mrf.mxu1  ;;  %3365 = vmatpush.msra.mxu3 %v2816_v14  ;;  %v1586_v14 = vadd.f32 %v4598_v24, %v4347_v10  ;;  %v2815_v10 = vld [vmem:[#allocation10 + $0x370] sm:$0xff]  ;;  %v4710_v24 = vpop.permute.xlu0 %2030 }
 0x257   :  { %v2055_v57 = vmul.f32 %v4630_v51, %v1917_v4  ;;  %v1832_v38 = vadd.f32 %v1831_v46, %v1746_v5  ;;  %2987 = vmatmul.f32.gmra.mxu2 %v4550_v15  ;;  %3073 = vmatmul.f32.gmra.mxu3 %v4555_v30  ;;  %v2770_v4 = vld [vmem:[#allocation10 + $0x208] sm:$0xff]  ;;  %5224 = vst [vmem:[#allocation36_spill] sm:$0xff] %v4710_v24 }
 0x258   :  { %v2101_v31 = vld [vmem:[#allocation3 + $0x88] sm:$0xff]  ;;  %3207 = vmatpush.msrb.mxu1 %v2770_v4  ;;  %3366 = vmatpush.msra.mxu3 %v2815_v10 }
 0x259   :  { %v4638_v1 = vld [vmem:[#allocation3 + $0x89] sm:$0xff]  ;;  %2078 = vst [vmem:[#allocation3 + $0x93] sm:$0xff] %v2055_v57  ;;  %v1868_v34 = vmul.f32 %v4573_v16, %v1832_v38  ;;  %2916 = vmatmul.f32.gmra.mxu1 %v2101_v31 }
 0x25a   :  { %v4643_v40 = vld [vmem:[#allocation3 + $0x8a] sm:$0xff]  ;;  %v1662_v13 = vpop.f32.mrf.mxu2  ;;  %v1748_v12 = vpop.f32.mrf.mxu3 }
 0x25b   :  { %v1895_v15 = vadd.f32 %v4581_v9, %v1868_v34  ;;  %v1663_v30 = vadd.f32 %v1662_v13, %v1577_v42  ;;  %v1834_v62 = vpop.f32.mrf.mxu0  ;;  %v4666_v42 = vld [vmem:[#allocation3 + $0x6c] sm:$0xff] }
 0x25c   :  { %v4668_v13 = vld [vmem:[#allocation3 + $0x65] sm:$0xff] }
 0x25d   :  { %v1918_v27 = vmax.f32 %v1895_v15, 0.0  ;;  %v1749_v49 = vadd.f32 %v1748_v12, %v1663_v30  ;;  %v2800_v30 = vld [vmem:[#allocation10 + $0x2f8] sm:$0xff] }
 0x25e   :  { %3159 = vmatmul.f32.gmra.mxu0 %v4576_v50  ;;  %v4653_v41 = vpop.f32.mrf.mxu1  ;;  %3279 = vmatpush.msra.mxu2 %v2800_v30 }
 0x25f   :  { %v2056_v45 = vmul.f32 %v4650_v18, %v1918_v27  ;;  %v1835_v47 = vadd.f32 %v1834_v62, %v1749_v49  ;;  %2990 = vmatmul.f32.gmra.mxu2 %v4564_v37  ;;  %3076 = vmatmul.f32.gmra.mxu3 %v4576_v50  ;;  %v2769_v62 = vld [vmem:[#allocation10 + $0x200] sm:$0xff] }
 0x260   :  { %v2102_v61 = vld [vmem:[#allocation3 + $0x90] sm:$0xff]  ;;  %3208 = vmatpush.msrb.mxu1 %v2769_v62 }
 0x261   :  { %v4658_v46 = vld [vmem:[#allocation3 + $0x91] sm:$0xff]  ;;  %2079 = vst [vmem:[#allocation3 + $0x9b] sm:$0xff] %v2056_v45  ;;  %v1869_v55 = vmul.f32 %v4573_v16, %v1835_v47  ;;  %2919 = vmatmul.f32.gmra.mxu1 %v2102_v61  ;;  %v1583_v45 = vadd.f32 %v4568_v3, %v4344_v63  ;;  %v4690_v63 = vpop.permute.xlu2 %2025 }
 0x262   :  { %v4663_v5 = vld [vmem:[#allocation3 + $0x92] sm:$0xff]  ;;  %v1665_v57 = vpop.f32.mrf.mxu2  ;;  %v1751_v38 = vpop.f32.mrf.mxu3  ;;  %5223 = vst [vmem:[#allocation35_spill] sm:$0xff] %v4690_v63 }
 0x263   :  { %v1896_v37 = vadd.f32 %v4581_v9, %v1869_v55  ;;  %v1666_v31 = vadd.f32 %v1665_v57, %v1580_v11  ;;  %v1837_v50 = vpop.f32.mrf.mxu0  ;;  %v4686_v57 = vld [vmem:[#allocation3 + $0x83] sm:$0xff] }
 0x265   :  { %v1919_v34 = vmax.f32 %v1896_v37, 0.0  ;;  %v1752_v44 = vadd.f32 %v1751_v38, %v1666_v31  ;;  %v4688_v31 = vld [vmem:[#allocation3 + $0x74] sm:$0xff] }
 0x266   :  { %3162 = vmatmul.f32.gmra.mxu0 %v4595_v17  ;;  %v4673_v32 = vpop.f32.mrf.mxu1 }
 0x267   :  { %v2057_v12 = vmul.f32 %v4670_v23, %v1919_v34  ;;  %v1838_v15 = vadd.f32 %v1837_v50, %v1752_v44  ;;  %2993 = vmatmul.f32.gmra.mxu2 %v4590_v2  ;;  %3079 = vmatmul.f32.gmra.mxu3 %v4595_v17  ;;  %v2832_v44 = vld [vmem:[#allocation10 + $0x3f8] sm:$0xff] }
 0x268   :  { %v2103_v27 = vld [vmem:[#allocation3 + $0x98] sm:$0xff]  ;;  %3451 = vmatpush.msra.mxu0 %v2832_v44  ;;  %v2798_v44 = vld [vmem:[#allocation10 + $0x2e8] sm:$0xff] }
 0x269   :  { %v4678_v49 = vld [vmem:[#allocation3 + $0x99] sm:$0xff]  ;;  %2080 = vst [vmem:[#allocation3 + $0xa3] sm:$0xff] %v2057_v12  ;;  %v1870_v47 = vmul.f32 %v4573_v16, %v1838_v15  ;;  %2922 = vmatmul.f32.gmra.mxu1 %v2103_v27  ;;  %v2799_v12 = vld [vmem:[#allocation10 + $0x2f0] sm:$0xff] }
 0x26a   :  { %v4683_v61 = vld [vmem:[#allocation3 + $0x9a] sm:$0xff]  ;;  %v1668_v2 = vpop.f32.mrf.mxu2  ;;  %v1754_v17 = vpop.f32.mrf.mxu3  ;;  %3280 = vmatpush.msra.mxu2 %v2799_v12  ;;  %v2814_v12 = vld [vmem:[#allocation10 + $0x368] sm:$0xff] }
 0x26b   :  { %v1897_v11 = vadd.f32 %v4581_v9, %v1870_v47  ;;  %v1669_v55 = vadd.f32 %v1668_v2, %v1583_v45  ;;  %v1840_v4 = vpop.f32.mrf.mxu0  ;;  %v2848_v15 = vld [vmem:[#allocation10 + $0x478] sm:$0xff]  ;;  %3367 = vmatpush.msra.mxu3 %v2814_v12  ;;  %v2795_v12 = vld [vmem:[#allocation10 + $0x2d0] sm:$0xff] }
 0x26c   :  { %3537 = vmatpush.msra.mxu1 %v2848_v15  ;;  %v2797_v15 = vld [vmem:[#allocation10 + $0x2e0] sm:$0xff]  ;;  %3281 = vmatpush.msra.mxu2 %v2798_v44 }
 0x26d   :  { %v1920_v38 = vmax.f32 %v1897_v11, 0.0  ;;  %v1755_v37 = vadd.f32 %v1754_v17, %v1669_v55  ;;  %v4706_v11 = vld [vmem:[#allocation3 + $0x6d] sm:$0xff] }
 0x26e   :  { %3165 = vmatmul.f32.gmra.mxu0 %v4611_v52  ;;  %v4693_v3 = vpop.f32.mrf.mxu1  ;;  %v4708_v55 = vld [vmem:[#allocation3 + $0x8b] sm:$0xff]  ;;  %3282 = vmatpush.msra.mxu2 %v2797_v15  ;;  %v4727_v15 = vpop.permute.xlu1 %2035 }
 0x26f   :  { %v2058_v50 = vmul.f32 %v4690_v63, %v1920_v38  ;;  %v1841_v34 = vadd.f32 %v1840_v4, %v1755_v37  ;;  %2996 = vmatmul.f32.gmra.mxu2 %v4606_v20  ;;  %3082 = vmatmul.f32.gmra.mxu3 %v4611_v52  ;;  %5225 = vst [vmem:[#allocation37_spill] sm:$0xff] %v4727_v15 }
 0x270   :  { %v2104_v30 = vld [vmem:[#allocation3 + $0xa0] sm:$0xff] }
 0x271   :  { %v4698_v62 = vld [vmem:[#allocation3 + $0xa1] sm:$0xff]  ;;  %2081 = vst [vmem:[#allocation3 + $0xab] sm:$0xff] %v2058_v50  ;;  %v1871_v27 = vmul.f32 %v4573_v16, %v1841_v34  ;;  %2925 = vmatmul.f32.gmra.mxu1 %v2104_v30 }
 0x272   :  { %v4703_v45 = vld [vmem:[#allocation3 + $0xa2] sm:$0xff]  ;;  %v1671_v20 = vpop.f32.mrf.mxu2  ;;  %v1757_v47 = vpop.f32.mrf.mxu3 }
 0x273   :  { %v1898_v52 = vadd.f32 %v4581_v9, %v1871_v27  ;;  %v1672_v2 = vadd.f32 %v1671_v20, %v1586_v14  ;;  %v1843_v17 = vpop.f32.mrf.mxu0  ;;  %v2813_v27 = vld [vmem:[#allocation10 + $0x360] sm:$0xff] }
 0x274   :  { %3368 = vmatpush.msra.mxu3 %v2813_v27  ;;  %v4784_v22 = vld [vmem:[#allocation3 + $0x9d] sm:$0xff] }
 0x275   :  { %v1921_v4 = vmax.f32 %v1898_v52, 0.0  ;;  %v1758_v38 = vadd.f32 %v1757_v47, %v1672_v2  ;;  %v2796_v47 = vld [vmem:[#allocation10 + $0x2d8] sm:$0xff] }
 0x276   :  { %3168 = vmatmul.f32.gmra.mxu0 %v4627_v39  ;;  %v4713_v37 = vpop.f32.mrf.mxu1  ;;  %v2812_v52 = vld [vmem:[#allocation10 + $0x358] sm:$0xff]  ;;  %3283 = vmatpush.msra.mxu2 %v2796_v47  ;;  %v2810_v47 = vld [vmem:[#allocation10 + $0x348] sm:$0xff] }
 0x277   :  { %v2059_v50 = vmul.f32 %v4710_v24, %v1921_v4  ;;  %v1844_v34 = vadd.f32 %v1843_v17, %v1758_v38  ;;  %2999 = vmatmul.f32.gmra.mxu2 %v4622_v28  ;;  %3085 = vmatmul.f32.gmra.mxu3 %v4627_v39  ;;  %v2831_v24 = vld [vmem:[#allocation10 + $0x3f0] sm:$0xff] }
 0x278   :  { %v2105_v30 = vld [vmem:[#allocation3 + $0xa8] sm:$0xff]  ;;  %v2106_v14 = vld [vmem:[#allocation3 + $0xb0] sm:$0x3]  ;;  %3369 = vmatpush.msra.mxu3 %v2812_v52  ;;  %3284 = vmatpush.msra.mxu2 %v2795_v12 }
 0x279   :  { %2082 = vst [vmem:[#allocation3 + $0xb3] sm:$0xff] %v2059_v50  ;;  %v1872_v20 = vmul.f32 %v4573_v16, %v1844_v34  ;;  %2928 = vmatmul.f32.gmra.mxu1 %v2105_v30  ;;  %v4719_v2 = vld [vmem:[#allocation3 + $0xa9] sm:$0xff]  ;;  %v2152_v16 = vld [vmem:[#allocation3 + $0xb1] sm:$0x3]  ;;  %v4725_v50 = vld [vmem:[#allocation3 + $0x7c] sm:$0xff]  ;;  %3452 = vmatpush.msra.mxu0 %v2831_v24 }
 0x27a   :  { %v2952_v17 = vpop.f32.mrf.mxu2  ;;  %v3038_v28 = vpop.f32.mrf.mxu3  ;;  %v4721_v39 = vld [vmem:[#allocation3 + $0xaa] sm:$0xff]  ;;  %2129 = vst [vmem:[#allocation4 + $0x240] sm:$0x3] %v2106_v14  ;;  %v2808_v24 = vld [vmem:[#allocation10 + $0x338] sm:$0xff] }
 0x27b   :  { %v1899_v4 = vadd.f32 %v4581_v9, %v1872_v20  ;;  %v2953_v38 = vadd.f32 %v2952_v17, %v4614_v36  ;;  %v3124_v10 = vpop.f32.mrf.mxu0  ;;  %v2811_v30 = vld [vmem:[#allocation10 + $0x350] sm:$0xff]  ;;  %v2794_v20 = vld [vmem:[#allocation10 + $0x2c8] sm:$0xff]  ;;  %2175 = vst [vmem:[#allocation4 + $0xd0] sm:$0x3] %v2152_v16 }
 0x27c   :  { %v4732_v9 = vld [vmem:[#allocation3 + $0x75] sm:$0xff]  ;;  %v2830_v52 = vld [vmem:[#allocation10 + $0x3e8] sm:$0xff]  ;;  %3370 = vmatpush.msra.mxu3 %v2811_v30  ;;  %3285 = vmatpush.msra.mxu2 %v2794_v20 }
 0x27d   :  { %v1922_v34 = vmax.f32 %v1899_v4, 0.0  ;;  %v3039_v44 = vadd.f32 %v3038_v28, %v2953_v38  ;;  %v2847_v17 = vld [vmem:[#allocation10 + $0x470] sm:$0xff]  ;;  %v2793_v28 = vld [vmem:[#allocation10 + $0x2c0] sm:$0xff]  ;;  %3453 = vmatpush.msra.mxu0 %v2830_v52 }
 0x27e   :  { %3171 = vmatmul.f32.gmra.mxu0 %v4643_v40  ;;  %v4730_v27 = vpop.f32.mrf.mxu1  ;;  %3538 = vmatpush.msra.mxu1 %v2847_v17  ;;  %v2809_v4 = vld [vmem:[#allocation10 + $0x340] sm:$0xff] }
 0x27f   :  { %v2060_v36 = vmul.f32 %v4727_v15, %v1922_v34  ;;  %v4735_v14 = vadd.f32 %v3124_v10, %v3039_v44  ;;  %3002 = vmatmul.f32.gmra.mxu2 %v4638_v1  ;;  %3088 = vmatmul.f32.gmra.mxu3 %v4643_v40  ;;  %v2829_v38 = vld [vmem:[#allocation10 + $0x3e0] sm:$0xff]  ;;  %v4739_v34 = vld [vmem:[#allocation3 + $0x93] sm:$0xff] }
 0x280   :  { %3371 = vmatpush.msra.mxu3 %v2810_v47  ;;  %v2792_v40 = vld [vmem:[#allocation10 + $0x2b8] sm:$0xff]  ;;  %v2198_v12 = vld [vmem:[#allocation3 + $0xb2] sm:$0x3]  ;;  %3286 = vmatpush.msra.mxu2 %v2793_v28  ;;  %v4744_v20 = vld [vmem:[#allocation3 + $0x84] sm:$0xff] }
 0x281   :  { %2083 = vst [vmem:[#allocation3 + $0xbb] sm:$0x3] %v2060_v36  ;;  %v2696_v1 = vld [vmem:[#allocation4 + $0x240] sm:$0x3]  ;;  %v4742_v36 = vld [vmem:[#allocation3 + $0xb2] sm:$0xff]  ;;  %3454 = vmatpush.msra.mxu0 %v2829_v38  ;;  %v4746_v52 = vld [vmem:[#allocation3 + $0x7d] sm:$0xff] }
 0x282   :  { %v2955_v10 = vpop.f32.mrf.mxu2  ;;  %v3041_v44 = vpop.f32.mrf.mxu3  ;;  %2931 = vmatmul.f32.gmra.mxu1 %v2696_v1  ;;  %2221 = vst [vmem:[#allocation4 + $0x208] sm:$0x3] %v2198_v12  ;;  %3372 = vmatpush.msra.mxu3 %v2809_v4  ;;  %v2828_v15 = vld [vmem:[#allocation10 + $0x3d8] sm:$0xff]  ;;  %v2791_v47 = vld [vmem:[#allocation10 + $0x2b0] sm:$0xff]  ;;  %v2790_v38 = vld [vmem:[#allocation10 + $0x2a8] sm:$0xff] }
 0x283   :  { %v2956_v16 = vadd.f32 %v2955_v10, %v4633_v6  ;;  %v3127_v30 = vpop.f32.mrf.mxu0  ;;  %3287 = vmatpush.msra.mxu2 %v2792_v40  ;;  %v2807_v28 = vld [vmem:[#allocation10 + $0x330] sm:$0xff]  ;;  %v4751_v10 = vld [vmem:[#allocation3 + $0x9b] sm:$0xff]  ;;  %3455 = vmatpush.msra.mxu0 %v2828_v15  ;;  %v4757_v40 = vld [vmem:[#allocation3 + $0x85] sm:$0xff] }
 0x284   :  { %3373 = vmatpush.msra.mxu3 %v2808_v24  ;;  %v2827_v4 = vld [vmem:[#allocation10 + $0x3d0] sm:$0xff]  ;;  %v2826_v12 = vld [vmem:[#allocation10 + $0x3c8] sm:$0xff]  ;;  %v2697_v59 = vld [vmem:[#allocation4 + $0xd0] sm:$0x3] }
 0x285   :  { %v3042_v17 = vadd.f32 %v3041_v44, %v2956_v16  ;;  %3288 = vmatpush.msra.mxu2 %v2791_v47  ;;  %v2806_v44 = vld [vmem:[#allocation10 + $0x328] sm:$0xff]  ;;  %v2789_v16 = vld [vmem:[#allocation10 + $0x2a0] sm:$0xff]  ;;  %3456 = vmatpush.msra.mxu0 %v2827_v4  ;;  %v2788_v47 = vld [vmem:[#allocation10 + $0x298] sm:$0xff] }
 0x286   :  { %3174 = vmatmul.f32.gmra.mxu0 %v4663_v5  ;;  %v4749_v6 = vpop.f32.mrf.mxu1  ;;  %3374 = vmatpush.msra.mxu3 %v2807_v28  ;;  %v4759_v24 = vld [vmem:[#allocation3 + $0x8c] sm:$0xff]  ;;  %v4762_v28 = vld [vmem:[#allocation3 + $0xa3] sm:$0xff]  ;;  %v2804_v4 = vld [vmem:[#allocation10 + $0x318] sm:$0xff] }
 0x287   :  { %v4753_v1 = vadd.f32 %v3127_v30, %v3042_v17  ;;  %3005 = vmatmul.f32.gmra.mxu2 %v4658_v46  ;;  %3091 = vmatmul.f32.gmra.mxu3 %v4663_v5  ;;  %v2805_v30 = vld [vmem:[#allocation10 + $0x320] sm:$0xff]  ;;  %v2846_v46 = vld [vmem:[#allocation10 + $0x468] sm:$0xff] }
 0x288   :  { %3289 = vmatpush.msra.mxu2 %v2790_v38  ;;  %v2244_v17 = vld [vmem:[#allocation3 + $0xba] sm:$0x3]  ;;  %v3820_v15 = vld [vmem:[#allocation4 + $0xa0] sm:$0xff]  ;;  %3375 = vmatpush.msra.mxu3 %v2806_v44 }
 0x289   :  { %5226 = vst [vmem:[#allocation38_spill] sm:$0xff] %v4753_v1  ;;  %3457 = vmatpush.msra.mxu0 %v2826_v12  ;;  %3539 = vmatpush.msra.mxu1 %v2846_v46  ;;  %v4764_v38 = vld [vmem:[#allocation3 + $0x94] sm:$0xff] }
 0x28a   :  { %v2958_v63 = vpop.f32.mrf.mxu2  ;;  %v3044_v23 = vpop.f32.mrf.mxu3  ;;  %3209 = vmatmul.f32.vlgmr.msrb.gmra.mxu1 %v3820_v15  ;;  %2267 = vst [vmem:[#allocation4 + $0x228] sm:$0x3] %v2244_v17  ;;  %3290 = vmatpush.msra.mxu2 %v2789_v16  ;;  %v4769_v44 = vld [vmem:[#allocation3 + $0x8d] sm:$0xff] }
 0x28b   :  { %v2959_v5 = vadd.f32 %v2958_v63, %v4653_v41  ;;  %v3130_v18 = vpop.f32.mrf.mxu0  ;;  %3376 = vmatpush.msra.mxu3 %v2805_v30  ;;  %v2787_v63 = vld [vmem:[#allocation10 + $0x290] sm:$0xff]  ;;  %3458 = vmatpush.msra.mxu0 %v2825_v25  ;;  %v2786_v16 = vld [vmem:[#allocation10 + $0x288] sm:$0xff]  ;;  %v4775_v30 = vld [vmem:[#allocation3 + $0x9c] sm:$0xff] }
 0x28c   :  { %3291 = vmatpush.msra.mxu2 %v2788_v47  ;;  %v2803_v12 = vld [vmem:[#allocation10 + $0x310] sm:$0xff]  ;;  %v3821_v25 = vld [vmem:[#allocation4 + $0x358] sm:$0xff] }
 0x28d   :  { %v3045_v51 = vadd.f32 %v3044_v23, %v2959_v5  ;;  %v2824_v23 = vld [vmem:[#allocation10 + $0x3b8] sm:$0xff]  ;;  %3377 = vmatpush.msra.mxu3 %v2804_v4  ;;  %v2823_v46 = vld [vmem:[#allocation10 + $0x3b0] sm:$0xff]  ;;  %v2802_v5 = vld [vmem:[#allocation10 + $0x308] sm:$0xff] }
 0x28e   :  { %3177 = vmatmul.f32.gmra.mxu0 %v4683_v61  ;;  %v4767_v41 = vpop.f32.mrf.mxu1  ;;  %3292 = vmatpush.msra.mxu2 %v2787_v63  ;;  %v4777_v15 = vld [vmem:[#allocation3 + $0xab] sm:$0xff]  ;;  %v2801_v4 = vld [vmem:[#allocation10 + $0x300] sm:$0xff] }
 0x28f   :  { %v4771_v17 = vadd.f32 %v3130_v18, %v3045_v51  ;;  %3008 = vmatmul.f32.gmra.mxu2 %v4678_v49  ;;  %3094 = vmatmul.f32.gmra.mxu3 %v4683_v61  ;;  %v2785_v51 = vld [vmem:[#allocation10 + $0x280] sm:$0xff]  ;;  %v4779_v18 = vld [vmem:[#allocation3 + $0x95] sm:$0xff] }
 0x290   :  { %3459 = vmatpush.msra.mxu0 %v2824_v23  ;;  %3378 = vmatpush.msra.mxu3 %v2803_v12  ;;  %v4782_v63 = vld [vmem:[#allocation3 + $0xa4] sm:$0xff]  ;;  %v4889_v1 = vld [vmem:[#allocation3 + $0x8e] sm:$0xff] }
 0x291   :  { %5227 = vst [vmem:[#allocation39_spill] sm:$0xff] %v4771_v17  ;;  %3293 = vmatpush.msra.mxu2 %v2786_v16  ;;  %v2821_v12 = vld [vmem:[#allocation10 + $0x3a0] sm:$0xff] }
 0x292   :  { %v2961_v47 = vpop.f32.mrf.mxu2  ;;  %v3047_v35 = vpop.f32.mrf.mxu3  ;;  %3212 = vmatmul.f32.gmra.mxu1 %v3821_v25  ;;  %3460 = vmatpush.msra.mxu0 %v2823_v46  ;;  %v2845_v16 = vld [vmem:[#allocation10 + $0x460] sm:$0xff]  ;;  %v2820_v46 = vld [vmem:[#allocation10 + $0x398] sm:$0xff] }
 0x293   :  { %v2962_v49 = vadd.f32 %v2961_v47, %v4673_v32  ;;  %v3133_v61 = vpop.f32.mrf.mxu0  ;;  %3379 = vmatpush.msra.mxu3 %v2802_v5  ;;  %3294 = vmatpush.msra.mxu2 %v2785_v51  ;;  %v4795_v5 = vld [vmem:[#allocation3 + $0xac] sm:$0xff] }
 0x294   :  { %3461 = vmatpush.msra.mxu0 %v2822_v43  ;;  %3540 = vmatpush.msra.mxu1 %v2845_v16  ;;  %v4797_v47 = vld [vmem:[#allocation3 + $0xa5] sm:$0xff] }
 0x295   :  { %v3048_v53 = vadd.f32 %v3047_v35, %v2962_v49  ;;  %3380 = vmatpush.msra.mxu3 %v2801_v4  ;;  %v4793_v35 = vld [vmem:[#allocation3 + $0xb3] sm:$0xff]  ;;  %v4802_v43 = vld [vmem:[#allocation3 + $0x1e] sm:$0xff]  ;;  %v4804_v16 = vld [vmem:[#allocation3 + $0x26] sm:$0xff] }
 0x296   :  { %3180 = vmatmul.f32.gmra.mxu0 %v4703_v45  ;;  %v4787_v23 = vpop.f32.mrf.mxu1  ;;  %v2819_v4 = vld [vmem:[#allocation10 + $0x390] sm:$0xff]  ;;  %v4882_v17 = vld [vmem:[#allocation3 + $0x86] sm:$0xff] }
 0x297   :  { %v4789_v32 = vadd.f32 %v3133_v61, %v3048_v53  ;;  %3011 = vmatmul.f32.gmra.mxu2 %v4698_v62  ;;  %3097 = vmatmul.f32.gmra.mxu3 %v4703_v45  ;;  %v4799_v53 = vld [vmem:[#allocation3 + $0x16] sm:$0xff] }
 0x298   :  { %3462 = vmatpush.msra.mxu0 %v2821_v12  ;;  %v3822_v45 = vld [vmem:[#allocation4 + $0x108] sm:$0xff] }
 0x299   :  { %5228 = vst [vmem:[#allocation40_spill] sm:$0xff] %v4789_v32  ;;  %v4868_v32 = vld [vmem:[#allocation3 + $0x76] sm:$0xff] }
 0x29a   :  { %v2964_v51 = vpop.f32.mrf.mxu2  ;;  %v3050_v49 = vpop.f32.mrf.mxu3  ;;  %3215 = vmatmul.f32.gmra.mxu1 %v3822_v45  ;;  %3463 = vmatpush.msra.mxu0 %v2820_v46  ;;  %v2844_v46 = vld [vmem:[#allocation10 + $0x458] sm:$0xff] }
 0x29b   :  { %v2965_v62 = vadd.f32 %v2964_v51, %v4693_v3  ;;  %v3136_v61 = vpop.f32.mrf.mxu0  ;;  %v2818_v3 = vld [vmem:[#allocation10 + $0x388] sm:$0xff]  ;;  %3541 = vmatpush.msra.mxu1 %v2844_v46  ;;  %v4815_v51 = vld [vmem:[#allocation3 + $0x36] sm:$0xff] }
 0x29c   :  { %3464 = vmatpush.msra.mxu0 %v2819_v4  ;;  %v2698_v4 = vld [vmem:[#allocation4 + $0x208] sm:$0x3] }
 0x29d   :  { %v3051_v25 = vadd.f32 %v3050_v49, %v2965_v62  ;;  %v2817_v49 = vld [vmem:[#allocation10 + $0x380] sm:$0xff]  ;;  %v2290_v62 = vld [vmem:[#allocation3 + $0xbb] sm:$0x3]  ;;  %3542 = vmatpush.msra.mxu1 %v2843_v19 }
 0x29e   :  { %3183 = vmatmul.f32.gmra.mxu0 %v4721_v39  ;;  %v4807_v21 = vpop.f32.mrf.mxu1  ;;  %2313 = vst [vmem:[#allocation4 + $0x2f0] sm:$0x3] %v2290_v62 }
 0x29f   :  { %v4811_v12 = vadd.f32 %v3136_v61, %v3051_v25  ;;  %3014 = vmatmul.f32.gmra.mxu2 %v4719_v2  ;;  %3100 = vmatmul.f32.gmra.mxu3 %v4721_v39  ;;  %v3823_v25 = vld [vmem:[#allocation4 + $0x2c0] sm:$0xff]  ;;  %v4818_v2 = vld [vmem:[#allocation3 + $0x3e] sm:$0xff] }
 0x2a0   :  { %3465 = vmatpush.msra.mxu0 %v2818_v3 }
 0x2a1   :  { %5229 = vst [vmem:[#allocation41_spill] sm:$0xff] %v4811_v12  ;;  %v4854_v12 = vld [vmem:[#allocation3 + $0x66] sm:$0xff] }
 0x2a2   :  { %v2967_v45 = vpop.f32.mrf.mxu2  ;;  %v3053_v48 = vpop.f32.mrf.mxu3  ;;  %3218 = vmatmul.f32.gmra.mxu1 %v3823_v25  ;;  %3466 = vmatpush.msra.mxu0 %v2817_v49  ;;  %v3824_v25 = vld [vmem:[#allocation4 + $0x310] sm:$0xff]  ;;  %v4826_v49 = vld [vmem:[#allocation3 + $0x46] sm:$0xff] }
 0x2a3   :  { %v2968_v7 = vadd.f32 %v2967_v45, %v4713_v37  ;;  %v3139_v61 = vpop.f32.mrf.mxu0 }
 0x2a5   :  { %v3054_v39 = vadd.f32 %v3053_v48, %v2968_v7  ;;  %v2699_v48 = vld [vmem:[#allocation4 + $0x228] sm:$0x3] }
 0x2a6   :  { %3186 = vmatmul.f32.gmra.mxu0 %v4742_v36  ;;  %v4821_v46 = vpop.f32.mrf.mxu1 }
 0x2a7   :  { %v4823_v56 = vadd.f32 %v3139_v61, %v3054_v39  ;;  %3017 = vmatmul.f32.gmra.mxu2 %v2697_v59  ;;  %3103 = vmatmul.f32.gmra.mxu3 %v2698_v4  ;;  %v3825_v59 = vld [vmem:[#allocation4 + $0x658] sm:$0xff]  ;;  %v3826_v39 = vld [vmem:[#allocation4 + $0x628] sm:$0xff] }
 0x2a9   :  { %5230 = vst [vmem:[#allocation42_spill] sm:$0xff] %v4823_v56  ;;  %v4840_v56 = vld [vmem:[#allocation3 + $0x56] sm:$0xff] }
 0x2aa   :  { %v2970_v3 = vpop.f32.mrf.mxu2  ;;  %v3056_v62 = vpop.f32.mrf.mxu3  ;;  %3221 = vmatmul.f32.gmra.mxu1 %v3824_v25 }
 0x2ab   :  { %v2971_v37 = vadd.f32 %v2970_v3, %v4730_v27  ;;  %v3142_v45 = vpop.f32.mrf.mxu0 }
 0x2ad   :  { %v3057_v7 = vadd.f32 %v3056_v62, %v2971_v37  ;;  %v4833_v62 = vld [vmem:[#allocation3 + $0x4e] sm:$0xff] }
 0x2ae   :  { %3189 = vmatmul.f32.gmra.mxu0 %v2699_v48  ;;  %v4828_v36 = vpop.f32.mrf.mxu1  ;;  %v3828_v48 = vld [vmem:[#allocation4 + $0x248] sm:$0xff] }
 0x2af   :  { %v4830_v61 = vadd.f32 %v3142_v45, %v3057_v7  ;;  %3295 = vmatmul.f32.vlgmr.msra.gmra.mxu2 %v3825_v59  ;;  %3381 = vmatmul.f32.vlgmr.msra.gmra.mxu3 %v3826_v39  ;;  %v3829_v45 = vld [vmem:[#allocation4 + $0x280] sm:$0xff] }
 0x2b0   :  { %v2842_v7 = vld [vmem:[#allocation10 + $0x448] sm:$0xff] }
 0x2b1   :  { %5231 = vst [vmem:[#allocation43_spill] sm:$0xff] %v4830_v61  ;;  %3543 = vmatpush.msra.mxu1 %v2842_v7 }
 0x2b2   :  { %v2973_v4 = vpop.f32.mrf.mxu2  ;;  %v3059_v27 = vpop.f32.mrf.mxu3  ;;  %3224 = vmatmul.f32.gmra.mxu1 %v3827_v33  ;;  %v3830_v33 = vld [vmem:[#allocation4 + $0x300] sm:$0xff] }
 0x2b3   :  { %v2974_v3 = vadd.f32 %v2973_v4, %v4749_v6  ;;  %v3145_v25 = vpop.f32.mrf.mxu0 }
 0x2b5   :  { %v3060_v37 = vadd.f32 %v3059_v27, %v2974_v3  ;;  %v3831_v3 = vld [vmem:[#allocation4 + $0x560] sm:$0xff] }
 0x2b6   :  { %3467 = vmatmul.f32.vlgmr.msra.gmra.mxu0 %v3828_v48  ;;  %v4835_v58 = vpop.f32.mrf.mxu1 }
 0x2b7   :  { %v4837_v19 = vadd.f32 %v3145_v25, %v3060_v37  ;;  %3298 = vmatmul.f32.gmra.mxu2 %v3826_v39  ;;  %3384 = vmatmul.f32.gmra.mxu3 %v3829_v45  ;;  %v3832_v39 = vld [vmem:[#allocation4 + $0x8] sm:$0xff] }
 0x2b9   :  { %5232 = vst [vmem:[#allocation44_spill] sm:$0xff] %v4837_v19 }
 0x2ba   :  { %v2976_v59 = vpop.f32.mrf.mxu2  ;;  %v3062_v61 = vpop.f32.mrf.mxu3  ;;  %3227 = vmatmul.f32.gmra.mxu1 %v3830_v33  ;;  %v4847_v33 = vld [vmem:[#allocation3 + $0x5e] sm:$0xff] }
 0x2bb   :  { %v2977_v6 = vadd.f32 %v2976_v59, %v4767_v41  ;;  %v3148_v4 = vpop.f32.mrf.mxu0  ;;  %v3833_v59 = vld [vmem:[#allocation4 + $0x418] sm:$0xff] }
 0x2bd   :  { %v3063_v27 = vadd.f32 %v3062_v61, %v2977_v6  ;;  %v2841_v61 = vld [vmem:[#allocation10 + $0x440] sm:$0xff] }
 0x2be   :  { %3470 = vmatmul.f32.gmra.mxu0 %v3831_v3  ;;  %v4842_v48 = vpop.f32.mrf.mxu1  ;;  %v3834_v6 = vld [vmem:[#allocation4 + $0x378] sm:$0xff]  ;;  %3544 = vmatpush.msra.mxu1 %v2841_v61 }
 0x2bf   :  { %v4844_v25 = vadd.f32 %v3148_v4, %v3063_v27  ;;  %3301 = vmatmul.f32.gmra.mxu2 %v3829_v45  ;;  %3387 = vmatmul.f32.gmra.mxu3 %v3832_v39  ;;  %v3835_v45 = vld [vmem:[#allocation4 + $0x3a8] sm:$0xff] }
 0x2c1   :  { %5233 = vst [vmem:[#allocation45_spill] sm:$0xff] %v4844_v25 }
 0x2c2   :  { %v2979_v37 = vpop.f32.mrf.mxu2  ;;  %v3065_v7 = vpop.f32.mrf.mxu3  ;;  %3230 = vmatmul.f32.gmra.mxu1 %v3833_v59  ;;  %v3836_v59 = vld [vmem:[#allocation4 + $0x160] sm:$0xff] }
 0x2c3   :  { %v2980_v19 = vadd.f32 %v2979_v37, %v4787_v23  ;;  %v3151_v41 = vpop.f32.mrf.mxu0 }
 0x2c5   :  { %v3066_v8 = vadd.f32 %v3065_v7, %v2980_v19  ;;  %v3837_v7 = vld [vmem:[#allocation4 + $0xf0] sm:$0xff] }
 0x2c6   :  { %3473 = vmatmul.f32.gmra.mxu0 %v3834_v6  ;;  %v4849_v3 = vpop.f32.mrf.mxu1 }
 0x2c7   :  { %v4851_v4 = vadd.f32 %v3151_v41, %v3066_v8  ;;  %3304 = vmatmul.f32.gmra.mxu2 %v3832_v39  ;;  %3390 = vmatmul.f32.gmra.mxu3 %v3835_v45  ;;  %v3838_v8 = vld [vmem:[#allocation4 + $0x460] sm:$0xff]  ;;  %v2840_v39 = vld [vmem:[#allocation10 + $0x438] sm:$0xff] }
 0x2c8   :  { %3545 = vmatpush.msra.mxu1 %v2840_v39 }
 0x2c9   :  { %5234 = vst [vmem:[#allocation46_spill] sm:$0xff] %v4851_v4 }
 0x2ca   :  { %v2982_v27 = vpop.f32.mrf.mxu2  ;;  %v3068_v25 = vpop.f32.mrf.mxu3  ;;  %3233 = vmatmul.f32.gmra.mxu1 %v3836_v59  ;;  %v3839_v59 = vld [vmem:[#allocation4 + $0x200] sm:$0xff] }
 0x2cb   :  { %v2983_v23 = vadd.f32 %v2982_v27, %v4807_v21  ;;  %v3154_v37 = vpop.f32.mrf.mxu0 }
 0x2cd   :  { %v3069_v19 = vadd.f32 %v3068_v25, %v2983_v23  ;;  %v3840_v23 = vld [vmem:[#allocation4 + $0x3b0] sm:$0xff] }
 0x2ce   :  { %3476 = vmatmul.f32.gmra.mxu0 %v3837_v7  ;;  %v4856_v6 = vpop.f32.mrf.mxu1 }
 0x2cf   :  { %v4858_v61 = vadd.f32 %v3154_v37, %v3069_v19  ;;  %3307 = vmatmul.f32.gmra.mxu2 %v3835_v45  ;;  %3393 = vmatmul.f32.gmra.mxu3 %v3838_v8  ;;  %v3841_v45 = vld [vmem:[#allocation4 + $0x368] sm:$0xff] }
 0x2d0   :  { %v2839_v19 = vld [vmem:[#allocation10 + $0x430] sm:$0xff] }
 0x2d1   :  { %5235 = vst [vmem:[#allocation47_spill] sm:$0xff] %v4858_v61  ;;  %3546 = vmatpush.msra.mxu1 %v2839_v19 }
 0x2d2   :  { %v2985_v41 = vpop.f32.mrf.mxu2  ;;  %v3071_v4 = vpop.f32.mrf.mxu3  ;;  %3236 = vmatmul.f32.gmra.mxu1 %v3839_v59  ;;  %v3842_v59 = vld [vmem:[#allocation4 + $0x640] sm:$0xff] }
 0x2d3   :  { %v2986_v21 = vadd.f32 %v2985_v41, %v4821_v46  ;;  %v3157_v27 = vpop.f32.mrf.mxu0 }
 0x2d5   :  { %v3072_v25 = vadd.f32 %v3071_v4, %v2986_v21  ;;  %v3843_v21 = vld [vmem:[#allocation4 + $0x518] sm:$0xff] }
 0x2d6   :  { %3479 = vmatmul.f32.gmra.mxu0 %v3840_v23  ;;  %v4863_v7 = vpop.f32.mrf.mxu1 }
 0x2d7   :  { %v4865_v37 = vadd.f32 %v3157_v27, %v3072_v25  ;;  %3310 = vmatmul.f32.gmra.mxu2 %v3838_v8  ;;  %3396 = vmatmul.f32.gmra.mxu3 %v3841_v45  ;;  %v3844_v8 = vld [vmem:[#allocation4 + $0x5c8] sm:$0xff] }
 0x2d9   :  { %5236 = vst [vmem:[#allocation48_spill] sm:$0xff] %v4865_v37 }
 0x2da   :  { %v2988_v39 = vpop.f32.mrf.mxu2  ;;  %v3074_v61 = vpop.f32.mrf.mxu3  ;;  %3239 = vmatmul.f32.gmra.mxu1 %v3842_v59  ;;  %v4875_v59 = vld [vmem:[#allocation3 + $0x7e] sm:$0xff] }
 0x2db   :  { %v2989_v46 = vadd.f32 %v2988_v39, %v4828_v36  ;;  %v3160_v41 = vpop.f32.mrf.mxu0  ;;  %v3845_v39 = vld [vmem:[#allocation4 + $0x2f8] sm:$0xff] }
 0x2dd   :  { %v3075_v4 = vadd.f32 %v3074_v61, %v2989_v46  ;;  %v3846_v61 = vld [vmem:[#allocation4 + $0x2e0] sm:$0xff] }
 0x2de   :  { %3482 = vmatmul.f32.gmra.mxu0 %v3843_v21  ;;  %v4870_v23 = vpop.f32.mrf.mxu1 }
 0x2df   :  { %v4872_v27 = vadd.f32 %v3160_v41, %v3075_v4  ;;  %3313 = vmatmul.f32.gmra.mxu2 %v3841_v45  ;;  %3399 = vmatmul.f32.gmra.mxu3 %v3844_v8  ;;  %v3847_v45 = vld [vmem:[#allocation4 + $0x4d0] sm:$0xff]  ;;  %v2838_v41 = vld [vmem:[#allocation10 + $0x428] sm:$0xff] }
 0x2e0   :  { %3547 = vmatpush.msra.mxu1 %v2838_v41 }
 0x2e1   :  { %5237 = vst [vmem:[#allocation49_spill] sm:$0xff] %v4872_v27 }
 0x2e2   :  { %v2991_v25 = vpop.f32.mrf.mxu2  ;;  %v3077_v19 = vpop.f32.mrf.mxu3  ;;  %3242 = vmatmul.f32.gmra.mxu1 %v3845_v39  ;;  %v3848_v39 = vld [vmem:[#allocation4 + $0x510] sm:$0xff] }
 0x2e3   :  { %v2992_v37 = vadd.f32 %v2991_v25, %v4835_v58  ;;  %v3163_v36 = vpop.f32.mrf.mxu0 }
 0x2e5   :  { %v3078_v60 = vadd.f32 %v3077_v19, %v2992_v37  ;;  %v3849_v19 = vld [vmem:[#allocation4 + $0x550] sm:$0xff] }
 0x2e6   :  { %3485 = vmatmul.f32.gmra.mxu0 %v3846_v61  ;;  %v4877_v46 = vpop.f32.mrf.mxu1 }
 0x2e7   :  { %v4879_v21 = vadd.f32 %v3163_v36, %v3078_v60  ;;  %3316 = vmatmul.f32.gmra.mxu2 %v3844_v8  ;;  %3402 = vmatmul.f32.gmra.mxu3 %v3847_v45  ;;  %v3850_v8 = vld [vmem:[#allocation4 + $0x458] sm:$0xff] }
 0x2e8   :  { %v2837_v36 = vld [vmem:[#allocation10 + $0x420] sm:$0xff] }
 0x2e9   :  { %5238 = vst [vmem:[#allocation50_spill] sm:$0xff] %v4879_v21  ;;  %3548 = vmatpush.msra.mxu1 %v2837_v36 }
 0x2ea   :  { %v2994_v4 = vpop.f32.mrf.mxu2  ;;  %v3080_v27 = vpop.f32.mrf.mxu3  ;;  %3245 = vmatmul.f32.gmra.mxu1 %v3848_v39  ;;  %v3851_v39 = vld [vmem:[#allocation4 + $0x3c0] sm:$0xff] }
 0x2eb   :  { %v2995_v58 = vadd.f32 %v2994_v4, %v4842_v48  ;;  %v3166_v25 = vpop.f32.mrf.mxu0 }
 0x2ed   :  { %v3081_v37 = vadd.f32 %v3080_v27, %v2995_v58  ;;  %v3852_v58 = vld [vmem:[#allocation4 + $0x38] sm:$0xff] }
 0x2ee   :  { %3488 = vmatmul.f32.gmra.mxu0 %v3849_v19  ;;  %v4884_v61 = vpop.f32.mrf.mxu1 }
 0x2ef   :  { %v4886_v60 = vadd.f32 %v3166_v25, %v3081_v37  ;;  %3319 = vmatmul.f32.gmra.mxu2 %v3847_v45  ;;  %3405 = vmatmul.f32.gmra.mxu3 %v3850_v8  ;;  %v3853_v45 = vld [vmem:[#allocation4 + $0x4e8] sm:$0xff] }
 0x2f1   :  { %5239 = vst [vmem:[#allocation51_spill] sm:$0xff] %v4886_v60 }
 0x2f2   :  { %v2997_v41 = vpop.f32.mrf.mxu2  ;;  %v3083_v21 = vpop.f32.mrf.mxu3  ;;  %3248 = vmatmul.f32.gmra.mxu1 %v3851_v39 }
 0x2f3   :  { %v2998_v48 = vadd.f32 %v2997_v41, %v4849_v3  ;;  %v3169_v4 = vpop.f32.mrf.mxu0  ;;  %v4897_v41 = vld [vmem:[#allocation3 + $0x96] sm:$0xff] }
 0x2f5   :  { %v3084_v27 = vadd.f32 %v3083_v21, %v2998_v48  ;;  %v2836_v21 = vld [vmem:[#allocation10 + $0x418] sm:$0xff] }
 0x2f6   :  { %3491 = vmatmul.f32.gmra.mxu0 %v3852_v58  ;;  %v4891_v19 = vpop.f32.mrf.mxu1  ;;  %3549 = vmatpush.msra.mxu1 %v2836_v21 }
 0x2f7   :  { %v4893_v25 = vadd.f32 %v3169_v4, %v3084_v27  ;;  %3322 = vmatmul.f32.gmra.mxu2 %v3850_v8  ;;  %3408 = vmatmul.f32.gmra.mxu3 %v3853_v45  ;;  %v3854_v8 = vld [vmem:[#allocation4 + $0x3d8] sm:$0xff] }
 0x2fa   :  { %v3000_v37 = vpop.f32.mrf.mxu2  ;;  %v3086_v36 = vpop.f32.mrf.mxu3  ;;  %3251 = vmatmul.f32.gmra.mxu1 %v4648_v29  ;;  %v4906_v29 = vld [vmem:[#allocation3 + $0x9e] sm:$0xff] }
 0x2fb   :  { %v3001_v60 = vadd.f32 %v3000_v37, %v4856_v6  ;;  %v3172_v3 = vpop.f32.mrf.mxu0 }
 0x2fd   :  { %v3087_v39 = vadd.f32 %v3086_v36, %v3001_v60 }
 0x2fe   :  { %3494 = vmatmul.f32.gmra.mxu0 %v4646_v54 }
 0x2ff   :  { %v4900_v48 = vadd.f32 %v3172_v3, %v3087_v39  ;;  %3325 = vmatmul.f32.gmra.mxu2 %v3853_v45  ;;  %3411 = vmatmul.f32.gmra.mxu3 %v3854_v8  ;;  %v4902_v4 = vpop.f32.mrf.mxu1  ;;  %v2835_v45 = vld [vmem:[#allocation10 + $0x410] sm:$0xff] }
 0x300   :  { %3550 = vmatpush.msra.mxu1 %v2835_v45  ;;  %v2834_v45 = vld [vmem:[#allocation10 + $0x408] sm:$0xff] }
 0x302   :  { %v3003_v27 = vpop.f32.mrf.mxu2  ;;  %v3089_v58 = vpop.f32.mrf.mxu3  ;;  %3254 = vmatmul.f32.gmra.mxu1 %v4686_v57  ;;  %v4916_v57 = vld [vmem:[#allocation3 + $0xa6] sm:$0xff] }
 0x303   :  { %v3004_v6 = vadd.f32 %v3003_v27, %v4863_v7  ;;  %v3175_v37 = vpop.f32.mrf.mxu0  ;;  %3551 = vmatpush.msra.mxu1 %v2834_v45 }
 0x305   :  { %v3090_v60 = vadd.f32 %v3089_v58, %v3004_v6 }
 0x306   :  { %3497 = vmatmul.f32.gmra.mxu0 %v4668_v13 }
 0x307   :  { %v4909_v54 = vadd.f32 %v3175_v37, %v3090_v60  ;;  %3328 = vmatmul.f32.gmra.mxu2 %v3854_v8  ;;  %3414 = vmatmul.f32.gmra.mxu3 %v4666_v42  ;;  %v4912_v36 = vpop.f32.mrf.mxu1  ;;  %v4929_v60 = vld [vmem:[#allocation3 + $0xae] sm:$0xff] }
 0x30a   :  { %v3006_v3 = vpop.f32.mrf.mxu2  ;;  %v3092_v39 = vpop.f32.mrf.mxu3  ;;  %3257 = vmatmul.f32.gmra.mxu1 %v4708_v55  ;;  %v4927_v55 = vld [vmem:[#allocation3 + $0xad] sm:$0xff] }
 0x30b   :  { %v3007_v7 = vadd.f32 %v3006_v3, %v4870_v23  ;;  %v3178_v21 = vpop.f32.mrf.mxu0 }
 0x30d   :  { %v3093_v27 = vadd.f32 %v3092_v39, %v3007_v7 }
 0x30e   :  { %3500 = vmatmul.f32.gmra.mxu0 %v4706_v11 }
 0x30f   :  { %v4919_v13 = vadd.f32 %v3178_v21, %v3093_v27  ;;  %3331 = vmatmul.f32.gmra.mxu2 %v4666_v42  ;;  %3417 = vmatmul.f32.gmra.mxu3 %v4688_v31  ;;  %v4923_v8 = vpop.f32.mrf.mxu1  ;;  %v2380_v21 = vld [vmem:[#allocation3 + $0xb4] sm:$0xff]  ;;  %v2381_v27 = vld [vmem:[#allocation3 + $0xbc] sm:$0xff] }
 0x312   :  { %v3009_v58 = vpop.f32.mrf.mxu2  ;;  %v3095_v6 = vpop.f32.mrf.mxu3  ;;  %3260 = vmatmul.f32.gmra.mxu1 %v4739_v34 }
 0x313   :  { %v3010_v23 = vadd.f32 %v3009_v58, %v4877_v46  ;;  %v3181_v37 = vpop.f32.mrf.mxu0 }
 0x315   :  { %v3096_v11 = vadd.f32 %v3095_v6, %v3010_v23  ;;  %v2336_v6 = vld [vmem:[#allocation3 + $0xbc] sm:$0x3] }
 0x316   :  { %3503 = vmatmul.f32.gmra.mxu0 %v4732_v9  ;;  %v2426_v9 = vld [vmem:[#allocation3 + $0xb5] sm:$0xff]  ;;  %2359 = vst [vmem:[#allocation4 + $0x608] sm:$0x3] %v2336_v6 }
 0x317   :  { %v4932_v42 = vadd.f32 %v3181_v37, %v3096_v11  ;;  %3334 = vmatmul.f32.gmra.mxu2 %v4688_v31  ;;  %3420 = vmatmul.f32.gmra.mxu3 %v4725_v50  ;;  %v4936_v3 = vpop.f32.mrf.mxu1  ;;  %v2833_v31 = vld [vmem:[#allocation10 + $0x400] sm:$0xff]  ;;  %v4945_v37 = vld [vmem:[#allocation3 + $0xb6] sm:$0xff] }
 0x318   :  { %3552 = vmatpush.msra.mxu1 %v2833_v31 }
 0x31a   :  { %v3012_v46 = vpop.f32.mrf.mxu2  ;;  %v3098_v39 = vpop.f32.mrf.mxu3  ;;  %3263 = vmatmul.f32.gmra.mxu1 %v4751_v10 }
 0x31b   :  { %v3013_v34 = vadd.f32 %v3012_v46, %v4884_v61  ;;  %v3184_v7 = vpop.f32.mrf.mxu0 }
 0x31d   :  { %v3099_v58 = vadd.f32 %v3098_v39, %v3013_v34 }
 0x31e   :  { %3506 = vmatmul.f32.gmra.mxu0 %v4746_v52 }
 0x31f   :  { %v4941_v23 = vadd.f32 %v3184_v7, %v3099_v58  ;;  %3337 = vmatmul.f32.gmra.mxu2 %v4725_v50  ;;  %3423 = vmatmul.f32.gmra.mxu3 %v4744_v20  ;;  %v4947_v61 = vpop.f32.mrf.mxu1 }
 0x322   :  { %v3015_v10 = vpop.f32.mrf.mxu2  ;;  %v3101_v11 = vpop.f32.mrf.mxu3  ;;  %3266 = vmatmul.f32.gmra.mxu1 %v4762_v28 }
 0x323   :  { %v3016_v45 = vadd.f32 %v3015_v10, %v4891_v19  ;;  %v3187_v52 = vpop.f32.mrf.mxu0 }
 0x325   :  { %v3102_v46 = vadd.f32 %v3101_v11, %v3016_v45 }
 0x326   :  { %3509 = vmatmul.f32.gmra.mxu0 %v4757_v40 }
 0x327   :  { %v4952_v50 = vadd.f32 %v3187_v52, %v3102_v46  ;;  %3340 = vmatmul.f32.gmra.mxu2 %v4744_v20  ;;  %3426 = vmatmul.f32.gmra.mxu3 %v4759_v24  ;;  %v4956_v39 = vpop.f32.mrf.mxu1 }
 0x32a   :  { %v3018_v34 = vpop.f32.mrf.mxu2  ;;  %3269 = vmatmul.f32.gmra.mxu1 %v4777_v15  ;;  %v3104_v19 = vpop.f32.mrf.mxu3  ;;  %v2700_v15 = vld [vmem:[#allocation4 + $0x2f0] sm:$0x3] }
 0x32b   :  { %v3019_v7 = vadd.f32 %v3018_v34, %v4902_v4  ;;  %v3190_v28 = vpop.f32.mrf.mxu0 }
 0x32d   :  { %v3105_v58 = vadd.f32 %v3104_v19, %v3019_v7 }
 0x32e   :  { %3512 = vmatmul.f32.gmra.mxu0 %v4769_v44 }
 0x32f   :  { %v4961_v6 = vadd.f32 %v3190_v28, %v3105_v58  ;;  %3343 = vmatmul.f32.gmra.mxu2 %v4759_v24  ;;  %3429 = vmatmul.f32.gmra.mxu3 %v4764_v38  ;;  %v4965_v20 = vpop.f32.mrf.mxu1 }
 0x332   :  { %3272 = vmatmul.f32.gmra.mxu1 %v4793_v35 }
 0x336   :  { %3515 = vmatmul.f32.gmra.mxu0 %v4779_v18  ;;  %v2701_v18 = vld [vmem:[#allocation4 + $0x608] sm:$0x3] }
 0x337   :  { %3346 = vmatmul.f32.gmra.mxu2 %v4764_v38  ;;  %3432 = vmatmul.f32.gmra.mxu3 %v4775_v30  ;;  %v4971_v40 = vpop.f32.mrf.mxu1 }
 0x33a   :  { %3275 = vmatmul.f32.gmra.mxu1 %v2700_v15  ;;  %v5241_v15 = vld [vmem:[#allocation38_spill] sm:$0xff] }
 0x33e   :  { %3518 = vmatmul.f32.gmra.mxu0 %v4784_v22 }
 0x33f   :  { %3349 = vmatmul.f32.gmra.mxu2 %v4775_v30  ;;  %3435 = vmatmul.f32.gmra.mxu3 %v4782_v63  ;;  %v4976_v24 = vpop.f32.mrf.mxu1  ;;  %v2702_v30 = vld [vmem:[#allocation4 + $0x360] sm:$0x3] }
 0x342   :  { %3553 = vmatmul.f32.vlgmr.msra.gmra.mxu1 %v4799_v53 }
 0x346   :  { %3521 = vmatmul.f32.gmra.mxu0 %v4797_v47 }
 0x347   :  { %3352 = vmatmul.f32.gmra.mxu2 %v4782_v63  ;;  %3438 = vmatmul.f32.gmra.mxu3 %v4795_v5  ;;  %v4982_v38 = vpop.f32.mrf.mxu1  ;;  %v3855_v63 = vld [vmem:[#allocation3] sm:$0xff] }
 0x34a   :  { %3556 = vmatmul.f32.gmra.mxu1 %v4802_v43 }
 0x34e   :  { %3524 = vmatmul.f32.gmra.mxu0 %v4927_v55 }
 0x34f   :  { %3355 = vmatmul.f32.gmra.mxu2 %v4795_v5  ;;  %3441 = vmatmul.f32.gmra.mxu3 %v2380_v21  ;;  %v4987_v22 = vpop.f32.mrf.mxu1  ;;  %v2703_v5 = vld [vmem:[#allocation4 + $0x4a8] sm:$0x3] }
 0x352   :  { %3559 = vmatmul.f32.gmra.mxu1 %v4804_v16  ;;  %v3296_v16 = vpop.f32.mrf.mxu2 }
 0x356   :  { %3527 = vmatmul.f32.gmra.mxu0 %v2426_v9 }
 0x357   :  { %3358 = vmatmul.f32.gmra.mxu2 %v2380_v21  ;;  %3444 = vmatmul.f32.gmra.mxu3 %v2381_v27  ;;  %v4990_v44 = vpop.f32.mrf.mxu1 }
 0x35a   :  { %3562 = vmatmul.f32.gmra.mxu1 %v4809_v26  ;;  %v3299_v21 = vpop.f32.mrf.mxu2 }
 0x35e   :  { %3530 = vmatmul.f32.gmra.mxu0 %v3855_v63 }
 0x35f   :  { %3361 = vmatmul.f32.gmra.mxu2 %v2701_v18  ;;  %3447 = vmatmul.f32.gmra.mxu3 %v2702_v30  ;;  %v4993_v35 = vpop.f32.mrf.mxu1  ;;  %v3214_v30 = vadd.f32 %v4923_v8, %v5241_v15 }
 0x362   :  { %3565 = vmatmul.f32.gmra.mxu1 %v4815_v51  ;;  %v3382_v51 = vpop.f32.mrf.mxu3  ;;  %v3302_v9 = vpop.f32.mrf.mxu2 }
 0x366   :  { %3533 = vmatmul.f32.gmra.mxu0 %v2703_v5 }
 0x367   :  { %v4996_v47 = vpop.f32.mrf.mxu1 }
 0x36a   :  { %3568 = vmatmul.f32.gmra.mxu1 %v4818_v2  ;;  %v3468_v2 = vpop.f32.mrf.mxu0  ;;  %v3305_v10 = vpop.f32.mrf.mxu2 }
 0x36f   :  { %v4999_v53 = vpop.f32.mrf.mxu1 }
 0x372   :  { %3571 = vmatmul.f32.gmra.mxu1 %v4826_v49  ;;  %v3385_v49 = vpop.f32.mrf.mxu3  ;;  %v3308_v52 = vpop.f32.mrf.mxu2 }
 0x377   :  { %v5002_v26 = vpop.f32.mrf.mxu1 }
 0x37a   :  { %3574 = vmatmul.f32.gmra.mxu1 %v4833_v62  ;;  %v3471_v62 = vpop.f32.mrf.mxu0  ;;  %v3388_v31 = vpop.f32.mrf.mxu3 }
 0x37b   :  { %v3311_v28 = vpop.f32.mrf.mxu2 }
 0x37f   :  { %v5005_v43 = vpop.f32.mrf.mxu1 }
 0x382   :  { %3577 = vmatmul.f32.gmra.mxu1 %v4840_v56  ;;  %v3391_v45 = vpop.f32.mrf.mxu3 }
 0x387   :  { %v5008_v4 = vpop.f32.mrf.mxu1 }
 0x38a   :  { %3580 = vmatmul.f32.gmra.mxu1 %v4847_v33  ;;  %v3474_v33 = vpop.f32.mrf.mxu0  ;;  %v3394_v34 = vpop.f32.mrf.mxu3 }
 0x38f   :  { %v5011_v55 = vpop.f32.mrf.mxu1 }
 0x392   :  { %3583 = vmatmul.f32.gmra.mxu1 %v4854_v12  ;;  %v3477_v12 = vpop.f32.mrf.mxu0 }
 0x397   :  { %v5014_v27 = vpop.f32.mrf.mxu1 }
 0x39a   :  { %3586 = vmatmul.f32.gmra.mxu1 %v4861_v0  ;;  %v3211_v0 = vadd.f32 %v4912_v36, %v4735_v14  ;;  %v5039_v14 = vld [vmem:[%s5176_s5] ss:$0 sm:$0xff]  ;;  %v3397_v36 = vpop.f32.mrf.mxu3  ;;  %s3965_s5 = smov [#allocation11]  }
 0x39c   :  { %v3297_v7 = vadd.f32 %v3296_v16, %v3211_v0 }
 0x39f   :  { %v5017_v56 = vpop.f32.mrf.mxu1 }
 0x3a2   :  { %3589 = vmatmul.f32.gmra.mxu1 %v4868_v32  ;;  %v5028_v32 = vpop.f32.mrf.mxu0 }
 0x3a7   :  { %v5020_v11 = vpop.f32.mrf.mxu1 }
 0x3aa   :  { %3592 = vmatmul.f32.gmra.mxu1 %v4875_v59  ;;  %v3383_v59 = vadd.f32 %v3382_v51, %v3297_v7  ;;  %v3314_v51 = vpop.f32.mrf.mxu2 }
 0x3ac   :  { %v3469_v18 = vadd.f32 %v3468_v2, %v3383_v59  ;;  %v5242_v2 = vld [vmem:[#allocation39_spill] sm:$0xff] }
 0x3af   :  { %v5023_v46 = vpop.f32.mrf.mxu1 }
 0x3b2   :  { %3595 = vmatmul.f32.gmra.mxu1 %v4882_v17  ;;  %v3300_v17 = vadd.f32 %v3299_v21, %v3214_v30  ;;  %v3217_v21 = vadd.f32 %v4936_v3, %v5242_v2  ;;  %v5243_v30 = vld [vmem:[#allocation15_spill] sm:$0xff] }
 0x3b4   :  { %v3386_v16 = vadd.f32 %v3385_v49, %v3300_v17  ;;  %v3400_v49 = vpop.f32.mrf.mxu3 }
 0x3b6   :  { %v3472_v7 = vadd.f32 %v3471_v62, %v3386_v16  ;;  %v3317_v62 = vpop.f32.mrf.mxu2 }
 0x3b7   :  { %v3276_v19 = vpop.f32.mrf.mxu1 }
 0x3b8   :  { %v5031_v58 = vadd.f32 %v3276_v19, %v4961_v6  ;;  %v5044_v6 = vld [vmem:[%s5177_s6] ss:$0 sm:$0xff]  ;;  %v3303_v19 = vadd.f32 %v3302_v9, %v3217_v21  ;;  %s3754_s6 = sshll.u32 %s3965_s5, 4  ;;  %s3755_s6 = int_to_ptr.vmem [resolvable:$true] %s3754_s6 }
 0x3ba   :  { %5240 = vst [vmem:[#allocation52_spill] sm:$0xff] %v5031_v58  ;;  %3598 = vmatmul.f32.gmra.mxu1 %v4889_v1  ;;  %v5046_v1 = vpop.f32.mrf.mxu0  ;;  %v3389_v17 = vadd.f32 %v3388_v31, %v3303_v19 }
 0x3bc   :  { %v3475_v9 = vadd.f32 %v3474_v33, %v3389_v17 }
 0x3bf   :  { %v3554_v63 = vpop.f32.mrf.mxu1 }
 0x3c0   :  { %v3555_v5 = vadd.f32 %v3554_v63, %v3469_v18 }
 0x3c2   :  { %v3627_v8 = vmul.f32 %v5039_v14, %v3555_v5  ;;  %3601 = vmatmul.f32.gmra.mxu1 %v4897_v41  ;;  %v5244_v41 = vld [vmem:[#allocation40_spill] sm:$0xff]  ;;  %v3486_v3 = vpop.f32.mrf.mxu0 }
 0x3c3   :  { %v3220_v58 = vadd.f32 %v4947_v61, %v5244_v41 }
 0x3c4   :  { %v3654_v0 = vadd.f32 %v5044_v6, %v3627_v8 }
 0x3c5   :  { %v3306_v16 = vadd.f32 %v3305_v10, %v3220_v58 }
 0x3c6   :  { %v3677_v59 = vmax.f32 %v3654_v0, 0.0  ;;  %v5245_v0 = vld [vmem:[#allocation16_spill] sm:$0xff] }
 0x3c7   :  { %v3557_v15 = vpop.f32.mrf.mxu1  ;;  %v3392_v31 = vadd.f32 %v3391_v45, %v3306_v16 }
 0x3c8   :  { %v3700_v18 = vmul.f32 %v3677_v59, %v5243_v30  ;;  %v3558_v63 = vadd.f32 %v3557_v15, %v3472_v7  ;;  %v5246_v15 = vld [vmem:[#allocation41_spill] sm:$0xff] }
 0x3c9   :  { %v3223_v61 = vadd.f32 %v4956_v39, %v5246_v15 }
 0x3ca   :  { %3727 = vst [vmem:[#allocation11 + $0xb] sm:$0xff] %v3700_v18  ;;  %v3628_v5 = vmul.f32 %v5039_v14, %v3558_v63  ;;  %3604 = vmatmul.f32.gmra.mxu1 %v4906_v29  ;;  %v3403_v29 = vpop.f32.mrf.mxu3  ;;  %v3478_v18 = vadd.f32 %v3477_v12, %v3392_v31  ;;  %v3489_v10 = vpop.f32.mrf.mxu0 }
 0x3cb   :  { %v3309_v33 = vadd.f32 %v3308_v52, %v3223_v61  ;;  %v3320_v63 = vpop.f32.mrf.mxu2 }
 0x3cc   :  { %v3655_v8 = vadd.f32 %v5044_v6, %v3628_v5  ;;  %v5247_v5 = vld [vmem:[#allocation17_spill] sm:$0xff] }
 0x3ce   :  { %v3678_v2 = vmax.f32 %v3655_v8, 0.0  ;;  %v3395_v8 = vadd.f32 %v3394_v34, %v3309_v33 }
 0x3cf   :  { %v3560_v21 = vpop.f32.mrf.mxu1 }
 0x3d0   :  { %v3701_v7 = vmul.f32 %v3678_v2, %v5245_v0  ;;  %v3561_v59 = vadd.f32 %v3560_v21, %v3475_v9  ;;  %v3481_v52 = vadd.f32 %v5028_v32, %v3395_v8 }
 0x3d2   :  { %3728 = vst [vmem:[#allocation11 + $0x13] sm:$0xff] %v3701_v7  ;;  %v3629_v19 = vmul.f32 %v5039_v14, %v3561_v59  ;;  %3607 = vmatmul.f32.gmra.mxu1 %v4916_v57  ;;  %v5248_v57 = vld [vmem:[#allocation42_spill] sm:$0xff]  ;;  %v3406_v12 = vpop.f32.mrf.mxu3  ;;  %v3492_v7 = vpop.f32.mrf.mxu0 }
 0x3d3   :  { %v3226_v39 = vadd.f32 %v4965_v20, %v5248_v57  ;;  %v5249_v59 = vld [vmem:[#allocation18_spill] sm:$0xff]  ;;  %v5250_v20 = vld [vmem:[#allocation43_spill] sm:$0xff] }
 0x3d4   :  { %v3656_v30 = vadd.f32 %v5044_v6, %v3629_v19  ;;  %v3323_v19 = vpop.f32.mrf.mxu2  ;;  %v3229_v61 = vadd.f32 %v4971_v40, %v5250_v20  ;;  %v5252_v40 = vld [vmem:[#allocation44_spill] sm:$0xff] }
 0x3d5   :  { %v3312_v2 = vadd.f32 %v3311_v28, %v3226_v39  ;;  %v3232_v57 = vadd.f32 %v4976_v24, %v5252_v40 }
 0x3d6   :  { %v3679_v58 = vmax.f32 %v3656_v30, 0.0  ;;  %v3315_v28 = vadd.f32 %v3314_v51, %v3229_v61 }
 0x3d7   :  { %v3563_v17 = vpop.f32.mrf.mxu1  ;;  %v3398_v15 = vadd.f32 %v3397_v36, %v3312_v2  ;;  %v3318_v39 = vadd.f32 %v3317_v62, %v3232_v57  ;;  %v2704_v2 = vld [vmem:[#allocation4 + $0x438] sm:$0x3] }
 0x3d8   :  { %v3702_v41 = vmul.f32 %v3679_v58, %v5247_v5  ;;  %v3564_v45 = vadd.f32 %v3563_v17, %v3478_v18  ;;  %v2695_v17 = vld [vmem:[#allocation4 + $0x150] sm:$0xff]  ;;  %v5251_v5 = vld [vmem:[#allocation19_spill] sm:$0xff] }
 0x3d9   :  { %v3484_v32 = vadd.f32 %v5046_v1, %v3398_v15  ;;  %v5254_v15 = vld [vmem:[#allocation45_spill] sm:$0xff] }
 0x3da   :  { %3729 = vst [vmem:[#allocation11 + $0x1b] sm:$0xff] %v3702_v41  ;;  %v3630_v9 = vmul.f32 %v5039_v14, %v3564_v45  ;;  %3610 = vmatmul.f32.gmra.mxu1 %v4929_v60  ;;  %v3409_v33 = vpop.f32.mrf.mxu3  ;;  %v3401_v45 = vadd.f32 %v3400_v49, %v3315_v28  ;;  %v3495_v8 = vpop.f32.mrf.mxu0  ;;  %v5255_v28 = vld [vmem:[#allocation21_spill] sm:$0xff] }
 0x3dc   :  { %v3657_v16 = vadd.f32 %v5044_v6, %v3630_v9  ;;  %v3326_v9 = vpop.f32.mrf.mxu2  ;;  %v3487_v51 = vadd.f32 %v3486_v3, %v3401_v45 }
 0x3de   :  { %v3680_v21 = vmax.f32 %v3657_v16, 0.0 }
 0x3df   :  { %v3566_v0 = vpop.f32.mrf.mxu1 }
 0x3e0   :  { %v3703_v31 = vmul.f32 %v3680_v21, %v5249_v59  ;;  %v3567_v34 = vadd.f32 %v3566_v0, %v3481_v52  ;;  %v5253_v21 = vld [vmem:[#allocation20_spill] sm:$0xff] }
 0x3e2   :  { %3730 = vst [vmem:[#allocation11 + $0x23] sm:$0xff] %v3703_v31  ;;  %v3631_v60 = vmul.f32 %v5039_v14, %v3567_v34  ;;  %3613 = vmatmul.f32.gmra.mxu1 %v4945_v37  ;;  %v3412_v49 = vpop.f32.mrf.mxu3  ;;  %v3404_v31 = vadd.f32 %v3403_v29, %v3318_v39  ;;  %v3498_v24 = vpop.f32.mrf.mxu0 }
 0x3e4   :  { %v3658_v30 = vadd.f32 %v5044_v6, %v3631_v60  ;;  %v3235_v60 = vadd.f32 %v4982_v38, %v5254_v15  ;;  %v3329_v3 = vpop.f32.mrf.mxu2  ;;  %v3490_v62 = vadd.f32 %v3489_v10, %v3404_v31 }
 0x3e6   :  { %v3681_v18 = vmax.f32 %v3658_v30, 0.0  ;;  %v3321_v61 = vadd.f32 %v3320_v63, %v3235_v60 }
 0x3e7   :  { %v3569_v58 = vpop.f32.mrf.mxu1 }
 0x3e8   :  { %v3704_v41 = vmul.f32 %v3681_v18, %v5251_v5  ;;  %v3570_v36 = vadd.f32 %v3569_v58, %v3484_v32 }
 0x3ea   :  { %3731 = vst [vmem:[#allocation11 + $0x2b] sm:$0xff] %v3704_v41  ;;  %v3632_v37 = vmul.f32 %v5039_v14, %v3570_v36  ;;  %3616 = vmatmul.f32.gmra.mxu1 %v2695_v17  ;;  %v3407_v17 = vadd.f32 %v3406_v12, %v3321_v61  ;;  %v3415_v5 = vpop.f32.mrf.mxu3  ;;  %v5256_v41 = vld [vmem:[#allocation46_spill] sm:$0xff]  ;;  %v3501_v40 = vpop.f32.mrf.mxu0  ;;  %v5260_v61 = vld [vmem:[#allocation48_spill] sm:$0xff] }
 0x3eb   :  { %v3238_v36 = vadd.f32 %v4987_v22, %v5256_v41 }
 0x3ec   :  { %v3659_v1 = vadd.f32 %v5044_v6, %v3632_v37  ;;  %v3493_v45 = vadd.f32 %v3492_v7, %v3407_v17  ;;  %v3332_v63 = vpop.f32.mrf.mxu2 }
 0x3ed   :  { %v3324_v37 = vadd.f32 %v3323_v19, %v3238_v36 }
 0x3ee   :  { %v3682_v16 = vmax.f32 %v3659_v1, 0.0  ;;  %v5257_v1 = vld [vmem:[#allocation22_spill] sm:$0xff] }
 0x3ef   :  { %v3572_v52 = vpop.f32.mrf.mxu1 }
 0x3f0   :  { %v3705_v0 = vmul.f32 %v3682_v16, %v5253_v21  ;;  %v3573_v59 = vadd.f32 %v3572_v52, %v3487_v51  ;;  %v3410_v16 = vadd.f32 %v3409_v33, %v3324_v37  ;;  %v5258_v52 = vld [vmem:[#allocation47_spill] sm:$0xff] }
 0x3f2   :  { %3732 = vst [vmem:[#allocation11 + $0x33] sm:$0xff] %v3705_v0  ;;  %v3633_v34 = vmul.f32 %v5039_v14, %v3573_v59  ;;  %3619 = vmatmul.f32.gmra.mxu1 %v2704_v2  ;;  %v3241_v2 = vadd.f32 %v4990_v44, %v5258_v52  ;;  %v3418_v21 = vpop.f32.mrf.mxu3  ;;  %v3496_v0 = vadd.f32 %v3495_v8, %v3410_v16  ;;  %v3504_v31 = vpop.f32.mrf.mxu0  ;;  %v5264_v52 = vld [vmem:[#allocation50_spill] sm:$0xff] }
 0x3f4   :  { %v3660_v20 = vadd.f32 %v5044_v6, %v3633_v34  ;;  %v3327_v7 = vadd.f32 %v3326_v9, %v3241_v2  ;;  %v5259_v34 = vld [vmem:[#allocation23_spill] sm:$0xff]  ;;  %v3250_v2 = vadd.f32 %v4999_v53, %v5264_v52  ;;  %v5269_v52 = vld [vmem:[#allocation29_spill] sm:$0xff] }
 0x3f6   :  { %v3683_v30 = vmax.f32 %v3660_v20, 0.0  ;;  %v3335_v20 = vpop.f32.mrf.mxu2 }
 0x3f7   :  { %v3575_v32 = vpop.f32.mrf.mxu1 }
 0x3f8   :  { %v3706_v18 = vmul.f32 %v3683_v30, %v5255_v28  ;;  %v3576_v58 = vadd.f32 %v3575_v32, %v3490_v62  ;;  %v3413_v62 = vadd.f32 %v3412_v49, %v3327_v7  ;;  %v3244_v30 = vadd.f32 %v4993_v35, %v5260_v61 }
 0x3fa   :  { %3733 = vst [vmem:[#allocation11 + $0x3b] sm:$0xff] %v3706_v18  ;;  %v3634_v29 = vmul.f32 %v5039_v14, %v3576_v58  ;;  %v3499_v32 = vadd.f32 %v3498_v24, %v3413_v62  ;;  %v3330_v28 = vadd.f32 %v3329_v3, %v3244_v30  ;;  %v3421_v9 = vpop.f32.mrf.mxu3  ;;  %v5261_v58 = vld [vmem:[#allocation24_spill] sm:$0xff]  ;;  %v3507_v36 = vpop.f32.mrf.mxu0 }
 0x3fc   :  { %v3661_v38 = vadd.f32 %v5044_v6, %v3634_v29  ;;  %v3416_v41 = vadd.f32 %v3415_v5, %v3330_v28 }
 0x3fe   :  { %v3684_v10 = vmax.f32 %v3661_v38, 0.0  ;;  %v3338_v38 = vpop.f32.mrf.mxu2 }
 0x3ff   :  { %v3578_v57 = vpop.f32.mrf.mxu1 }
 0x400   :  { %v3707_v51 = vmul.f32 %v3684_v10, %v5257_v1  ;;  %v3579_v39 = vadd.f32 %v3578_v57, %v3493_v45  ;;  %v5262_v45 = vld [vmem:[#allocation49_spill] sm:$0xff]  ;;  %v3502_v10 = vadd.f32 %v3501_v40, %v3416_v41  ;;  %v3336_v40 = vadd.f32 %v3335_v20, %v3250_v2 }
 0x401   :  { %v3247_v37 = vadd.f32 %v4996_v47, %v5262_v45  ;;  %v5263_v1 = vld [vmem:[#allocation25_spill] sm:$0xff] }
 0x402   :  { %3734 = vst [vmem:[#allocation11 + $0x43] sm:$0xff] %v3707_v51  ;;  %v3635_v12 = vmul.f32 %v5039_v14, %v3579_v39  ;;  %v3424_v16 = vpop.f32.mrf.mxu3 }
 0x403   :  { %v3333_v24 = vadd.f32 %v3332_v63, %v3247_v37 }
 0x404   :  { %v3662_v22 = vadd.f32 %v5044_v6, %v3635_v12 }
 0x405   :  { %v3419_v12 = vadd.f32 %v3418_v21, %v3333_v24 }
 0x406   :  { %v3685_v19 = vmax.f32 %v3662_v22, 0.0  ;;  %v3510_v22 = vpop.f32.mrf.mxu0 }
 0x407   :  { %v3581_v59 = vpop.f32.mrf.mxu1  ;;  %v3505_v7 = vadd.f32 %v3504_v31, %v3419_v12 }
 0x408   :  { %v3708_v15 = vmul.f32 %v3685_v19, %v5259_v34  ;;  %v3582_v60 = vadd.f32 %v3581_v59, %v3496_v0  ;;  %v3341_v0 = vpop.f32.mrf.mxu2  ;;  %v5265_v59 = vld [vmem:[#allocation26_spill] sm:$0xff] }
 0x40a   :  { %3735 = vst [vmem:[#allocation11 + $0x4b] sm:$0xff] %v3708_v15  ;;  %v3636_v33 = vmul.f32 %v5039_v14, %v3582_v60  ;;  %v3422_v60 = vadd.f32 %v3421_v9, %v3336_v40  ;;  %v3427_v62 = vpop.f32.mrf.mxu3 }
 0x40c   :  { %v3663_v44 = vadd.f32 %v5044_v6, %v3636_v33  ;;  %v5266_v33 = vld [vmem:[#allocation51_spill] sm:$0xff]  ;;  %v3508_v30 = vadd.f32 %v3507_v36, %v3422_v60 }
 0x40d   :  { %v3253_v61 = vadd.f32 %v5002_v26, %v5266_v33 }
 0x40e   :  { %v3686_v8 = vmax.f32 %v3663_v44, 0.0 }
 0x40f   :  { %v3584_v18 = vpop.f32.mrf.mxu1  ;;  %v3339_v44 = vadd.f32 %v3338_v38, %v3253_v61 }
 0x410   :  { %v3709_v17 = vmul.f32 %v3686_v8, %v5261_v58  ;;  %v3585_v29 = vadd.f32 %v3584_v18, %v3499_v32  ;;  %v3513_v32 = vpop.f32.mrf.mxu0  ;;  %v3344_v20 = vpop.f32.mrf.mxu2  ;;  %v5267_v8 = vld [vmem:[#allocation27_spill] sm:$0xff] }
 0x412   :  { %3736 = vst [vmem:[#allocation11 + $0x53] sm:$0xff] %v3709_v17  ;;  %v3637_v49 = vmul.f32 %v5039_v14, %v3585_v29  ;;  %v3425_v17 = vadd.f32 %v3424_v16, %v3339_v44  ;;  %v3256_v29 = vadd.f32 %v5005_v43, %v4893_v25  ;;  %v3430_v41 = vpop.f32.mrf.mxu3 }
 0x414   :  { %v3664_v35 = vadd.f32 %v5044_v6, %v3637_v49  ;;  %v3511_v49 = vadd.f32 %v3510_v22, %v3425_v17  ;;  %v3342_v36 = vadd.f32 %v3341_v0, %v3256_v29  ;;  %v3268_v29 = vadd.f32 %v5017_v56, %v4932_v42 }
 0x416   :  { %v3687_v3 = vmax.f32 %v3664_v35, 0.0  ;;  %v5268_v35 = vld [vmem:[#allocation28_spill] sm:$0xff] }
 0x417   :  { %v3587_v57 = vpop.f32.mrf.mxu1 }
 0x418   :  { %v3710_v51 = vmul.f32 %v3687_v3, %v5263_v1  ;;  %v3588_v39 = vadd.f32 %v3587_v57, %v3502_v10  ;;  %v3516_v37 = vpop.f32.mrf.mxu0  ;;  %v3347_v3 = vpop.f32.mrf.mxu2  ;;  %v3428_v57 = vadd.f32 %v3427_v62, %v3342_v36 }
 0x41a   :  { %3737 = vst [vmem:[#allocation11 + $0x5b] sm:$0xff] %v3710_v51  ;;  %v3638_v5 = vmul.f32 %v5039_v14, %v3588_v39  ;;  %v3259_v51 = vadd.f32 %v5008_v4, %v4900_v48  ;;  %v3514_v43 = vadd.f32 %v3513_v32, %v3428_v57  ;;  %v3433_v12 = vpop.f32.mrf.mxu3 }
 0x41c   :  { %v3665_v47 = vadd.f32 %v5044_v6, %v3638_v5  ;;  %v3345_v39 = vadd.f32 %v3344_v20, %v3259_v51 }
 0x41e   :  { %v3688_v63 = vmax.f32 %v3665_v47, 0.0  ;;  %v3431_v47 = vadd.f32 %v3430_v41, %v3345_v39 }
 0x41f   :  { %v3590_v19 = vpop.f32.mrf.mxu1 }
 0x420   :  { %v3711_v34 = vmul.f32 %v3688_v63, %v5265_v59  ;;  %v3591_v15 = vadd.f32 %v3590_v19, %v3505_v7  ;;  %v3519_v0 = vpop.f32.mrf.mxu0  ;;  %v3350_v40 = vpop.f32.mrf.mxu2  ;;  %v3262_v63 = vadd.f32 %v5011_v55, %v4909_v54  ;;  %v3517_v4 = vadd.f32 %v3516_v37, %v3431_v47 }
 0x422   :  { %3738 = vst [vmem:[#allocation11 + $0x63] sm:$0xff] %v3711_v34  ;;  %v3639_v21 = vmul.f32 %v5039_v14, %v3591_v15  ;;  %v3348_v19 = vadd.f32 %v3347_v3, %v3262_v63  ;;  %v5270_v15 = vld [vmem:[#allocation30_spill] sm:$0xff]  ;;  %v3436_v62 = vpop.f32.mrf.mxu3  ;;  %v3271_v3 = vadd.f32 %v5020_v11, %v4941_v23 }
 0x423   :  { %v5274_v63 = vld [vmem:[#allocation34_spill] sm:$0xff] }
 0x424   :  { %v3666_v53 = vadd.f32 %v5044_v6, %v3639_v21  ;;  %v3434_v33 = vadd.f32 %v3433_v12, %v3348_v19 }
 0x426   :  { %v3689_v31 = vmax.f32 %v3666_v53, 0.0  ;;  %v3265_v53 = vadd.f32 %v5014_v27, %v4919_v13  ;;  %v3520_v44 = vadd.f32 %v3519_v0, %v3434_v33 }
 0x427   :  { %v3593_v28 = vpop.f32.mrf.mxu1 }
 0x428   :  { %v3712_v18 = vmul.f32 %v3689_v31, %v5267_v8  ;;  %v3594_v58 = vadd.f32 %v3593_v28, %v3508_v30  ;;  %v3522_v30 = vpop.f32.mrf.mxu0  ;;  %v3353_v55 = vpop.f32.mrf.mxu2  ;;  %v3351_v32 = vadd.f32 %v3350_v40, %v3265_v53  ;;  %v5271_v28 = vld [vmem:[#allocation31_spill] sm:$0xff] }
 0x429   :  { %v5276_v53 = vld [vmem:[#allocation35_spill] sm:$0xff] }
 0x42a   :  { %3739 = vst [vmem:[#allocation11 + $0x6b] sm:$0xff] %v3712_v18  ;;  %v3640_v9 = vmul.f32 %v5039_v14, %v3594_v58  ;;  %v3437_v58 = vadd.f32 %v3436_v62, %v3351_v32 }
 0x42c   :  { %v3667_v26 = vadd.f32 %v5044_v6, %v3640_v9  ;;  %v3439_v9 = vpop.f32.mrf.mxu3  ;;  %v3523_v27 = vadd.f32 %v3522_v30, %v3437_v58 }
 0x42e   :  { %v3690_v38 = vmax.f32 %v3667_v26, 0.0  ;;  %v3354_v26 = vadd.f32 %v3353_v55, %v3268_v29 }
 0x42f   :  { %v3596_v45 = vpop.f32.mrf.mxu1 }
 0x430   :  { %v3713_v10 = vmul.f32 %v3690_v38, %v5268_v35  ;;  %v3597_v24 = vadd.f32 %v3596_v45, %v3511_v49  ;;  %v3525_v41 = vpop.f32.mrf.mxu0  ;;  %v3356_v36 = vpop.f32.mrf.mxu2  ;;  %v5272_v45 = vld [vmem:[#allocation32_spill] sm:$0xff] }
 0x432   :  { %3740 = vst [vmem:[#allocation11 + $0x73] sm:$0xff] %v3713_v10  ;;  %v3641_v1 = vmul.f32 %v5039_v14, %v3597_v24  ;;  %v3440_v10 = vadd.f32 %v3439_v9, %v3354_v26 }
 0x434   :  { %v3668_v25 = vadd.f32 %v5044_v6, %v3641_v1  ;;  %v3442_v56 = vpop.f32.mrf.mxu3  ;;  %v3526_v57 = vadd.f32 %v3525_v41, %v3440_v10  ;;  %v3357_v1 = vadd.f32 %v3356_v36, %v3271_v3 }
 0x436   :  { %v3691_v16 = vmax.f32 %v3668_v25, 0.0 }
 0x437   :  { %v3599_v5 = vpop.f32.mrf.mxu1 }
 0x438   :  { %v3714_v2 = vmul.f32 %v3691_v16, %v5269_v52  ;;  %v3600_v22 = vadd.f32 %v3599_v5, %v3514_v43  ;;  %v5273_v43 = vld [vmem:[#allocation33_spill] sm:$0xff]  ;;  %v3528_v12 = vpop.f32.mrf.mxu0  ;;  %v3359_v5 = vpop.f32.mrf.mxu2  ;;  %v3443_v52 = vadd.f32 %v3442_v56, %v3357_v1 }
 0x43a   :  { %3741 = vst [vmem:[#allocation11 + $0x7b] sm:$0xff] %v3714_v2  ;;  %v3642_v7 = vmul.f32 %v5039_v14, %v3600_v22  ;;  %v3274_v22 = vadd.f32 %v5023_v46, %v4952_v50  ;;  %v3529_v11 = vadd.f32 %v3528_v12, %v3443_v52  ;;  %v5275_v50 = vld [vmem:[#allocation52_spill] sm:$0xff] }
 0x43c   :  { %v3669_v48 = vadd.f32 %v5044_v6, %v3642_v7  ;;  %v3360_v47 = vadd.f32 %v3359_v5, %v3274_v22  ;;  %v3445_v7 = vpop.f32.mrf.mxu3 }
 0x43e   :  { %v3692_v59 = vmax.f32 %v3669_v48, 0.0 }
 0x43f   :  { %v3602_v34 = vpop.f32.mrf.mxu1 }
 0x440   :  { %v3715_v60 = vmul.f32 %v3692_v59, %v5270_v15  ;;  %v3603_v21 = vadd.f32 %v3602_v34, %v3517_v4  ;;  %v3531_v19 = vpop.f32.mrf.mxu0  ;;  %v3446_v59 = vadd.f32 %v3445_v7, %v3360_v47  ;;  %v3362_v15 = vpop.f32.mrf.mxu2 }
 0x441   :  { %v3363_v46 = vadd.f32 %v3362_v15, %v5275_v50 }
 0x442   :  { %3742 = vst [vmem:[#allocation11 + $0x83] sm:$0xff] %v3715_v60  ;;  %v3643_v61 = vmul.f32 %v5039_v14, %v3603_v21  ;;  %v3532_v21 = vadd.f32 %v3531_v19, %v3446_v59 }
 0x444   :  { %v3670_v54 = vadd.f32 %v5044_v6, %v3643_v61  ;;  %v3448_v33 = vpop.f32.mrf.mxu3 }
 0x445   :  { %v3449_v55 = vadd.f32 %v3448_v33, %v3363_v46 }
 0x446   :  { %v3693_v31 = vmax.f32 %v3670_v54, 0.0 }
 0x447   :  { %v3605_v20 = vpop.f32.mrf.mxu1 }
 0x448   :  { %v3716_v8 = vmul.f32 %v3693_v31, %v5271_v28  ;;  %v3606_v18 = vadd.f32 %v3605_v20, %v3520_v44  ;;  %v3534_v32 = vpop.f32.mrf.mxu0 }
 0x449   :  { %v3535_v20 = vadd.f32 %v3534_v32, %v3449_v55 }
 0x44a   :  { %3743 = vst [vmem:[#allocation11 + $0x8b] sm:$0xff] %v3716_v8  ;;  %v3644_v17 = vmul.f32 %v5039_v14, %v3606_v18  ;;  %v5277_v18 = vld [vmem:[#allocation36_spill] sm:$0xff] }
 0x44c   :  { %v3671_v13 = vadd.f32 %v5044_v6, %v3644_v17 }
 0x44e   :  { %v3694_v49 = vmax.f32 %v3671_v13, 0.0 }
 0x44f   :  { %v3608_v38 = vpop.f32.mrf.mxu1 }
 0x450   :  { %v3717_v37 = vmul.f32 %v3694_v49, %v5272_v45  ;;  %v3609_v35 = vadd.f32 %v3608_v38, %v3523_v27  ;;  %v5278_v27 = vld [vmem:[#allocation37_spill] sm:$0xff] }
 0x452   :  { %3744 = vst [vmem:[#allocation11 + $0x93] sm:$0xff] %v3717_v37  ;;  %v3645_v24 = vmul.f32 %v5039_v14, %v3609_v35 }
 0x454   :  { %v3672_v42 = vadd.f32 %v5044_v6, %v3645_v24 }
 0x456   :  { %v3695_v51 = vmax.f32 %v3672_v42, 0.0 }
 0x457   :  { %v3611_v25 = vpop.f32.mrf.mxu1 }
 0x458   :  { %v3718_v39 = vmul.f32 %v3695_v51, %v5273_v43  ;;  %v3612_v16 = vadd.f32 %v3611_v25, %v3526_v57 }
 0x45a   :  { %3745 = vst [vmem:[#allocation11 + $0x9b] sm:$0xff] %v3718_v39  ;;  %v3646_v2 = vmul.f32 %v5039_v14, %v3612_v16 }
 0x45c   :  { %v3673_v23 = vadd.f32 %v5044_v6, %v3646_v2 }
 0x45e   :  { %v3696_v0 = vmax.f32 %v3673_v23, 0.0 }
 0x45f   :  { %v3614_v40 = vpop.f32.mrf.mxu1 }
 0x460   :  { %v3719_v48 = vmul.f32 %v3696_v0, %v5274_v63  ;;  %v3615_v4 = vadd.f32 %v3614_v40, %v3529_v11 }
 0x462   :  { %3746 = vst [vmem:[#allocation11 + $0xa3] sm:$0xff] %v3719_v48  ;;  %v3647_v34 = vmul.f32 %v5039_v14, %v3615_v4 }
 0x464   :  { %v3674_v60 = vadd.f32 %v5044_v6, %v3647_v34 }
 0x466   :  { %v3697_v62 = vmax.f32 %v3674_v60, 0.0 }
 0x467   :  { %v3617_v61 = vpop.f32.mrf.mxu1 }
 0x468   :  { %v3720_v30 = vmul.f32 %v3697_v62, %v5276_v53  ;;  %v3618_v54 = vadd.f32 %v3617_v61, %v3532_v21 }
 0x46a   :  { %3747 = vst [vmem:[#allocation11 + $0xab] sm:$0xff] %v3720_v30  ;;  %v3648_v44 = vmul.f32 %v5039_v14, %v3618_v54 }
 0x46c   :  { %v3675_v31 = vadd.f32 %v5044_v6, %v3648_v44 }
 0x46e   :  { %v3698_v28 = vmax.f32 %v3675_v31, 0.0 }
 0x46f   :  { %v3620_v8 = vpop.f32.mrf.mxu1 }
 0x470   :  { %v3721_v58 = vmul.f32 %v3698_v28, %v5277_v18  ;;  %v3621_v17 = vadd.f32 %v3620_v8, %v3535_v20 }
 0x472   :  { %3748 = vst [vmem:[#allocation11 + $0xb3] sm:$0xff] %v3721_v58  ;;  %v3649_v9 = vmul.f32 %v5039_v14, %v3621_v17 }
 0x474   :  { %v3676_v29 = vadd.f32 %v5044_v6, %v3649_v9 }
 0x476   :  { %v3699_v13 = vmax.f32 %v3676_v29, 0.0 }
 0x478   :  { %v3722_v26 = vmul.f32 %v3699_v13, %v5278_v27 }
 0x47a   :  { %3749 = vst [vmem:[#allocation11 + $0xbb] sm:$0x3] %v3722_v26 }
 0x47b   :  { %3762 = dma.vmem_to_hbm [thread:$0]  %s3755_s6, 3200, %s3757_s30, [#allocation7], %s3959_s13, %s3959_s13, %s3960_s14  }
 0x47c   :  { %3956 = dma.done.wait [#allocation7], 3200  }
 0x47d   :  { %3957 = vsyncadd [#allocation7], 4294964096 }
 0x47e   :  { %3767 = vsyncpa [#allocation6], 1 }
 0x47f   :  { %3768 = vsyncpa [#allocation9], 1 }
 0x480   :  { %3769 = vsyncpa [#allocation7], 1 }

</bundles_post_ra>
